<compile_context>
chip_gen: v6e
topology: v6e:2x2x1
jax: 0.10.0
libtpu: 0.0.40
codegen_flags: <defaults>
</compile_context>

<pallas_src>
import functools

import jax
import jax.numpy as jnp
from jax.experimental import pallas as pl
from jax.experimental.pallas import tpu as pltpu


def _resblock_kernel(x_ref, w1_ref, b1_ref, w2_ref, b2_ref, o_ref, h_scr,
                     *, C, H, W, th):
    """One (batch, H-tile) step of the fused ResBlock.

    x_ref : (1, C, H+4, W+2) VMEM  reflect-padded input (pad 2 in H, 1 in W)
    w*_ref: (C*C*9,)         SMEM  conv weights, OIHW flattened
    b*_ref: (C,)             SMEM  conv biases
    o_ref : (1, C, th, W)    VMEM  output tile (image rows [t*th, t*th+th))
    h_scr : (C, th+2, W+2)   VMEM  reflect-padded conv1 output tile (f32)
    """
    t = pl.program_id(1)
    nt = pl.num_programs(1)
    r0 = pl.multiple_of(t * th, th)          # first output row of this tile

    # --- conv1 + bias + ReLU over th+2 rows --------------------------------
    # Scratch row p holds h row (r0 - 1 + p).  The (at most two) rows falling
    # outside the image are overwritten by the reflection fix-up below, so the
    # values computed for them from the outer padding ring never reach the
    # output.  Each tap window is loaded once and reused for every out-channel.
    acc1 = [None] * C
    for ci in range(C):
        for kh in range(3):
            for kw in range(3):
                win = x_ref[0, ci, pl.ds(r0 + kh, th + 2), pl.ds(kw, W)]
                win = win.astype(jnp.float32)
                for co in range(C):
                    wv = w1_ref[((co * C + ci) * 3 + kh) * 3 + kw]
                    term = win * wv
                    acc1[co] = term if acc1[co] is None else acc1[co] + term
    for co in range(C):
        h_scr[co, :, pl.ds(1, W)] = jnp.maximum(acc1[co] + b1_ref[co], 0.0)

    # --- reflection ring of the conv1 output (ReflectionPad2d(1) on h) -----
    @pl.when(t == 0)
    def _():
        # padded-h row 0 == h row 1 == scratch row 2
        h_scr[:, pl.ds(0, 1), pl.ds(1, W)] = h_scr[:, pl.ds(2, 1), pl.ds(1, W)]

    @pl.when(t == nt - 1)
    def _():
        # padded-h row H+1 == h row H-2 == scratch row th-1
        h_scr[:, pl.ds(th + 1, 1), pl.ds(1, W)] = (
            h_scr[:, pl.ds(th - 1, 1), pl.ds(1, W)])

    # W-direction reflection for every row of the tile.
    h_scr[:, :, pl.ds(0, 1)] = h_scr[:, :, pl.ds(2, 1)]
    h_scr[:, :, pl.ds(W + 1, 1)] = h_scr[:, :, pl.ds(W - 1, 1)]

    # --- conv2 + bias + residual + final ReLU -------------------------------
    acc2 = [None] * C
    for ci in range(C):
        for kh in range(3):
            for kw in range(3):
                win = h_scr[ci, pl.ds(kh, th), pl.ds(kw, W)]
                for co in range(C):
                    wv = w2_ref[((co * C + ci) * 3 + kh) * 3 + kw]
                    term = win * wv
                    acc2[co] = term if acc2[co] is None else acc2[co] + term
    for co in range(C):
        res = x_ref[0, co, pl.ds(r0 + 2, th), pl.ds(1, W)].astype(jnp.float32)
        out = jnp.maximum(acc2[co] + b2_ref[co] + res, 0.0)
        o_ref[0, co] = out.astype(o_ref.dtype)


def _choose_tile_h(H, W, C, itemsize, budget_bytes=4 << 20):
    """Largest H-tile whose per-step working set fits the budget; prefer >= 2
    tiles so the second grid axis can feed both TensorCores on v7x."""
    def step_bytes(th):
        h_scr = C * (th + 2) * (W + 2) * 4          # f32 scratch
        out_blk = 2 * C * th * W * itemsize         # double-buffered out block
        temps = 8 * C * (th + 2) * W * 4            # live f32 temporaries
        return h_scr + out_blk + temps

    cands = [d for d in range(1, H + 1)
             if H % d == 0 and (d % 8 == 0 or d == H)]
    fitting = [d for d in cands if step_bytes(d) <= budget_bytes] or [min(cands)]
    best = max(fitting)
    if best == H:
        smaller = [d for d in fitting if d < H and d % 8 == 0]
        if smaller:
            best = max(smaller)
    return best


def _vmem_limit_bytes(C, H, W, th, itemsize):
    need = (2 * C * (H + 4) * (W + 2) * itemsize    # double-buffered input block
            + C * (th + 2) * (W + 2) * 4            # h scratch
            + 2 * C * th * W * itemsize             # double-buffered output block
            + 8 * C * (th + 2) * W * 4)             # live f32 temporaries
    # Never go below the conservative per-target defaults; stay well inside
    # v7x's 64 MiB physical VMEM.
    return int(min(max(2 * need, 16 << 20), 56 << 20))


def resblock_pallas(x, w1, b1, w2, b2, *, tile_h=None):
    """Fused ResBlock forward.
    x: (N, C, H, W); w1/w2: (C, C, 3, 3) in PyTorch OIHW order; b1/b2: (C,)."""
    N, C, H, W = x.shape
    assert H >= 2 and W >= 2, "ReflectionPad2d(1) needs H, W >= 2"
    assert w1.shape == (C, C, 3, 3) and w2.shape == (C, C, 3, 3)

    th = _choose_tile_h(H, W, C, x.dtype.itemsize) if tile_h is None else tile_h
    assert H % th == 0 and (th % 8 == 0 or th == H)
    nt = H // th

    # Reflect-pad once in the wrapper: 1 px on every side (exact
    # ReflectionPad2d(1)) plus one extra edge row top/bottom.  The outer H ring
    # only feeds halo rows whose conv1 output is overwritten by the in-kernel
    # reflection fix-up, so its values are irrelevant.
    x_pad = jnp.pad(x, ((0, 0), (0, 0), (1, 1), (1, 1)), mode="reflect")
    x_pad = jnp.pad(x_pad, ((0, 0), (0, 0), (1, 1), (0, 0)), mode="edge")

    w1_flat = w1.astype(jnp.float32).reshape(-1)
    w2_flat = w2.astype(jnp.float32).reshape(-1)
    b1_flat = b1.astype(jnp.float32).reshape(-1)
    b2_flat = b2.astype(jnp.float32).reshape(-1)

    kernel = functools.partial(_resblock_kernel, C=C, H=H, W=W, th=th)
    smem = pl.BlockSpec(memory_space=pltpu.MemorySpace.SMEM)

    return pl.pallas_call(
        kernel,
        out_shape=jax.ShapeDtypeStruct((N, C, H, W), x.dtype),
        grid_spec=pltpu.PrefetchScalarGridSpec(
            num_scalar_prefetch=0,
            grid=(N, nt),
            in_specs=[
                pl.BlockSpec((1, C, H + 4, W + 2), lambda n, t: (n, 0, 0, 0)),
                smem, smem, smem, smem,
            ],
            out_specs=pl.BlockSpec((1, C, th, W), lambda n, t: (n, 0, t, 0)),
            scratch_shapes=[pltpu.VMEM((C, th + 2, W + 2), jnp.float32)],
        ),
        compiler_params=pltpu.CompilerParams(
            dimension_semantics=("parallel", "parallel"),
            vmem_limit_bytes=_vmem_limit_bytes(C, H, W, th, x.dtype.itemsize),
        ),
    )(x_pad, w1_flat, b1_flat, w2_flat, b2_flat)


# -----------------------------------------------------------------------------
# Pure-JAX reference (PyTorch layouts: NCHW activations, OIHW weights).
# -----------------------------------------------------------------------------
def resblock_ref(x, w1, b1, w2, b2):
    def pad(t):
        return jnp.pad(t, ((0, 0), (0, 0), (1, 1), (1, 1)), mode="reflect")

    def conv(t, w, b):
        y = jax.lax.conv_general_dilated(
            t, w, window_strides=(1, 1), padding="VALID",
            dimension_numbers=("NCHW", "OIHW", "NCHW"))
        return y + b[None, :, None, None]

    h = jnp.maximum(conv(pad(x), w1, b1), 0.0)
    h = conv(pad(h), w2, b2)
    return jnp.maximum(h + x, 0.0)


if __name__ == "__main__":
    # Small deterministic problem: inChNo = outChNo = hidChNo = 4, kernel = 3.
    N, C, H, W = 2, 4, 16, 16
    K = 3

    key = jax.random.PRNGKey(0)
    kx, kw1, kb1, kw2, kb2 = jax.random.split(key, 5)

    x = jax.random.normal(kx, (N, C, H, W), dtype=jnp.float32)
    scale = 1.0 / (C * K * K) ** 0.5
    w1 = jax.random.normal(kw1, (C, C, K, K), dtype=jnp.float32) * scale
    b1 = jax.random.normal(kb1, (C,), dtype=jnp.float32) * scale
    w2 = jax.random.normal(kw2, (C, C, K, K), dtype=jnp.float32) * scale
    b2 = jax.random.normal(kb2, (C,), dtype=jnp.float32) * scale

    out = jax.block_until_ready(resblock_pallas(x, w1, b1, w2, b2))
    ref = jax.block_until_ready(resblock_ref(x, w1, b1, w2, b2))

    if not jnp.allclose(out, ref, atol=1e-4, rtol=1e-4):
        err = float(jnp.max(jnp.abs(out - ref)))
        raise AssertionError(f"Pallas ResBlock does not match reference (max err {err})")

    print("KERNEL_OK")
</pallas_src>

<mosaic_0001>
module attributes {stable_mosaic.version = 11 : i64} {
  func.func @_resblock_kernel(%arg0: i32, %arg1: i32, %arg2: memref<1x4x20x18xf32, #tpu.memory_space<vmem>>, %arg3: memref<144xf32, #tpu.memory_space<smem>>, %arg4: memref<4xf32, #tpu.memory_space<smem>>, %arg5: memref<144xf32, #tpu.memory_space<smem>>, %arg6: memref<4xf32, #tpu.memory_space<smem>>, %arg7: memref<1x4x8x16xf32, #tpu.memory_space<vmem>>, %arg8: memref<4x10x18xf32, #tpu.memory_space<vmem>>) attributes {dimension_semantics = [#tpu.dimension_semantics<parallel>, #tpu.dimension_semantics<parallel>], iteration_bounds = array<i64: 2, 2>, scalar_prefetch = 0 : i64, scratch_operands = 1 : i64, tpu.core_type = #tpu.core_type<tc>, window_params = [{transform_indices = @transform_0, window_bounds = array<i64: 1, 4, 20, 18>}, {transform_indices = @transform_1, window_bounds = array<i64: 144>}, {transform_indices = @transform_2, window_bounds = array<i64: 4>}, {transform_indices = @transform_3, window_bounds = array<i64: 144>}, {transform_indices = @transform_4, window_bounds = array<i64: 4>}, {transform_indices = @transform_5, window_bounds = array<i64: 1, 4, 8, 16>}]} {
    %c8_i32 = arith.constant 8 : i32
    %0 = arith.muli %arg1, %c8_i32 : i32
    %1 = tpu.assume_multiple %0, 8 : i32
    %c0_i32 = arith.constant 0 : i32
    %2 = arith.addi %1, %c0_i32 : i32
    %c0 = arith.constant 0 : index
    %c0_0 = arith.constant 0 : index
    %3 = arith.index_cast %2 : i32 to index
    %c0_1 = arith.constant 0 : index
    %4 = vector.load %arg2[%c0, %c0_0, %3, %c0_1] : memref<1x4x20x18xf32, #tpu.memory_space<vmem>>, vector<1x1x10x16xf32>
    %5 = vector.shape_cast %4 : vector<1x1x10x16xf32> to vector<10x16xf32>
    %c0_2 = arith.constant 0 : index
    %6 = memref.load %arg3[%c0_2] : memref<144xf32, #tpu.memory_space<smem>>
    %7 = vector.broadcast %6 : f32 to vector<10x16xf32>
    %8 = arith.mulf %5, %7 : vector<10x16xf32>
    %c36 = arith.constant 36 : index
    %9 = memref.load %arg3[%c36] : memref<144xf32, #tpu.memory_space<smem>>
    %10 = vector.broadcast %9 : f32 to vector<10x16xf32>
    %11 = arith.mulf %5, %10 : vector<10x16xf32>
    %c72 = arith.constant 72 : index
    %12 = memref.load %arg3[%c72] : memref<144xf32, #tpu.memory_space<smem>>
    %13 = vector.broadcast %12 : f32 to vector<10x16xf32>
    %14 = arith.mulf %5, %13 : vector<10x16xf32>
    %c108 = arith.constant 108 : index
    %15 = memref.load %arg3[%c108] : memref<144xf32, #tpu.memory_space<smem>>
    %16 = vector.broadcast %15 : f32 to vector<10x16xf32>
    %17 = arith.mulf %5, %16 : vector<10x16xf32>
    %c0_i32_3 = arith.constant 0 : i32
    %18 = arith.addi %1, %c0_i32_3 : i32
    %c0_4 = arith.constant 0 : index
    %c0_5 = arith.constant 0 : index
    %19 = arith.index_cast %18 : i32 to index
    %c1 = arith.constant 1 : index
    %20 = vector.load %arg2[%c0_4, %c0_5, %19, %c1] : memref<1x4x20x18xf32, #tpu.memory_space<vmem>>, vector<1x1x10x16xf32>
    %21 = vector.shape_cast %20 : vector<1x1x10x16xf32> to vector<10x16xf32>
    %c1_6 = arith.constant 1 : index
    %22 = memref.load %arg3[%c1_6] : memref<144xf32, #tpu.memory_space<smem>>
    %23 = vector.broadcast %22 : f32 to vector<10x16xf32>
    %24 = arith.mulf %21, %23 : vector<10x16xf32>
    %25 = arith.addf %8, %24 : vector<10x16xf32>
    %c37 = arith.constant 37 : index
    %26 = memref.load %arg3[%c37] : memref<144xf32, #tpu.memory_space<smem>>
    %27 = vector.broadcast %26 : f32 to vector<10x16xf32>
    %28 = arith.mulf %21, %27 : vector<10x16xf32>
    %29 = arith.addf %11, %28 : vector<10x16xf32>
    %c73 = arith.constant 73 : index
    %30 = memref.load %arg3[%c73] : memref<144xf32, #tpu.memory_space<smem>>
    %31 = vector.broadcast %30 : f32 to vector<10x16xf32>
    %32 = arith.mulf %21, %31 : vector<10x16xf32>
    %33 = arith.addf %14, %32 : vector<10x16xf32>
    %c109 = arith.constant 109 : index
    %34 = memref.load %arg3[%c109] : memref<144xf32, #tpu.memory_space<smem>>
    %35 = vector.broadcast %34 : f32 to vector<10x16xf32>
    %36 = arith.mulf %21, %35 : vector<10x16xf32>
    %37 = arith.addf %17, %36 : vector<10x16xf32>
    %c0_i32_7 = arith.constant 0 : i32
    %38 = arith.addi %1, %c0_i32_7 : i32
    %c0_8 = arith.constant 0 : index
    %c0_9 = arith.constant 0 : index
    %39 = arith.index_cast %38 : i32 to index
    %c2 = arith.constant 2 : index
    %40 = vector.load %arg2[%c0_8, %c0_9, %39, %c2] : memref<1x4x20x18xf32, #tpu.memory_space<vmem>>, vector<1x1x10x16xf32>
    %41 = vector.shape_cast %40 : vector<1x1x10x16xf32> to vector<10x16xf32>
    %c2_10 = arith.constant 2 : index
    %42 = memref.load %arg3[%c2_10] : memref<144xf32, #tpu.memory_space<smem>>
    %43 = vector.broadcast %42 : f32 to vector<10x16xf32>
    %44 = arith.mulf %41, %43 : vector<10x16xf32>
    %45 = arith.addf %25, %44 : vector<10x16xf32>
    %c38 = arith.constant 38 : index
    %46 = memref.load %arg3[%c38] : memref<144xf32, #tpu.memory_space<smem>>
    %47 = vector.broadcast %46 : f32 to vector<10x16xf32>
    %48 = arith.mulf %41, %47 : vector<10x16xf32>
    %49 = arith.addf %29, %48 : vector<10x16xf32>
    %c74 = arith.constant 74 : index
    %50 = memref.load %arg3[%c74] : memref<144xf32, #tpu.memory_space<smem>>
    %51 = vector.broadcast %50 : f32 to vector<10x16xf32>
    %52 = arith.mulf %41, %51 : vector<10x16xf32>
    %53 = arith.addf %33, %52 : vector<10x16xf32>
    %c110 = arith.constant 110 : index
    %54 = memref.load %arg3[%c110] : memref<144xf32, #tpu.memory_space<smem>>
    %55 = vector.broadcast %54 : f32 to vector<10x16xf32>
    %56 = arith.mulf %41, %55 : vector<10x16xf32>
    %57 = arith.addf %37, %56 : vector<10x16xf32>
    %c1_i32 = arith.constant 1 : i32
    %58 = arith.addi %1, %c1_i32 : i32
    %c0_11 = arith.constant 0 : index
    %c0_12 = arith.constant 0 : index
    %59 = arith.index_cast %58 : i32 to index
    %c0_13 = arith.constant 0 : index
    %60 = vector.load %arg2[%c0_11, %c0_12, %59, %c0_13] : memref<1x4x20x18xf32, #tpu.memory_space<vmem>>, vector<1x1x10x16xf32>
    %61 = vector.shape_cast %60 : vector<1x1x10x16xf32> to vector<10x16xf32>
    %c3 = arith.constant 3 : index
    %62 = memref.load %arg3[%c3] : memref<144xf32, #tpu.memory_space<smem>>
    %63 = vector.broadcast %62 : f32 to vector<10x16xf32>
    %64 = arith.mulf %61, %63 : vector<10x16xf32>
    %65 = arith.addf %45, %64 : vector<10x16xf32>
    %c39 = arith.constant 39 : index
    %66 = memref.load %arg3[%c39] : memref<144xf32, #tpu.memory_space<smem>>
    %67 = vector.broadcast %66 : f32 to vector<10x16xf32>
    %68 = arith.mulf %61, %67 : vector<10x16xf32>
    %69 = arith.addf %49, %68 : vector<10x16xf32>
    %c75 = arith.constant 75 : index
    %70 = memref.load %arg3[%c75] : memref<144xf32, #tpu.memory_space<smem>>
    %71 = vector.broadcast %70 : f32 to vector<10x16xf32>
    %72 = arith.mulf %61, %71 : vector<10x16xf32>
    %73 = arith.addf %53, %72 : vector<10x16xf32>
    %c111 = arith.constant 111 : index
    %74 = memref.load %arg3[%c111] : memref<144xf32, #tpu.memory_space<smem>>
    %75 = vector.broadcast %74 : f32 to vector<10x16xf32>
    %76 = arith.mulf %61, %75 : vector<10x16xf32>
    %77 = arith.addf %57, %76 : vector<10x16xf32>
    %c1_i32_14 = arith.constant 1 : i32
    %78 = arith.addi %1, %c1_i32_14 : i32
    %c0_15 = arith.constant 0 : index
    %c0_16 = arith.constant 0 : index
    %79 = arith.index_cast %78 : i32 to index
    %c1_17 = arith.constant 1 : index
    %80 = vector.load %arg2[%c0_15, %c0_16, %79, %c1_17] : memref<1x4x20x18xf32, #tpu.memory_space<vmem>>, vector<1x1x10x16xf32>
    %81 = vector.shape_cast %80 : vector<1x1x10x16xf32> to vector<10x16xf32>
    %c4 = arith.constant 4 : index
    %82 = memref.load %arg3[%c4] : memref<144xf32, #tpu.memory_space<smem>>
    %83 = vector.broadcast %82 : f32 to vector<10x16xf32>
    %84 = arith.mulf %81, %83 : vector<10x16xf32>
    %85 = arith.addf %65, %84 : vector<10x16xf32>
    %c40 = arith.constant 40 : index
    %86 = memref.load %arg3[%c40] : memref<144xf32, #tpu.memory_space<smem>>
    %87 = vector.broadcast %86 : f32 to vector<10x16xf32>
    %88 = arith.mulf %81, %87 : vector<10x16xf32>
    %89 = arith.addf %69, %88 : vector<10x16xf32>
    %c76 = arith.constant 76 : index
    %90 = memref.load %arg3[%c76] : memref<144xf32, #tpu.memory_space<smem>>
    %91 = vector.broadcast %90 : f32 to vector<10x16xf32>
    %92 = arith.mulf %81, %91 : vector<10x16xf32>
    %93 = arith.addf %73, %92 : vector<10x16xf32>
    %c112 = arith.constant 112 : index
    %94 = memref.load %arg3[%c112] : memref<144xf32, #tpu.memory_space<smem>>
    %95 = vector.broadcast %94 : f32 to vector<10x16xf32>
    %96 = arith.mulf %81, %95 : vector<10x16xf32>
    %97 = arith.addf %77, %96 : vector<10x16xf32>
    %c1_i32_18 = arith.constant 1 : i32
    %98 = arith.addi %1, %c1_i32_18 : i32
    %c0_19 = arith.constant 0 : index
    %c0_20 = arith.constant 0 : index
    %99 = arith.index_cast %98 : i32 to index
    %c2_21 = arith.constant 2 : index
    %100 = vector.load %arg2[%c0_19, %c0_20, %99, %c2_21] : memref<1x4x20x18xf32, #tpu.memory_space<vmem>>, vector<1x1x10x16xf32>
    %101 = vector.shape_cast %100 : vector<1x1x10x16xf32> to vector<10x16xf32>
    %c5 = arith.constant 5 : index
    %102 = memref.load %arg3[%c5] : memref<144xf32, #tpu.memory_space<smem>>
    %103 = vector.broadcast %102 : f32 to vector<10x16xf32>
    %104 = arith.mulf %101, %103 : vector<10x16xf32>
    %105 = arith.addf %85, %104 : vector<10x16xf32>
    %c41 = arith.constant 41 : index
    %106 = memref.load %arg3[%c41] : memref<144xf32, #tpu.memory_space<smem>>
    %107 = vector.broadcast %106 : f32 to vector<10x16xf32>
    %108 = arith.mulf %101, %107 : vector<10x16xf32>
    %109 = arith.addf %89, %108 : vector<10x16xf32>
    %c77 = arith.constant 77 : index
    %110 = memref.load %arg3[%c77] : memref<144xf32, #tpu.memory_space<smem>>
    %111 = vector.broadcast %110 : f32 to vector<10x16xf32>
    %112 = arith.mulf %101, %111 : vector<10x16xf32>
    %113 = arith.addf %93, %112 : vector<10x16xf32>
    %c113 = arith.constant 113 : index
    %114 = memref.load %arg3[%c113] : memref<144xf32, #tpu.memory_space<smem>>
    %115 = vector.broadcast %114 : f32 to vector<10x16xf32>
    %116 = arith.mulf %101, %115 : vector<10x16xf32>
    %117 = arith.addf %97, %116 : vector<10x16xf32>
    %c2_i32 = arith.constant 2 : i32
    %118 = arith.addi %1, %c2_i32 : i32
    %c0_22 = arith.constant 0 : index
    %c0_23 = arith.constant 0 : index
    %119 = arith.index_cast %118 : i32 to index
    %c0_24 = arith.constant 0 : index
    %120 = vector.load %arg2[%c0_22, %c0_23, %119, %c0_24] : memref<1x4x20x18xf32, #tpu.memory_space<vmem>>, vector<1x1x10x16xf32>
    %121 = vector.shape_cast %120 : vector<1x1x10x16xf32> to vector<10x16xf32>
    %c6 = arith.constant 6 : index
    %122 = memref.load %arg3[%c6] : memref<144xf32, #tpu.memory_space<smem>>
    %123 = vector.broadcast %122 : f32 to vector<10x16xf32>
    %124 = arith.mulf %121, %123 : vector<10x16xf32>
    %125 = arith.addf %105, %124 : vector<10x16xf32>
    %c42 = arith.constant 42 : index
    %126 = memref.load %arg3[%c42] : memref<144xf32, #tpu.memory_space<smem>>
    %127 = vector.broadcast %126 : f32 to vector<10x16xf32>
    %128 = arith.mulf %121, %127 : vector<10x16xf32>
    %129 = arith.addf %109, %128 : vector<10x16xf32>
    %c78 = arith.constant 78 : index
    %130 = memref.load %arg3[%c78] : memref<144xf32, #tpu.memory_space<smem>>
    %131 = vector.broadcast %130 : f32 to vector<10x16xf32>
    %132 = arith.mulf %121, %131 : vector<10x16xf32>
    %133 = arith.addf %113, %132 : vector<10x16xf32>
    %c114 = arith.constant 114 : index
    %134 = memref.load %arg3[%c114] : memref<144xf32, #tpu.memory_space<smem>>
    %135 = vector.broadcast %134 : f32 to vector<10x16xf32>
    %136 = arith.mulf %121, %135 : vector<10x16xf32>
    %137 = arith.addf %117, %136 : vector<10x16xf32>
    %c2_i32_25 = arith.constant 2 : i32
    %138 = arith.addi %1, %c2_i32_25 : i32
    %c0_26 = arith.constant 0 : index
    %c0_27 = arith.constant 0 : index
    %139 = arith.index_cast %138 : i32 to index
    %c1_28 = arith.constant 1 : index
    %140 = vector.load %arg2[%c0_26, %c0_27, %139, %c1_28] : memref<1x4x20x18xf32, #tpu.memory_space<vmem>>, vector<1x1x10x16xf32>
    %141 = vector.shape_cast %140 : vector<1x1x10x16xf32> to vector<10x16xf32>
    %c7 = arith.constant 7 : index
    %142 = memref.load %arg3[%c7] : memref<144xf32, #tpu.memory_space<smem>>
    %143 = vector.broadcast %142 : f32 to vector<10x16xf32>
    %144 = arith.mulf %141, %143 : vector<10x16xf32>
    %145 = arith.addf %125, %144 : vector<10x16xf32>
    %c43 = arith.constant 43 : index
    %146 = memref.load %arg3[%c43] : memref<144xf32, #tpu.memory_space<smem>>
    %147 = vector.broadcast %146 : f32 to vector<10x16xf32>
    %148 = arith.mulf %141, %147 : vector<10x16xf32>
    %149 = arith.addf %129, %148 : vector<10x16xf32>
    %c79 = arith.constant 79 : index
    %150 = memref.load %arg3[%c79] : memref<144xf32, #tpu.memory_space<smem>>
    %151 = vector.broadcast %150 : f32 to vector<10x16xf32>
    %152 = arith.mulf %141, %151 : vector<10x16xf32>
    %153 = arith.addf %133, %152 : vector<10x16xf32>
    %c115 = arith.constant 115 : index
    %154 = memref.load %arg3[%c115] : memref<144xf32, #tpu.memory_space<smem>>
    %155 = vector.broadcast %154 : f32 to vector<10x16xf32>
    %156 = arith.mulf %141, %155 : vector<10x16xf32>
    %157 = arith.addf %137, %156 : vector<10x16xf32>
    %c2_i32_29 = arith.constant 2 : i32
    %158 = arith.addi %1, %c2_i32_29 : i32
    %c0_30 = arith.constant 0 : index
    %c0_31 = arith.constant 0 : index
    %159 = arith.index_cast %158 : i32 to index
    %c2_32 = arith.constant 2 : index
    %160 = vector.load %arg2[%c0_30, %c0_31, %159, %c2_32] : memref<1x4x20x18xf32, #tpu.memory_space<vmem>>, vector<1x1x10x16xf32>
    %161 = vector.shape_cast %160 : vector<1x1x10x16xf32> to vector<10x16xf32>
    %c8 = arith.constant 8 : index
    %162 = memref.load %arg3[%c8] : memref<144xf32, #tpu.memory_space<smem>>
    %163 = vector.broadcast %162 : f32 to vector<10x16xf32>
    %164 = arith.mulf %161, %163 : vector<10x16xf32>
    %165 = arith.addf %145, %164 : vector<10x16xf32>
    %c44 = arith.constant 44 : index
    %166 = memref.load %arg3[%c44] : memref<144xf32, #tpu.memory_space<smem>>
    %167 = vector.broadcast %166 : f32 to vector<10x16xf32>
    %168 = arith.mulf %161, %167 : vector<10x16xf32>
    %169 = arith.addf %149, %168 : vector<10x16xf32>
    %c80 = arith.constant 80 : index
    %170 = memref.load %arg3[%c80] : memref<144xf32, #tpu.memory_space<smem>>
    %171 = vector.broadcast %170 : f32 to vector<10x16xf32>
    %172 = arith.mulf %161, %171 : vector<10x16xf32>
    %173 = arith.addf %153, %172 : vector<10x16xf32>
    %c116 = arith.constant 116 : index
    %174 = memref.load %arg3[%c116] : memref<144xf32, #tpu.memory_space<smem>>
    %175 = vector.broadcast %174 : f32 to vector<10x16xf32>
    %176 = arith.mulf %161, %175 : vector<10x16xf32>
    %177 = arith.addf %157, %176 : vector<10x16xf32>
    %c0_i32_33 = arith.constant 0 : i32
    %178 = arith.addi %1, %c0_i32_33 : i32
    %c0_34 = arith.constant 0 : index
    %c1_35 = arith.constant 1 : index
    %179 = arith.index_cast %178 : i32 to index
    %c0_36 = arith.constant 0 : index
    %180 = vector.load %arg2[%c0_34, %c1_35, %179, %c0_36] : memref<1x4x20x18xf32, #tpu.memory_space<vmem>>, vector<1x1x10x16xf32>
    %181 = vector.shape_cast %180 : vector<1x1x10x16xf32> to vector<10x16xf32>
    %c9 = arith.constant 9 : index
    %182 = memref.load %arg3[%c9] : memref<144xf32, #tpu.memory_space<smem>>
    %183 = vector.broadcast %182 : f32 to vector<10x16xf32>
    %184 = arith.mulf %181, %183 : vector<10x16xf32>
    %185 = arith.addf %165, %184 : vector<10x16xf32>
    %c45 = arith.constant 45 : index
    %186 = memref.load %arg3[%c45] : memref<144xf32, #tpu.memory_space<smem>>
    %187 = vector.broadcast %186 : f32 to vector<10x16xf32>
    %188 = arith.mulf %181, %187 : vector<10x16xf32>
    %189 = arith.addf %169, %188 : vector<10x16xf32>
    %c81 = arith.constant 81 : index
    %190 = memref.load %arg3[%c81] : memref<144xf32, #tpu.memory_space<smem>>
    %191 = vector.broadcast %190 : f32 to vector<10x16xf32>
    %192 = arith.mulf %181, %191 : vector<10x16xf32>
    %193 = arith.addf %173, %192 : vector<10x16xf32>
    %c117 = arith.constant 117 : index
    %194 = memref.load %arg3[%c117] : memref<144xf32, #tpu.memory_space<smem>>
    %195 = vector.broadcast %194 : f32 to vector<10x16xf32>
    %196 = arith.mulf %181, %195 : vector<10x16xf32>
    %197 = arith.addf %177, %196 : vector<10x16xf32>
    %c0_i32_37 = arith.constant 0 : i32
    %198 = arith.addi %1, %c0_i32_37 : i32
    %c0_38 = arith.constant 0 : index
    %c1_39 = arith.constant 1 : index
    %199 = arith.index_cast %198 : i32 to index
    %c1_40 = arith.constant 1 : index
    %200 = vector.load %arg2[%c0_38, %c1_39, %199, %c1_40] : memref<1x4x20x18xf32, #tpu.memory_space<vmem>>, vector<1x1x10x16xf32>
    %201 = vector.shape_cast %200 : vector<1x1x10x16xf32> to vector<10x16xf32>
    %c10 = arith.constant 10 : index
    %202 = memref.load %arg3[%c10] : memref<144xf32, #tpu.memory_space<smem>>
    %203 = vector.broadcast %202 : f32 to vector<10x16xf32>
    %204 = arith.mulf %201, %203 : vector<10x16xf32>
    %205 = arith.addf %185, %204 : vector<10x16xf32>
    %c46 = arith.constant 46 : index
    %206 = memref.load %arg3[%c46] : memref<144xf32, #tpu.memory_space<smem>>
    %207 = vector.broadcast %206 : f32 to vector<10x16xf32>
    %208 = arith.mulf %201, %207 : vector<10x16xf32>
    %209 = arith.addf %189, %208 : vector<10x16xf32>
    %c82 = arith.constant 82 : index
    %210 = memref.load %arg3[%c82] : memref<144xf32, #tpu.memory_space<smem>>
    %211 = vector.broadcast %210 : f32 to vector<10x16xf32>
    %212 = arith.mulf %201, %211 : vector<10x16xf32>
    %213 = arith.addf %193, %212 : vector<10x16xf32>
    %c118 = arith.constant 118 : index
    %214 = memref.load %arg3[%c118] : memref<144xf32, #tpu.memory_space<smem>>
    %215 = vector.broadcast %214 : f32 to vector<10x16xf32>
    %216 = arith.mulf %201, %215 : vector<10x16xf32>
    %217 = arith.addf %197, %216 : vector<10x16xf32>
    %c0_i32_41 = arith.constant 0 : i32
    %218 = arith.addi %1, %c0_i32_41 : i32
    %c0_42 = arith.constant 0 : index
    %c1_43 = arith.constant 1 : index
    %219 = arith.index_cast %218 : i32 to index
    %c2_44 = arith.constant 2 : index
    %220 = vector.load %arg2[%c0_42, %c1_43, %219, %c2_44] : memref<1x4x20x18xf32, #tpu.memory_space<vmem>>, vector<1x1x10x16xf32>
    %221 = vector.shape_cast %220 : vector<1x1x10x16xf32> to vector<10x16xf32>
    %c11 = arith.constant 11 : index
    %222 = memref.load %arg3[%c11] : memref<144xf32, #tpu.memory_space<smem>>
    %223 = vector.broadcast %222 : f32 to vector<10x16xf32>
    %224 = arith.mulf %221, %223 : vector<10x16xf32>
    %225 = arith.addf %205, %224 : vector<10x16xf32>
    %c47 = arith.constant 47 : index
    %226 = memref.load %arg3[%c47] : memref<144xf32, #tpu.memory_space<smem>>
    %227 = vector.broadcast %226 : f32 to vector<10x16xf32>
    %228 = arith.mulf %221, %227 : vector<10x16xf32>
    %229 = arith.addf %209, %228 : vector<10x16xf32>
    %c83 = arith.constant 83 : index
    %230 = memref.load %arg3[%c83] : memref<144xf32, #tpu.memory_space<smem>>
    %231 = vector.broadcast %230 : f32 to vector<10x16xf32>
    %232 = arith.mulf %221, %231 : vector<10x16xf32>
    %233 = arith.addf %213, %232 : vector<10x16xf32>
    %c119 = arith.constant 119 : index
    %234 = memref.load %arg3[%c119] : memref<144xf32, #tpu.memory_space<smem>>
    %235 = vector.broadcast %234 : f32 to vector<10x16xf32>
    %236 = arith.mulf %221, %235 : vector<10x16xf32>
    %237 = arith.addf %217, %236 : vector<10x16xf32>
    %c1_i32_45 = arith.constant 1 : i32
    %238 = arith.addi %1, %c1_i32_45 : i32
    %c0_46 = arith.constant 0 : index
    %c1_47 = arith.constant 1 : index
    %239 = arith.index_cast %238 : i32 to index
    %c0_48 = arith.constant 0 : index
    %240 = vector.load %arg2[%c0_46, %c1_47, %239, %c0_48] : memref<1x4x20x18xf32, #tpu.memory_space<vmem>>, vector<1x1x10x16xf32>
    %241 = vector.shape_cast %240 : vector<1x1x10x16xf32> to vector<10x16xf32>
    %c12 = arith.constant 12 : index
    %242 = memref.load %arg3[%c12] : memref<144xf32, #tpu.memory_space<smem>>
    %243 = vector.broadcast %242 : f32 to vector<10x16xf32>
    %244 = arith.mulf %241, %243 : vector<10x16xf32>
    %245 = arith.addf %225, %244 : vector<10x16xf32>
    %c48 = arith.constant 48 : index
    %246 = memref.load %arg3[%c48] : memref<144xf32, #tpu.memory_space<smem>>
    %247 = vector.broadcast %246 : f32 to vector<10x16xf32>
    %248 = arith.mulf %241, %247 : vector<10x16xf32>
    %249 = arith.addf %229, %248 : vector<10x16xf32>
    %c84 = arith.constant 84 : index
    %250 = memref.load %arg3[%c84] : memref<144xf32, #tpu.memory_space<smem>>
    %251 = vector.broadcast %250 : f32 to vector<10x16xf32>
    %252 = arith.mulf %241, %251 : vector<10x16xf32>
    %253 = arith.addf %233, %252 : vector<10x16xf32>
    %c120 = arith.constant 120 : index
    %254 = memref.load %arg3[%c120] : memref<144xf32, #tpu.memory_space<smem>>
    %255 = vector.broadcast %254 : f32 to vector<10x16xf32>
    %256 = arith.mulf %241, %255 : vector<10x16xf32>
    %257 = arith.addf %237, %256 : vector<10x16xf32>
    %c1_i32_49 = arith.constant 1 : i32
    %258 = arith.addi %1, %c1_i32_49 : i32
    %c0_50 = arith.constant 0 : index
    %c1_51 = arith.constant 1 : index
    %259 = arith.index_cast %258 : i32 to index
    %c1_52 = arith.constant 1 : index
    %260 = vector.load %arg2[%c0_50, %c1_51, %259, %c1_52] : memref<1x4x20x18xf32, #tpu.memory_space<vmem>>, vector<1x1x10x16xf32>
    %261 = vector.shape_cast %260 : vector<1x1x10x16xf32> to vector<10x16xf32>
    %c13 = arith.constant 13 : index
    %262 = memref.load %arg3[%c13] : memref<144xf32, #tpu.memory_space<smem>>
    %263 = vector.broadcast %262 : f32 to vector<10x16xf32>
    %264 = arith.mulf %261, %263 : vector<10x16xf32>
    %265 = arith.addf %245, %264 : vector<10x16xf32>
    %c49 = arith.constant 49 : index
    %266 = memref.load %arg3[%c49] : memref<144xf32, #tpu.memory_space<smem>>
    %267 = vector.broadcast %266 : f32 to vector<10x16xf32>
    %268 = arith.mulf %261, %267 : vector<10x16xf32>
    %269 = arith.addf %249, %268 : vector<10x16xf32>
    %c85 = arith.constant 85 : index
    %270 = memref.load %arg3[%c85] : memref<144xf32, #tpu.memory_space<smem>>
    %271 = vector.broadcast %270 : f32 to vector<10x16xf32>
    %272 = arith.mulf %261, %271 : vector<10x16xf32>
    %273 = arith.addf %253, %272 : vector<10x16xf32>
    %c121 = arith.constant 121 : index
    %274 = memref.load %arg3[%c121] : memref<144xf32, #tpu.memory_space<smem>>
    %275 = vector.broadcast %274 : f32 to vector<10x16xf32>
    %276 = arith.mulf %261, %275 : vector<10x16xf32>
    %277 = arith.addf %257, %276 : vector<10x16xf32>
    %c1_i32_53 = arith.constant 1 : i32
    %278 = arith.addi %1, %c1_i32_53 : i32
    %c0_54 = arith.constant 0 : index
    %c1_55 = arith.constant 1 : index
    %279 = arith.index_cast %278 : i32 to index
    %c2_56 = arith.constant 2 : index
    %280 = vector.load %arg2[%c0_54, %c1_55, %279, %c2_56] : memref<1x4x20x18xf32, #tpu.memory_space<vmem>>, vector<1x1x10x16xf32>
    %281 = vector.shape_cast %280 : vector<1x1x10x16xf32> to vector<10x16xf32>
    %c14 = arith.constant 14 : index
    %282 = memref.load %arg3[%c14] : memref<144xf32, #tpu.memory_space<smem>>
    %283 = vector.broadcast %282 : f32 to vector<10x16xf32>
    %284 = arith.mulf %281, %283 : vector<10x16xf32>
    %285 = arith.addf %265, %284 : vector<10x16xf32>
    %c50 = arith.constant 50 : index
    %286 = memref.load %arg3[%c50] : memref<144xf32, #tpu.memory_space<smem>>
    %287 = vector.broadcast %286 : f32 to vector<10x16xf32>
    %288 = arith.mulf %281, %287 : vector<10x16xf32>
    %289 = arith.addf %269, %288 : vector<10x16xf32>
    %c86 = arith.constant 86 : index
    %290 = memref.load %arg3[%c86] : memref<144xf32, #tpu.memory_space<smem>>
    %291 = vector.broadcast %290 : f32 to vector<10x16xf32>
    %292 = arith.mulf %281, %291 : vector<10x16xf32>
    %293 = arith.addf %273, %292 : vector<10x16xf32>
    %c122 = arith.constant 122 : index
    %294 = memref.load %arg3[%c122] : memref<144xf32, #tpu.memory_space<smem>>
    %295 = vector.broadcast %294 : f32 to vector<10x16xf32>
    %296 = arith.mulf %281, %295 : vector<10x16xf32>
    %297 = arith.addf %277, %296 : vector<10x16xf32>
    %c2_i32_57 = arith.constant 2 : i32
    %298 = arith.addi %1, %c2_i32_57 : i32
    %c0_58 = arith.constant 0 : index
    %c1_59 = arith.constant 1 : index
    %299 = arith.index_cast %298 : i32 to index
    %c0_60 = arith.constant 0 : index
    %300 = vector.load %arg2[%c0_58, %c1_59, %299, %c0_60] : memref<1x4x20x18xf32, #tpu.memory_space<vmem>>, vector<1x1x10x16xf32>
    %301 = vector.shape_cast %300 : vector<1x1x10x16xf32> to vector<10x16xf32>
    %c15 = arith.constant 15 : index
    %302 = memref.load %arg3[%c15] : memref<144xf32, #tpu.memory_space<smem>>
    %303 = vector.broadcast %302 : f32 to vector<10x16xf32>
    %304 = arith.mulf %301, %303 : vector<10x16xf32>
    %305 = arith.addf %285, %304 : vector<10x16xf32>
    %c51 = arith.constant 51 : index
    %306 = memref.load %arg3[%c51] : memref<144xf32, #tpu.memory_space<smem>>
    %307 = vector.broadcast %306 : f32 to vector<10x16xf32>
    %308 = arith.mulf %301, %307 : vector<10x16xf32>
    %309 = arith.addf %289, %308 : vector<10x16xf32>
    %c87 = arith.constant 87 : index
    %310 = memref.load %arg3[%c87] : memref<144xf32, #tpu.memory_space<smem>>
    %311 = vector.broadcast %310 : f32 to vector<10x16xf32>
    %312 = arith.mulf %301, %311 : vector<10x16xf32>
    %313 = arith.addf %293, %312 : vector<10x16xf32>
    %c123 = arith.constant 123 : index
    %314 = memref.load %arg3[%c123] : memref<144xf32, #tpu.memory_space<smem>>
    %315 = vector.broadcast %314 : f32 to vector<10x16xf32>
    %316 = arith.mulf %301, %315 : vector<10x16xf32>
    %317 = arith.addf %297, %316 : vector<10x16xf32>
    %c2_i32_61 = arith.constant 2 : i32
    %318 = arith.addi %1, %c2_i32_61 : i32
    %c0_62 = arith.constant 0 : index
    %c1_63 = arith.constant 1 : index
    %319 = arith.index_cast %318 : i32 to index
    %c1_64 = arith.constant 1 : index
    %320 = vector.load %arg2[%c0_62, %c1_63, %319, %c1_64] : memref<1x4x20x18xf32, #tpu.memory_space<vmem>>, vector<1x1x10x16xf32>
    %321 = vector.shape_cast %320 : vector<1x1x10x16xf32> to vector<10x16xf32>
    %c16 = arith.constant 16 : index
    %322 = memref.load %arg3[%c16] : memref<144xf32, #tpu.memory_space<smem>>
    %323 = vector.broadcast %322 : f32 to vector<10x16xf32>
    %324 = arith.mulf %321, %323 : vector<10x16xf32>
    %325 = arith.addf %305, %324 : vector<10x16xf32>
    %c52 = arith.constant 52 : index
    %326 = memref.load %arg3[%c52] : memref<144xf32, #tpu.memory_space<smem>>
    %327 = vector.broadcast %326 : f32 to vector<10x16xf32>
    %328 = arith.mulf %321, %327 : vector<10x16xf32>
    %329 = arith.addf %309, %328 : vector<10x16xf32>
    %c88 = arith.constant 88 : index
    %330 = memref.load %arg3[%c88] : memref<144xf32, #tpu.memory_space<smem>>
    %331 = vector.broadcast %330 : f32 to vector<10x16xf32>
    %332 = arith.mulf %321, %331 : vector<10x16xf32>
    %333 = arith.addf %313, %332 : vector<10x16xf32>
    %c124 = arith.constant 124 : index
    %334 = memref.load %arg3[%c124] : memref<144xf32, #tpu.memory_space<smem>>
    %335 = vector.broadcast %334 : f32 to vector<10x16xf32>
    %336 = arith.mulf %321, %335 : vector<10x16xf32>
    %337 = arith.addf %317, %336 : vector<10x16xf32>
    %c2_i32_65 = arith.constant 2 : i32
    %338 = arith.addi %1, %c2_i32_65 : i32
    %c0_66 = arith.constant 0 : index
    %c1_67 = arith.constant 1 : index
    %339 = arith.index_cast %338 : i32 to index
    %c2_68 = arith.constant 2 : index
    %340 = vector.load %arg2[%c0_66, %c1_67, %339, %c2_68] : memref<1x4x20x18xf32, #tpu.memory_space<vmem>>, vector<1x1x10x16xf32>
    %341 = vector.shape_cast %340 : vector<1x1x10x16xf32> to vector<10x16xf32>
    %c17 = arith.constant 17 : index
    %342 = memref.load %arg3[%c17] : memref<144xf32, #tpu.memory_space<smem>>
    %343 = vector.broadcast %342 : f32 to vector<10x16xf32>
    %344 = arith.mulf %341, %343 : vector<10x16xf32>
    %345 = arith.addf %325, %344 : vector<10x16xf32>
    %c53 = arith.constant 53 : index
    %346 = memref.load %arg3[%c53] : memref<144xf32, #tpu.memory_space<smem>>
    %347 = vector.broadcast %346 : f32 to vector<10x16xf32>
    %348 = arith.mulf %341, %347 : vector<10x16xf32>
    %349 = arith.addf %329, %348 : vector<10x16xf32>
    %c89 = arith.constant 89 : index
    %350 = memref.load %arg3[%c89] : memref<144xf32, #tpu.memory_space<smem>>
    %351 = vector.broadcast %350 : f32 to vector<10x16xf32>
    %352 = arith.mulf %341, %351 : vector<10x16xf32>
    %353 = arith.addf %333, %352 : vector<10x16xf32>
    %c125 = arith.constant 125 : index
    %354 = memref.load %arg3[%c125] : memref<144xf32, #tpu.memory_space<smem>>
    %355 = vector.broadcast %354 : f32 to vector<10x16xf32>
    %356 = arith.mulf %341, %355 : vector<10x16xf32>
    %357 = arith.addf %337, %356 : vector<10x16xf32>
    %c0_i32_69 = arith.constant 0 : i32
    %358 = arith.addi %1, %c0_i32_69 : i32
    %c0_70 = arith.constant 0 : index
    %c2_71 = arith.constant 2 : index
    %359 = arith.index_cast %358 : i32 to index
    %c0_72 = arith.constant 0 : index
    %360 = vector.load %arg2[%c0_70, %c2_71, %359, %c0_72] : memref<1x4x20x18xf32, #tpu.memory_space<vmem>>, vector<1x1x10x16xf32>
    %361 = vector.shape_cast %360 : vector<1x1x10x16xf32> to vector<10x16xf32>
    %c18 = arith.constant 18 : index
    %362 = memref.load %arg3[%c18] : memref<144xf32, #tpu.memory_space<smem>>
    %363 = vector.broadcast %362 : f32 to vector<10x16xf32>
    %364 = arith.mulf %361, %363 : vector<10x16xf32>
    %365 = arith.addf %345, %364 : vector<10x16xf32>
    %c54 = arith.constant 54 : index
    %366 = memref.load %arg3[%c54] : memref<144xf32, #tpu.memory_space<smem>>
    %367 = vector.broadcast %366 : f32 to vector<10x16xf32>
    %368 = arith.mulf %361, %367 : vector<10x16xf32>
    %369 = arith.addf %349, %368 : vector<10x16xf32>
    %c90 = arith.constant 90 : index
    %370 = memref.load %arg3[%c90] : memref<144xf32, #tpu.memory_space<smem>>
    %371 = vector.broadcast %370 : f32 to vector<10x16xf32>
    %372 = arith.mulf %361, %371 : vector<10x16xf32>
    %373 = arith.addf %353, %372 : vector<10x16xf32>
    %c126 = arith.constant 126 : index
    %374 = memref.load %arg3[%c126] : memref<144xf32, #tpu.memory_space<smem>>
    %375 = vector.broadcast %374 : f32 to vector<10x16xf32>
    %376 = arith.mulf %361, %375 : vector<10x16xf32>
    %377 = arith.addf %357, %376 : vector<10x16xf32>
    %c0_i32_73 = arith.constant 0 : i32
    %378 = arith.addi %1, %c0_i32_73 : i32
    %c0_74 = arith.constant 0 : index
    %c2_75 = arith.constant 2 : index
    %379 = arith.index_cast %378 : i32 to index
    %c1_76 = arith.constant 1 : index
    %380 = vector.load %arg2[%c0_74, %c2_75, %379, %c1_76] : memref<1x4x20x18xf32, #tpu.memory_space<vmem>>, vector<1x1x10x16xf32>
    %381 = vector.shape_cast %380 : vector<1x1x10x16xf32> to vector<10x16xf32>
    %c19 = arith.constant 19 : index
    %382 = memref.load %arg3[%c19] : memref<144xf32, #tpu.memory_space<smem>>
    %383 = vector.broadcast %382 : f32 to vector<10x16xf32>
    %384 = arith.mulf %381, %383 : vector<10x16xf32>
    %385 = arith.addf %365, %384 : vector<10x16xf32>
    %c55 = arith.constant 55 : index
    %386 = memref.load %arg3[%c55] : memref<144xf32, #tpu.memory_space<smem>>
    %387 = vector.broadcast %386 : f32 to vector<10x16xf32>
    %388 = arith.mulf %381, %387 : vector<10x16xf32>
    %389 = arith.addf %369, %388 : vector<10x16xf32>
    %c91 = arith.constant 91 : index
    %390 = memref.load %arg3[%c91] : memref<144xf32, #tpu.memory_space<smem>>
    %391 = vector.broadcast %390 : f32 to vector<10x16xf32>
    %392 = arith.mulf %381, %391 : vector<10x16xf32>
    %393 = arith.addf %373, %392 : vector<10x16xf32>
    %c127 = arith.constant 127 : index
    %394 = memref.load %arg3[%c127] : memref<144xf32, #tpu.memory_space<smem>>
    %395 = vector.broadcast %394 : f32 to vector<10x16xf32>
    %396 = arith.mulf %381, %395 : vector<10x16xf32>
    %397 = arith.addf %377, %396 : vector<10x16xf32>
    %c0_i32_77 = arith.constant 0 : i32
    %398 = arith.addi %1, %c0_i32_77 : i32
    %c0_78 = arith.constant 0 : index
    %c2_79 = arith.constant 2 : index
    %399 = arith.index_cast %398 : i32 to index
    %c2_80 = arith.constant 2 : index
    %400 = vector.load %arg2[%c0_78, %c2_79, %399, %c2_80] : memref<1x4x20x18xf32, #tpu.memory_space<vmem>>, vector<1x1x10x16xf32>
    %401 = vector.shape_cast %400 : vector<1x1x10x16xf32> to vector<10x16xf32>
    %c20 = arith.constant 20 : index
    %402 = memref.load %arg3[%c20] : memref<144xf32, #tpu.memory_space<smem>>
    %403 = vector.broadcast %402 : f32 to vector<10x16xf32>
    %404 = arith.mulf %401, %403 : vector<10x16xf32>
    %405 = arith.addf %385, %404 : vector<10x16xf32>
    %c56 = arith.constant 56 : index
    %406 = memref.load %arg3[%c56] : memref<144xf32, #tpu.memory_space<smem>>
    %407 = vector.broadcast %406 : f32 to vector<10x16xf32>
    %408 = arith.mulf %401, %407 : vector<10x16xf32>
    %409 = arith.addf %389, %408 : vector<10x16xf32>
    %c92 = arith.constant 92 : index
    %410 = memref.load %arg3[%c92] : memref<144xf32, #tpu.memory_space<smem>>
    %411 = vector.broadcast %410 : f32 to vector<10x16xf32>
    %412 = arith.mulf %401, %411 : vector<10x16xf32>
    %413 = arith.addf %393, %412 : vector<10x16xf32>
    %c128 = arith.constant 128 : index
    %414 = memref.load %arg3[%c128] : memref<144xf32, #tpu.memory_space<smem>>
    %415 = vector.broadcast %414 : f32 to vector<10x16xf32>
    %416 = arith.mulf %401, %415 : vector<10x16xf32>
    %417 = arith.addf %397, %416 : vector<10x16xf32>
    %c1_i32_81 = arith.constant 1 : i32
    %418 = arith.addi %1, %c1_i32_81 : i32
    %c0_82 = arith.constant 0 : index
    %c2_83 = arith.constant 2 : index
    %419 = arith.index_cast %418 : i32 to index
    %c0_84 = arith.constant 0 : index
    %420 = vector.load %arg2[%c0_82, %c2_83, %419, %c0_84] : memref<1x4x20x18xf32, #tpu.memory_space<vmem>>, vector<1x1x10x16xf32>
    %421 = vector.shape_cast %420 : vector<1x1x10x16xf32> to vector<10x16xf32>
    %c21 = arith.constant 21 : index
    %422 = memref.load %arg3[%c21] : memref<144xf32, #tpu.memory_space<smem>>
    %423 = vector.broadcast %422 : f32 to vector<10x16xf32>
    %424 = arith.mulf %421, %423 : vector<10x16xf32>
    %425 = arith.addf %405, %424 : vector<10x16xf32>
    %c57 = arith.constant 57 : index
    %426 = memref.load %arg3[%c57] : memref<144xf32, #tpu.memory_space<smem>>
    %427 = vector.broadcast %426 : f32 to vector<10x16xf32>
    %428 = arith.mulf %421, %427 : vector<10x16xf32>
    %429 = arith.addf %409, %428 : vector<10x16xf32>
    %c93 = arith.constant 93 : index
    %430 = memref.load %arg3[%c93] : memref<144xf32, #tpu.memory_space<smem>>
    %431 = vector.broadcast %430 : f32 to vector<10x16xf32>
    %432 = arith.mulf %421, %431 : vector<10x16xf32>
    %433 = arith.addf %413, %432 : vector<10x16xf32>
    %c129 = arith.constant 129 : index
    %434 = memref.load %arg3[%c129] : memref<144xf32, #tpu.memory_space<smem>>
    %435 = vector.broadcast %434 : f32 to vector<10x16xf32>
    %436 = arith.mulf %421, %435 : vector<10x16xf32>
    %437 = arith.addf %417, %436 : vector<10x16xf32>
    %c1_i32_85 = arith.constant 1 : i32
    %438 = arith.addi %1, %c1_i32_85 : i32
    %c0_86 = arith.constant 0 : index
    %c2_87 = arith.constant 2 : index
    %439 = arith.index_cast %438 : i32 to index
    %c1_88 = arith.constant 1 : index
    %440 = vector.load %arg2[%c0_86, %c2_87, %439, %c1_88] : memref<1x4x20x18xf32, #tpu.memory_space<vmem>>, vector<1x1x10x16xf32>
    %441 = vector.shape_cast %440 : vector<1x1x10x16xf32> to vector<10x16xf32>
    %c22 = arith.constant 22 : index
    %442 = memref.load %arg3[%c22] : memref<144xf32, #tpu.memory_space<smem>>
    %443 = vector.broadcast %442 : f32 to vector<10x16xf32>
    %444 = arith.mulf %441, %443 : vector<10x16xf32>
    %445 = arith.addf %425, %444 : vector<10x16xf32>
    %c58 = arith.constant 58 : index
    %446 = memref.load %arg3[%c58] : memref<144xf32, #tpu.memory_space<smem>>
    %447 = vector.broadcast %446 : f32 to vector<10x16xf32>
    %448 = arith.mulf %441, %447 : vector<10x16xf32>
    %449 = arith.addf %429, %448 : vector<10x16xf32>
    %c94 = arith.constant 94 : index
    %450 = memref.load %arg3[%c94] : memref<144xf32, #tpu.memory_space<smem>>
    %451 = vector.broadcast %450 : f32 to vector<10x16xf32>
    %452 = arith.mulf %441, %451 : vector<10x16xf32>
    %453 = arith.addf %433, %452 : vector<10x16xf32>
    %c130 = arith.constant 130 : index
    %454 = memref.load %arg3[%c130] : memref<144xf32, #tpu.memory_space<smem>>
    %455 = vector.broadcast %454 : f32 to vector<10x16xf32>
    %456 = arith.mulf %441, %455 : vector<10x16xf32>
    %457 = arith.addf %437, %456 : vector<10x16xf32>
    %c1_i32_89 = arith.constant 1 : i32
    %458 = arith.addi %1, %c1_i32_89 : i32
    %c0_90 = arith.constant 0 : index
    %c2_91 = arith.constant 2 : index
    %459 = arith.index_cast %458 : i32 to index
    %c2_92 = arith.constant 2 : index
    %460 = vector.load %arg2[%c0_90, %c2_91, %459, %c2_92] : memref<1x4x20x18xf32, #tpu.memory_space<vmem>>, vector<1x1x10x16xf32>
    %461 = vector.shape_cast %460 : vector<1x1x10x16xf32> to vector<10x16xf32>
    %c23 = arith.constant 23 : index
    %462 = memref.load %arg3[%c23] : memref<144xf32, #tpu.memory_space<smem>>
    %463 = vector.broadcast %462 : f32 to vector<10x16xf32>
    %464 = arith.mulf %461, %463 : vector<10x16xf32>
    %465 = arith.addf %445, %464 : vector<10x16xf32>
    %c59 = arith.constant 59 : index
    %466 = memref.load %arg3[%c59] : memref<144xf32, #tpu.memory_space<smem>>
    %467 = vector.broadcast %466 : f32 to vector<10x16xf32>
    %468 = arith.mulf %461, %467 : vector<10x16xf32>
    %469 = arith.addf %449, %468 : vector<10x16xf32>
    %c95 = arith.constant 95 : index
    %470 = memref.load %arg3[%c95] : memref<144xf32, #tpu.memory_space<smem>>
    %471 = vector.broadcast %470 : f32 to vector<10x16xf32>
    %472 = arith.mulf %461, %471 : vector<10x16xf32>
    %473 = arith.addf %453, %472 : vector<10x16xf32>
    %c131 = arith.constant 131 : index
    %474 = memref.load %arg3[%c131] : memref<144xf32, #tpu.memory_space<smem>>
    %475 = vector.broadcast %474 : f32 to vector<10x16xf32>
    %476 = arith.mulf %461, %475 : vector<10x16xf32>
    %477 = arith.addf %457, %476 : vector<10x16xf32>
    %c2_i32_93 = arith.constant 2 : i32
    %478 = arith.addi %1, %c2_i32_93 : i32
    %c0_94 = arith.constant 0 : index
    %c2_95 = arith.constant 2 : index
    %479 = arith.index_cast %478 : i32 to index
    %c0_96 = arith.constant 0 : index
    %480 = vector.load %arg2[%c0_94, %c2_95, %479, %c0_96] : memref<1x4x20x18xf32, #tpu.memory_space<vmem>>, vector<1x1x10x16xf32>
    %481 = vector.shape_cast %480 : vector<1x1x10x16xf32> to vector<10x16xf32>
    %c24 = arith.constant 24 : index
    %482 = memref.load %arg3[%c24] : memref<144xf32, #tpu.memory_space<smem>>
    %483 = vector.broadcast %482 : f32 to vector<10x16xf32>
    %484 = arith.mulf %481, %483 : vector<10x16xf32>
    %485 = arith.addf %465, %484 : vector<10x16xf32>
    %c60 = arith.constant 60 : index
    %486 = memref.load %arg3[%c60] : memref<144xf32, #tpu.memory_space<smem>>
    %487 = vector.broadcast %486 : f32 to vector<10x16xf32>
    %488 = arith.mulf %481, %487 : vector<10x16xf32>
    %489 = arith.addf %469, %488 : vector<10x16xf32>
    %c96 = arith.constant 96 : index
    %490 = memref.load %arg3[%c96] : memref<144xf32, #tpu.memory_space<smem>>
    %491 = vector.broadcast %490 : f32 to vector<10x16xf32>
    %492 = arith.mulf %481, %491 : vector<10x16xf32>
    %493 = arith.addf %473, %492 : vector<10x16xf32>
    %c132 = arith.constant 132 : index
    %494 = memref.load %arg3[%c132] : memref<144xf32, #tpu.memory_space<smem>>
    %495 = vector.broadcast %494 : f32 to vector<10x16xf32>
    %496 = arith.mulf %481, %495 : vector<10x16xf32>
    %497 = arith.addf %477, %496 : vector<10x16xf32>
    %c2_i32_97 = arith.constant 2 : i32
    %498 = arith.addi %1, %c2_i32_97 : i32
    %c0_98 = arith.constant 0 : index
    %c2_99 = arith.constant 2 : index
    %499 = arith.index_cast %498 : i32 to index
    %c1_100 = arith.constant 1 : index
    %500 = vector.load %arg2[%c0_98, %c2_99, %499, %c1_100] : memref<1x4x20x18xf32, #tpu.memory_space<vmem>>, vector<1x1x10x16xf32>
    %501 = vector.shape_cast %500 : vector<1x1x10x16xf32> to vector<10x16xf32>
    %c25 = arith.constant 25 : index
    %502 = memref.load %arg3[%c25] : memref<144xf32, #tpu.memory_space<smem>>
    %503 = vector.broadcast %502 : f32 to vector<10x16xf32>
    %504 = arith.mulf %501, %503 : vector<10x16xf32>
    %505 = arith.addf %485, %504 : vector<10x16xf32>
    %c61 = arith.constant 61 : index
    %506 = memref.load %arg3[%c61] : memref<144xf32, #tpu.memory_space<smem>>
    %507 = vector.broadcast %506 : f32 to vector<10x16xf32>
    %508 = arith.mulf %501, %507 : vector<10x16xf32>
    %509 = arith.addf %489, %508 : vector<10x16xf32>
    %c97 = arith.constant 97 : index
    %510 = memref.load %arg3[%c97] : memref<144xf32, #tpu.memory_space<smem>>
    %511 = vector.broadcast %510 : f32 to vector<10x16xf32>
    %512 = arith.mulf %501, %511 : vector<10x16xf32>
    %513 = arith.addf %493, %512 : vector<10x16xf32>
    %c133 = arith.constant 133 : index
    %514 = memref.load %arg3[%c133] : memref<144xf32, #tpu.memory_space<smem>>
    %515 = vector.broadcast %514 : f32 to vector<10x16xf32>
    %516 = arith.mulf %501, %515 : vector<10x16xf32>
    %517 = arith.addf %497, %516 : vector<10x16xf32>
    %c2_i32_101 = arith.constant 2 : i32
    %518 = arith.addi %1, %c2_i32_101 : i32
    %c0_102 = arith.constant 0 : index
    %c2_103 = arith.constant 2 : index
    %519 = arith.index_cast %518 : i32 to index
    %c2_104 = arith.constant 2 : index
    %520 = vector.load %arg2[%c0_102, %c2_103, %519, %c2_104] : memref<1x4x20x18xf32, #tpu.memory_space<vmem>>, vector<1x1x10x16xf32>
    %521 = vector.shape_cast %520 : vector<1x1x10x16xf32> to vector<10x16xf32>
    %c26 = arith.constant 26 : index
    %522 = memref.load %arg3[%c26] : memref<144xf32, #tpu.memory_space<smem>>
    %523 = vector.broadcast %522 : f32 to vector<10x16xf32>
    %524 = arith.mulf %521, %523 : vector<10x16xf32>
    %525 = arith.addf %505, %524 : vector<10x16xf32>
    %c62 = arith.constant 62 : index
    %526 = memref.load %arg3[%c62] : memref<144xf32, #tpu.memory_space<smem>>
    %527 = vector.broadcast %526 : f32 to vector<10x16xf32>
    %528 = arith.mulf %521, %527 : vector<10x16xf32>
    %529 = arith.addf %509, %528 : vector<10x16xf32>
    %c98 = arith.constant 98 : index
    %530 = memref.load %arg3[%c98] : memref<144xf32, #tpu.memory_space<smem>>
    %531 = vector.broadcast %530 : f32 to vector<10x16xf32>
    %532 = arith.mulf %521, %531 : vector<10x16xf32>
    %533 = arith.addf %513, %532 : vector<10x16xf32>
    %c134 = arith.constant 134 : index
    %534 = memref.load %arg3[%c134] : memref<144xf32, #tpu.memory_space<smem>>
    %535 = vector.broadcast %534 : f32 to vector<10x16xf32>
    %536 = arith.mulf %521, %535 : vector<10x16xf32>
    %537 = arith.addf %517, %536 : vector<10x16xf32>
    %c0_i32_105 = arith.constant 0 : i32
    %538 = arith.addi %1, %c0_i32_105 : i32
    %c0_106 = arith.constant 0 : index
    %c3_107 = arith.constant 3 : index
    %539 = arith.index_cast %538 : i32 to index
    %c0_108 = arith.constant 0 : index
    %540 = vector.load %arg2[%c0_106, %c3_107, %539, %c0_108] : memref<1x4x20x18xf32, #tpu.memory_space<vmem>>, vector<1x1x10x16xf32>
    %541 = vector.shape_cast %540 : vector<1x1x10x16xf32> to vector<10x16xf32>
    %c27 = arith.constant 27 : index
    %542 = memref.load %arg3[%c27] : memref<144xf32, #tpu.memory_space<smem>>
    %543 = vector.broadcast %542 : f32 to vector<10x16xf32>
    %544 = arith.mulf %541, %543 : vector<10x16xf32>
    %545 = arith.addf %525, %544 : vector<10x16xf32>
    %c63 = arith.constant 63 : index
    %546 = memref.load %arg3[%c63] : memref<144xf32, #tpu.memory_space<smem>>
    %547 = vector.broadcast %546 : f32 to vector<10x16xf32>
    %548 = arith.mulf %541, %547 : vector<10x16xf32>
    %549 = arith.addf %529, %548 : vector<10x16xf32>
    %c99 = arith.constant 99 : index
    %550 = memref.load %arg3[%c99] : memref<144xf32, #tpu.memory_space<smem>>
    %551 = vector.broadcast %550 : f32 to vector<10x16xf32>
    %552 = arith.mulf %541, %551 : vector<10x16xf32>
    %553 = arith.addf %533, %552 : vector<10x16xf32>
    %c135 = arith.constant 135 : index
    %554 = memref.load %arg3[%c135] : memref<144xf32, #tpu.memory_space<smem>>
    %555 = vector.broadcast %554 : f32 to vector<10x16xf32>
    %556 = arith.mulf %541, %555 : vector<10x16xf32>
    %557 = arith.addf %537, %556 : vector<10x16xf32>
    %c0_i32_109 = arith.constant 0 : i32
    %558 = arith.addi %1, %c0_i32_109 : i32
    %c0_110 = arith.constant 0 : index
    %c3_111 = arith.constant 3 : index
    %559 = arith.index_cast %558 : i32 to index
    %c1_112 = arith.constant 1 : index
    %560 = vector.load %arg2[%c0_110, %c3_111, %559, %c1_112] : memref<1x4x20x18xf32, #tpu.memory_space<vmem>>, vector<1x1x10x16xf32>
    %561 = vector.shape_cast %560 : vector<1x1x10x16xf32> to vector<10x16xf32>
    %c28 = arith.constant 28 : index
    %562 = memref.load %arg3[%c28] : memref<144xf32, #tpu.memory_space<smem>>
    %563 = vector.broadcast %562 : f32 to vector<10x16xf32>
    %564 = arith.mulf %561, %563 : vector<10x16xf32>
    %565 = arith.addf %545, %564 : vector<10x16xf32>
    %c64 = arith.constant 64 : index
    %566 = memref.load %arg3[%c64] : memref<144xf32, #tpu.memory_space<smem>>
    %567 = vector.broadcast %566 : f32 to vector<10x16xf32>
    %568 = arith.mulf %561, %567 : vector<10x16xf32>
    %569 = arith.addf %549, %568 : vector<10x16xf32>
    %c100 = arith.constant 100 : index
    %570 = memref.load %arg3[%c100] : memref<144xf32, #tpu.memory_space<smem>>
    %571 = vector.broadcast %570 : f32 to vector<10x16xf32>
    %572 = arith.mulf %561, %571 : vector<10x16xf32>
    %573 = arith.addf %553, %572 : vector<10x16xf32>
    %c136 = arith.constant 136 : index
    %574 = memref.load %arg3[%c136] : memref<144xf32, #tpu.memory_space<smem>>
    %575 = vector.broadcast %574 : f32 to vector<10x16xf32>
    %576 = arith.mulf %561, %575 : vector<10x16xf32>
    %577 = arith.addf %557, %576 : vector<10x16xf32>
    %c0_i32_113 = arith.constant 0 : i32
    %578 = arith.addi %1, %c0_i32_113 : i32
    %c0_114 = arith.constant 0 : index
    %c3_115 = arith.constant 3 : index
    %579 = arith.index_cast %578 : i32 to index
    %c2_116 = arith.constant 2 : index
    %580 = vector.load %arg2[%c0_114, %c3_115, %579, %c2_116] : memref<1x4x20x18xf32, #tpu.memory_space<vmem>>, vector<1x1x10x16xf32>
    %581 = vector.shape_cast %580 : vector<1x1x10x16xf32> to vector<10x16xf32>
    %c29 = arith.constant 29 : index
    %582 = memref.load %arg3[%c29] : memref<144xf32, #tpu.memory_space<smem>>
    %583 = vector.broadcast %582 : f32 to vector<10x16xf32>
    %584 = arith.mulf %581, %583 : vector<10x16xf32>
    %585 = arith.addf %565, %584 : vector<10x16xf32>
    %c65 = arith.constant 65 : index
    %586 = memref.load %arg3[%c65] : memref<144xf32, #tpu.memory_space<smem>>
    %587 = vector.broadcast %586 : f32 to vector<10x16xf32>
    %588 = arith.mulf %581, %587 : vector<10x16xf32>
    %589 = arith.addf %569, %588 : vector<10x16xf32>
    %c101 = arith.constant 101 : index
    %590 = memref.load %arg3[%c101] : memref<144xf32, #tpu.memory_space<smem>>
    %591 = vector.broadcast %590 : f32 to vector<10x16xf32>
    %592 = arith.mulf %581, %591 : vector<10x16xf32>
    %593 = arith.addf %573, %592 : vector<10x16xf32>
    %c137 = arith.constant 137 : index
    %594 = memref.load %arg3[%c137] : memref<144xf32, #tpu.memory_space<smem>>
    %595 = vector.broadcast %594 : f32 to vector<10x16xf32>
    %596 = arith.mulf %581, %595 : vector<10x16xf32>
    %597 = arith.addf %577, %596 : vector<10x16xf32>
    %c1_i32_117 = arith.constant 1 : i32
    %598 = arith.addi %1, %c1_i32_117 : i32
    %c0_118 = arith.constant 0 : index
    %c3_119 = arith.constant 3 : index
    %599 = arith.index_cast %598 : i32 to index
    %c0_120 = arith.constant 0 : index
    %600 = vector.load %arg2[%c0_118, %c3_119, %599, %c0_120] : memref<1x4x20x18xf32, #tpu.memory_space<vmem>>, vector<1x1x10x16xf32>
    %601 = vector.shape_cast %600 : vector<1x1x10x16xf32> to vector<10x16xf32>
    %c30 = arith.constant 30 : index
    %602 = memref.load %arg3[%c30] : memref<144xf32, #tpu.memory_space<smem>>
    %603 = vector.broadcast %602 : f32 to vector<10x16xf32>
    %604 = arith.mulf %601, %603 : vector<10x16xf32>
    %605 = arith.addf %585, %604 : vector<10x16xf32>
    %c66 = arith.constant 66 : index
    %606 = memref.load %arg3[%c66] : memref<144xf32, #tpu.memory_space<smem>>
    %607 = vector.broadcast %606 : f32 to vector<10x16xf32>
    %608 = arith.mulf %601, %607 : vector<10x16xf32>
    %609 = arith.addf %589, %608 : vector<10x16xf32>
    %c102 = arith.constant 102 : index
    %610 = memref.load %arg3[%c102] : memref<144xf32, #tpu.memory_space<smem>>
    %611 = vector.broadcast %610 : f32 to vector<10x16xf32>
    %612 = arith.mulf %601, %611 : vector<10x16xf32>
    %613 = arith.addf %593, %612 : vector<10x16xf32>
    %c138 = arith.constant 138 : index
    %614 = memref.load %arg3[%c138] : memref<144xf32, #tpu.memory_space<smem>>
    %615 = vector.broadcast %614 : f32 to vector<10x16xf32>
    %616 = arith.mulf %601, %615 : vector<10x16xf32>
    %617 = arith.addf %597, %616 : vector<10x16xf32>
    %c1_i32_121 = arith.constant 1 : i32
    %618 = arith.addi %1, %c1_i32_121 : i32
    %c0_122 = arith.constant 0 : index
    %c3_123 = arith.constant 3 : index
    %619 = arith.index_cast %618 : i32 to index
    %c1_124 = arith.constant 1 : index
    %620 = vector.load %arg2[%c0_122, %c3_123, %619, %c1_124] : memref<1x4x20x18xf32, #tpu.memory_space<vmem>>, vector<1x1x10x16xf32>
    %621 = vector.shape_cast %620 : vector<1x1x10x16xf32> to vector<10x16xf32>
    %c31 = arith.constant 31 : index
    %622 = memref.load %arg3[%c31] : memref<144xf32, #tpu.memory_space<smem>>
    %623 = vector.broadcast %622 : f32 to vector<10x16xf32>
    %624 = arith.mulf %621, %623 : vector<10x16xf32>
    %625 = arith.addf %605, %624 : vector<10x16xf32>
    %c67 = arith.constant 67 : index
    %626 = memref.load %arg3[%c67] : memref<144xf32, #tpu.memory_space<smem>>
    %627 = vector.broadcast %626 : f32 to vector<10x16xf32>
    %628 = arith.mulf %621, %627 : vector<10x16xf32>
    %629 = arith.addf %609, %628 : vector<10x16xf32>
    %c103 = arith.constant 103 : index
    %630 = memref.load %arg3[%c103] : memref<144xf32, #tpu.memory_space<smem>>
    %631 = vector.broadcast %630 : f32 to vector<10x16xf32>
    %632 = arith.mulf %621, %631 : vector<10x16xf32>
    %633 = arith.addf %613, %632 : vector<10x16xf32>
    %c139 = arith.constant 139 : index
    %634 = memref.load %arg3[%c139] : memref<144xf32, #tpu.memory_space<smem>>
    %635 = vector.broadcast %634 : f32 to vector<10x16xf32>
    %636 = arith.mulf %621, %635 : vector<10x16xf32>
    %637 = arith.addf %617, %636 : vector<10x16xf32>
    %c1_i32_125 = arith.constant 1 : i32
    %638 = arith.addi %1, %c1_i32_125 : i32
    %c0_126 = arith.constant 0 : index
    %c3_127 = arith.constant 3 : index
    %639 = arith.index_cast %638 : i32 to index
    %c2_128 = arith.constant 2 : index
    %640 = vector.load %arg2[%c0_126, %c3_127, %639, %c2_128] : memref<1x4x20x18xf32, #tpu.memory_space<vmem>>, vector<1x1x10x16xf32>
    %641 = vector.shape_cast %640 : vector<1x1x10x16xf32> to vector<10x16xf32>
    %c32 = arith.constant 32 : index
    %642 = memref.load %arg3[%c32] : memref<144xf32, #tpu.memory_space<smem>>
    %643 = vector.broadcast %642 : f32 to vector<10x16xf32>
    %644 = arith.mulf %641, %643 : vector<10x16xf32>
    %645 = arith.addf %625, %644 : vector<10x16xf32>
    %c68 = arith.constant 68 : index
    %646 = memref.load %arg3[%c68] : memref<144xf32, #tpu.memory_space<smem>>
    %647 = vector.broadcast %646 : f32 to vector<10x16xf32>
    %648 = arith.mulf %641, %647 : vector<10x16xf32>
    %649 = arith.addf %629, %648 : vector<10x16xf32>
    %c104 = arith.constant 104 : index
    %650 = memref.load %arg3[%c104] : memref<144xf32, #tpu.memory_space<smem>>
    %651 = vector.broadcast %650 : f32 to vector<10x16xf32>
    %652 = arith.mulf %641, %651 : vector<10x16xf32>
    %653 = arith.addf %633, %652 : vector<10x16xf32>
    %c140 = arith.constant 140 : index
    %654 = memref.load %arg3[%c140] : memref<144xf32, #tpu.memory_space<smem>>
    %655 = vector.broadcast %654 : f32 to vector<10x16xf32>
    %656 = arith.mulf %641, %655 : vector<10x16xf32>
    %657 = arith.addf %637, %656 : vector<10x16xf32>
    %c2_i32_129 = arith.constant 2 : i32
    %658 = arith.addi %1, %c2_i32_129 : i32
    %c0_130 = arith.constant 0 : index
    %c3_131 = arith.constant 3 : index
    %659 = arith.index_cast %658 : i32 to index
    %c0_132 = arith.constant 0 : index
    %660 = vector.load %arg2[%c0_130, %c3_131, %659, %c0_132] : memref<1x4x20x18xf32, #tpu.memory_space<vmem>>, vector<1x1x10x16xf32>
    %661 = vector.shape_cast %660 : vector<1x1x10x16xf32> to vector<10x16xf32>
    %c33 = arith.constant 33 : index
    %662 = memref.load %arg3[%c33] : memref<144xf32, #tpu.memory_space<smem>>
    %663 = vector.broadcast %662 : f32 to vector<10x16xf32>
    %664 = arith.mulf %661, %663 : vector<10x16xf32>
    %665 = arith.addf %645, %664 : vector<10x16xf32>
    %c69 = arith.constant 69 : index
    %666 = memref.load %arg3[%c69] : memref<144xf32, #tpu.memory_space<smem>>
    %667 = vector.broadcast %666 : f32 to vector<10x16xf32>
    %668 = arith.mulf %661, %667 : vector<10x16xf32>
    %669 = arith.addf %649, %668 : vector<10x16xf32>
    %c105 = arith.constant 105 : index
    %670 = memref.load %arg3[%c105] : memref<144xf32, #tpu.memory_space<smem>>
    %671 = vector.broadcast %670 : f32 to vector<10x16xf32>
    %672 = arith.mulf %661, %671 : vector<10x16xf32>
    %673 = arith.addf %653, %672 : vector<10x16xf32>
    %c141 = arith.constant 141 : index
    %674 = memref.load %arg3[%c141] : memref<144xf32, #tpu.memory_space<smem>>
    %675 = vector.broadcast %674 : f32 to vector<10x16xf32>
    %676 = arith.mulf %661, %675 : vector<10x16xf32>
    %677 = arith.addf %657, %676 : vector<10x16xf32>
    %c2_i32_133 = arith.constant 2 : i32
    %678 = arith.addi %1, %c2_i32_133 : i32
    %c0_134 = arith.constant 0 : index
    %c3_135 = arith.constant 3 : index
    %679 = arith.index_cast %678 : i32 to index
    %c1_136 = arith.constant 1 : index
    %680 = vector.load %arg2[%c0_134, %c3_135, %679, %c1_136] : memref<1x4x20x18xf32, #tpu.memory_space<vmem>>, vector<1x1x10x16xf32>
    %681 = vector.shape_cast %680 : vector<1x1x10x16xf32> to vector<10x16xf32>
    %c34 = arith.constant 34 : index
    %682 = memref.load %arg3[%c34] : memref<144xf32, #tpu.memory_space<smem>>
    %683 = vector.broadcast %682 : f32 to vector<10x16xf32>
    %684 = arith.mulf %681, %683 : vector<10x16xf32>
    %685 = arith.addf %665, %684 : vector<10x16xf32>
    %c70 = arith.constant 70 : index
    %686 = memref.load %arg3[%c70] : memref<144xf32, #tpu.memory_space<smem>>
    %687 = vector.broadcast %686 : f32 to vector<10x16xf32>
    %688 = arith.mulf %681, %687 : vector<10x16xf32>
    %689 = arith.addf %669, %688 : vector<10x16xf32>
    %c106 = arith.constant 106 : index
    %690 = memref.load %arg3[%c106] : memref<144xf32, #tpu.memory_space<smem>>
    %691 = vector.broadcast %690 : f32 to vector<10x16xf32>
    %692 = arith.mulf %681, %691 : vector<10x16xf32>
    %693 = arith.addf %673, %692 : vector<10x16xf32>
    %c142 = arith.constant 142 : index
    %694 = memref.load %arg3[%c142] : memref<144xf32, #tpu.memory_space<smem>>
    %695 = vector.broadcast %694 : f32 to vector<10x16xf32>
    %696 = arith.mulf %681, %695 : vector<10x16xf32>
    %697 = arith.addf %677, %696 : vector<10x16xf32>
    %c2_i32_137 = arith.constant 2 : i32
    %698 = arith.addi %1, %c2_i32_137 : i32
    %c0_138 = arith.constant 0 : index
    %c3_139 = arith.constant 3 : index
    %699 = arith.index_cast %698 : i32 to index
    %c2_140 = arith.constant 2 : index
    %700 = vector.load %arg2[%c0_138, %c3_139, %699, %c2_140] : memref<1x4x20x18xf32, #tpu.memory_space<vmem>>, vector<1x1x10x16xf32>
    %701 = vector.shape_cast %700 : vector<1x1x10x16xf32> to vector<10x16xf32>
    %c35 = arith.constant 35 : index
    %702 = memref.load %arg3[%c35] : memref<144xf32, #tpu.memory_space<smem>>
    %703 = vector.broadcast %702 : f32 to vector<10x16xf32>
    %704 = arith.mulf %701, %703 : vector<10x16xf32>
    %705 = arith.addf %685, %704 : vector<10x16xf32>
    %c71 = arith.constant 71 : index
    %706 = memref.load %arg3[%c71] : memref<144xf32, #tpu.memory_space<smem>>
    %707 = vector.broadcast %706 : f32 to vector<10x16xf32>
    %708 = arith.mulf %701, %707 : vector<10x16xf32>
    %709 = arith.addf %689, %708 : vector<10x16xf32>
    %c107 = arith.constant 107 : index
    %710 = memref.load %arg3[%c107] : memref<144xf32, #tpu.memory_space<smem>>
    %711 = vector.broadcast %710 : f32 to vector<10x16xf32>
    %712 = arith.mulf %701, %711 : vector<10x16xf32>
    %713 = arith.addf %693, %712 : vector<10x16xf32>
    %c143 = arith.constant 143 : index
    %714 = memref.load %arg3[%c143] : memref<144xf32, #tpu.memory_space<smem>>
    %715 = vector.broadcast %714 : f32 to vector<10x16xf32>
    %716 = arith.mulf %701, %715 : vector<10x16xf32>
    %717 = arith.addf %697, %716 : vector<10x16xf32>
    %c0_141 = arith.constant 0 : index
    %718 = memref.load %arg4[%c0_141] : memref<4xf32, #tpu.memory_space<smem>>
    %719 = vector.broadcast %718 : f32 to vector<10x16xf32>
    %720 = arith.addf %705, %719 : vector<10x16xf32>
    %cst = arith.constant 0.000000e+00 : f32
    %721 = vector.broadcast %cst : f32 to vector<10x16xf32>
    %722 = arith.maximumf %720, %721 : vector<10x16xf32>
    %c0_142 = arith.constant 0 : index
    %c0_143 = arith.constant 0 : index
    %c1_144 = arith.constant 1 : index
    %723 = vector.load %arg8[%c0_142, %c0_143, %c1_144] : memref<4x10x18xf32, #tpu.memory_space<vmem>>, vector<1x10x16xf32>
    %724 = vector.shape_cast %723 : vector<1x10x16xf32> to vector<10x16xf32>
    %725 = vector.shape_cast %722 : vector<10x16xf32> to vector<1x10x16xf32>
    tpu.vector_store %arg8[%c0_142, %c0_143, %c1_144], %725 {strides = array<i32>} : memref<4x10x18xf32, #tpu.memory_space<vmem>>, vector<1x10x16xf32>,
    %c1_145 = arith.constant 1 : index
    %726 = memref.load %arg4[%c1_145] : memref<4xf32, #tpu.memory_space<smem>>
    %727 = vector.broadcast %726 : f32 to vector<10x16xf32>
    %728 = arith.addf %709, %727 : vector<10x16xf32>
    %cst_146 = arith.constant 0.000000e+00 : f32
    %729 = vector.broadcast %cst_146 : f32 to vector<10x16xf32>
    %730 = arith.maximumf %728, %729 : vector<10x16xf32>
    %c1_147 = arith.constant 1 : index
    %c0_148 = arith.constant 0 : index
    %c1_149 = arith.constant 1 : index
    %731 = vector.load %arg8[%c1_147, %c0_148, %c1_149] : memref<4x10x18xf32, #tpu.memory_space<vmem>>, vector<1x10x16xf32>
    %732 = vector.shape_cast %731 : vector<1x10x16xf32> to vector<10x16xf32>
    %733 = vector.shape_cast %730 : vector<10x16xf32> to vector<1x10x16xf32>
    tpu.vector_store %arg8[%c1_147, %c0_148, %c1_149], %733 {strides = array<i32>} : memref<4x10x18xf32, #tpu.memory_space<vmem>>, vector<1x10x16xf32>,
    %c2_150 = arith.constant 2 : index
    %734 = memref.load %arg4[%c2_150] : memref<4xf32, #tpu.memory_space<smem>>
    %735 = vector.broadcast %734 : f32 to vector<10x16xf32>
    %736 = arith.addf %713, %735 : vector<10x16xf32>
    %cst_151 = arith.constant 0.000000e+00 : f32
    %737 = vector.broadcast %cst_151 : f32 to vector<10x16xf32>
    %738 = arith.maximumf %736, %737 : vector<10x16xf32>
    %c2_152 = arith.constant 2 : index
    %c0_153 = arith.constant 0 : index
    %c1_154 = arith.constant 1 : index
    %739 = vector.load %arg8[%c2_152, %c0_153, %c1_154] : memref<4x10x18xf32, #tpu.memory_space<vmem>>, vector<1x10x16xf32>
    %740 = vector.shape_cast %739 : vector<1x10x16xf32> to vector<10x16xf32>
    %741 = vector.shape_cast %738 : vector<10x16xf32> to vector<1x10x16xf32>
    tpu.vector_store %arg8[%c2_152, %c0_153, %c1_154], %741 {strides = array<i32>} : memref<4x10x18xf32, #tpu.memory_space<vmem>>, vector<1x10x16xf32>,
    %c3_155 = arith.constant 3 : index
    %742 = memref.load %arg4[%c3_155] : memref<4xf32, #tpu.memory_space<smem>>
    %743 = vector.broadcast %742 : f32 to vector<10x16xf32>
    %744 = arith.addf %717, %743 : vector<10x16xf32>
    %cst_156 = arith.constant 0.000000e+00 : f32
    %745 = vector.broadcast %cst_156 : f32 to vector<10x16xf32>
    %746 = arith.maximumf %744, %745 : vector<10x16xf32>
    %c3_157 = arith.constant 3 : index
    %c0_158 = arith.constant 0 : index
    %c1_159 = arith.constant 1 : index
    %747 = vector.load %arg8[%c3_157, %c0_158, %c1_159] : memref<4x10x18xf32, #tpu.memory_space<vmem>>, vector<1x10x16xf32>
    %748 = vector.shape_cast %747 : vector<1x10x16xf32> to vector<10x16xf32>
    %749 = vector.shape_cast %746 : vector<10x16xf32> to vector<1x10x16xf32>
    tpu.vector_store %arg8[%c3_157, %c0_158, %c1_159], %749 {strides = array<i32>} : memref<4x10x18xf32, #tpu.memory_space<vmem>>, vector<1x10x16xf32>,
    %c0_i32_160 = arith.constant 0 : i32
    %750 = arith.cmpi eq, %arg1, %c0_i32_160 : i32
    %751 = arith.extui %750 : i1 to i32
    %c0_i32_161 = arith.constant 0 : i32
    %752 = arith.cmpi ne, %751, %c0_i32_161 : i32
    scf.if %752 {
      %c0_468 = arith.constant 0 : index
      %c2_469 = arith.constant 2 : index
      %c1_470 = arith.constant 1 : index
      %1456 = vector.load %arg8[%c0_468, %c2_469, %c1_470] : memref<4x10x18xf32, #tpu.memory_space<vmem>>, vector<4x1x16xf32>
      %c0_471 = arith.constant 0 : index
      %c0_472 = arith.constant 0 : index
      %c1_473 = arith.constant 1 : index
      %1457 = vector.load %arg8[%c0_471, %c0_472, %c1_473] : memref<4x10x18xf32, #tpu.memory_space<vmem>>, vector<4x1x16xf32>
      tpu.vector_store %arg8[%c0_471, %c0_472, %c1_473], %1456 {strides = array<i32>} : memref<4x10x18xf32, #tpu.memory_space<vmem>>, vector<4x1x16xf32>,
    } else {
    }
    %c1_i32_162 = arith.constant 1 : i32
    %753 = arith.cmpi eq, %arg1, %c1_i32_162 : i32
    %754 = arith.extui %753 : i1 to i32
    %c0_i32_163 = arith.constant 0 : i32
    %755 = arith.cmpi ne, %754, %c0_i32_163 : i32
    scf.if %755 {
      %c0_468 = arith.constant 0 : index
      %c7_469 = arith.constant 7 : index
      %c1_470 = arith.constant 1 : index
      %1456 = vector.load %arg8[%c0_468, %c7_469, %c1_470] : memref<4x10x18xf32, #tpu.memory_space<vmem>>, vector<4x1x16xf32>
      %c0_471 = arith.constant 0 : index
      %c9_472 = arith.constant 9 : index
      %c1_473 = arith.constant 1 : index
      %1457 = vector.load %arg8[%c0_471, %c9_472, %c1_473] : memref<4x10x18xf32, #tpu.memory_space<vmem>>, vector<4x1x16xf32>
      tpu.vector_store %arg8[%c0_471, %c9_472, %c1_473], %1456 {strides = array<i32>} : memref<4x10x18xf32, #tpu.memory_space<vmem>>, vector<4x1x16xf32>,
    } else {
    }
    %c0_164 = arith.constant 0 : index
    %c0_165 = arith.constant 0 : index
    %c2_166 = arith.constant 2 : index
    %756 = vector.load %arg8[%c0_164, %c0_165, %c2_166] : memref<4x10x18xf32, #tpu.memory_space<vmem>>, vector<4x10x1xf32>
    %c0_167 = arith.constant 0 : index
    %c0_168 = arith.constant 0 : index
    %c0_169 = arith.constant 0 : index
    %757 = vector.load %arg8[%c0_167, %c0_168, %c0_169] : memref<4x10x18xf32, #tpu.memory_space<vmem>>, vector<4x10x1xf32>
    tpu.vector_store %arg8[%c0_167, %c0_168, %c0_169], %756 {strides = array<i32>} : memref<4x10x18xf32, #tpu.memory_space<vmem>>, vector<4x10x1xf32>,
    %c0_170 = arith.constant 0 : index
    %c0_171 = arith.constant 0 : index
    %c15_172 = arith.constant 15 : index
    %758 = vector.load %arg8[%c0_170, %c0_171, %c15_172] : memref<4x10x18xf32, #tpu.memory_space<vmem>>, vector<4x10x1xf32>
    %c0_173 = arith.constant 0 : index
    %c0_174 = arith.constant 0 : index
    %c17_175 = arith.constant 17 : index
    %759 = vector.load %arg8[%c0_173, %c0_174, %c17_175] : memref<4x10x18xf32, #tpu.memory_space<vmem>>, vector<4x10x1xf32>
    tpu.vector_store %arg8[%c0_173, %c0_174, %c17_175], %758 {strides = array<i32>} : memref<4x10x18xf32, #tpu.memory_space<vmem>>, vector<4x10x1xf32>,
    %c0_176 = arith.constant 0 : index
    %c0_177 = arith.constant 0 : index
    %c0_178 = arith.constant 0 : index
    %760 = vector.load %arg8[%c0_176, %c0_177, %c0_178] : memref<4x10x18xf32, #tpu.memory_space<vmem>>, vector<1x8x16xf32>
    %761 = vector.shape_cast %760 : vector<1x8x16xf32> to vector<8x16xf32>
    %c0_179 = arith.constant 0 : index
    %762 = memref.load %arg5[%c0_179] : memref<144xf32, #tpu.memory_space<smem>>
    %763 = vector.broadcast %762 : f32 to vector<8x16xf32>
    %764 = arith.mulf %761, %763 : vector<8x16xf32>
    %c36_180 = arith.constant 36 : index
    %765 = memref.load %arg5[%c36_180] : memref<144xf32, #tpu.memory_space<smem>>
    %766 = vector.broadcast %765 : f32 to vector<8x16xf32>
    %767 = arith.mulf %761, %766 : vector<8x16xf32>
    %c72_181 = arith.constant 72 : index
    %768 = memref.load %arg5[%c72_181] : memref<144xf32, #tpu.memory_space<smem>>
    %769 = vector.broadcast %768 : f32 to vector<8x16xf32>
    %770 = arith.mulf %761, %769 : vector<8x16xf32>
    %c108_182 = arith.constant 108 : index
    %771 = memref.load %arg5[%c108_182] : memref<144xf32, #tpu.memory_space<smem>>
    %772 = vector.broadcast %771 : f32 to vector<8x16xf32>
    %773 = arith.mulf %761, %772 : vector<8x16xf32>
    %c0_183 = arith.constant 0 : index
    %c0_184 = arith.constant 0 : index
    %c1_185 = arith.constant 1 : index
    %774 = vector.load %arg8[%c0_183, %c0_184, %c1_185] : memref<4x10x18xf32, #tpu.memory_space<vmem>>, vector<1x8x16xf32>
    %775 = vector.shape_cast %774 : vector<1x8x16xf32> to vector<8x16xf32>
    %c1_186 = arith.constant 1 : index
    %776 = memref.load %arg5[%c1_186] : memref<144xf32, #tpu.memory_space<smem>>
    %777 = vector.broadcast %776 : f32 to vector<8x16xf32>
    %778 = arith.mulf %775, %777 : vector<8x16xf32>
    %779 = arith.addf %764, %778 : vector<8x16xf32>
    %c37_187 = arith.constant 37 : index
    %780 = memref.load %arg5[%c37_187] : memref<144xf32, #tpu.memory_space<smem>>
    %781 = vector.broadcast %780 : f32 to vector<8x16xf32>
    %782 = arith.mulf %775, %781 : vector<8x16xf32>
    %783 = arith.addf %767, %782 : vector<8x16xf32>
    %c73_188 = arith.constant 73 : index
    %784 = memref.load %arg5[%c73_188] : memref<144xf32, #tpu.memory_space<smem>>
    %785 = vector.broadcast %784 : f32 to vector<8x16xf32>
    %786 = arith.mulf %775, %785 : vector<8x16xf32>
    %787 = arith.addf %770, %786 : vector<8x16xf32>
    %c109_189 = arith.constant 109 : index
    %788 = memref.load %arg5[%c109_189] : memref<144xf32, #tpu.memory_space<smem>>
    %789 = vector.broadcast %788 : f32 to vector<8x16xf32>
    %790 = arith.mulf %775, %789 : vector<8x16xf32>
    %791 = arith.addf %773, %790 : vector<8x16xf32>
    %c0_190 = arith.constant 0 : index
    %c0_191 = arith.constant 0 : index
    %c2_192 = arith.constant 2 : index
    %792 = vector.load %arg8[%c0_190, %c0_191, %c2_192] : memref<4x10x18xf32, #tpu.memory_space<vmem>>, vector<1x8x16xf32>
    %793 = vector.shape_cast %792 : vector<1x8x16xf32> to vector<8x16xf32>
    %c2_193 = arith.constant 2 : index
    %794 = memref.load %arg5[%c2_193] : memref<144xf32, #tpu.memory_space<smem>>
    %795 = vector.broadcast %794 : f32 to vector<8x16xf32>
    %796 = arith.mulf %793, %795 : vector<8x16xf32>
    %797 = arith.addf %779, %796 : vector<8x16xf32>
    %c38_194 = arith.constant 38 : index
    %798 = memref.load %arg5[%c38_194] : memref<144xf32, #tpu.memory_space<smem>>
    %799 = vector.broadcast %798 : f32 to vector<8x16xf32>
    %800 = arith.mulf %793, %799 : vector<8x16xf32>
    %801 = arith.addf %783, %800 : vector<8x16xf32>
    %c74_195 = arith.constant 74 : index
    %802 = memref.load %arg5[%c74_195] : memref<144xf32, #tpu.memory_space<smem>>
    %803 = vector.broadcast %802 : f32 to vector<8x16xf32>
    %804 = arith.mulf %793, %803 : vector<8x16xf32>
    %805 = arith.addf %787, %804 : vector<8x16xf32>
    %c110_196 = arith.constant 110 : index
    %806 = memref.load %arg5[%c110_196] : memref<144xf32, #tpu.memory_space<smem>>
    %807 = vector.broadcast %806 : f32 to vector<8x16xf32>
    %808 = arith.mulf %793, %807 : vector<8x16xf32>
    %809 = arith.addf %791, %808 : vector<8x16xf32>
    %c0_197 = arith.constant 0 : index
    %c1_198 = arith.constant 1 : index
    %c0_199 = arith.constant 0 : index
    %810 = vector.load %arg8[%c0_197, %c1_198, %c0_199] : memref<4x10x18xf32, #tpu.memory_space<vmem>>, vector<1x8x16xf32>
    %811 = vector.shape_cast %810 : vector<1x8x16xf32> to vector<8x16xf32>
    %c3_200 = arith.constant 3 : index
    %812 = memref.load %arg5[%c3_200] : memref<144xf32, #tpu.memory_space<smem>>
    %813 = vector.broadcast %812 : f32 to vector<8x16xf32>
    %814 = arith.mulf %811, %813 : vector<8x16xf32>
    %815 = arith.addf %797, %814 : vector<8x16xf32>
    %c39_201 = arith.constant 39 : index
    %816 = memref.load %arg5[%c39_201] : memref<144xf32, #tpu.memory_space<smem>>
    %817 = vector.broadcast %816 : f32 to vector<8x16xf32>
    %818 = arith.mulf %811, %817 : vector<8x16xf32>
    %819 = arith.addf %801, %818 : vector<8x16xf32>
    %c75_202 = arith.constant 75 : index
    %820 = memref.load %arg5[%c75_202] : memref<144xf32, #tpu.memory_space<smem>>
    %821 = vector.broadcast %820 : f32 to vector<8x16xf32>
    %822 = arith.mulf %811, %821 : vector<8x16xf32>
    %823 = arith.addf %805, %822 : vector<8x16xf32>
    %c111_203 = arith.constant 111 : index
    %824 = memref.load %arg5[%c111_203] : memref<144xf32, #tpu.memory_space<smem>>
    %825 = vector.broadcast %824 : f32 to vector<8x16xf32>
    %826 = arith.mulf %811, %825 : vector<8x16xf32>
    %827 = arith.addf %809, %826 : vector<8x16xf32>
    %c0_204 = arith.constant 0 : index
    %c1_205 = arith.constant 1 : index
    %c1_206 = arith.constant 1 : index
    %828 = vector.load %arg8[%c0_204, %c1_205, %c1_206] : memref<4x10x18xf32, #tpu.memory_space<vmem>>, vector<1x8x16xf32>
    %829 = vector.shape_cast %828 : vector<1x8x16xf32> to vector<8x16xf32>
    %c4_207 = arith.constant 4 : index
    %830 = memref.load %arg5[%c4_207] : memref<144xf32, #tpu.memory_space<smem>>
    %831 = vector.broadcast %830 : f32 to vector<8x16xf32>
    %832 = arith.mulf %829, %831 : vector<8x16xf32>
    %833 = arith.addf %815, %832 : vector<8x16xf32>
    %c40_208 = arith.constant 40 : index
    %834 = memref.load %arg5[%c40_208] : memref<144xf32, #tpu.memory_space<smem>>
    %835 = vector.broadcast %834 : f32 to vector<8x16xf32>
    %836 = arith.mulf %829, %835 : vector<8x16xf32>
    %837 = arith.addf %819, %836 : vector<8x16xf32>
    %c76_209 = arith.constant 76 : index
    %838 = memref.load %arg5[%c76_209] : memref<144xf32, #tpu.memory_space<smem>>
    %839 = vector.broadcast %838 : f32 to vector<8x16xf32>
    %840 = arith.mulf %829, %839 : vector<8x16xf32>
    %841 = arith.addf %823, %840 : vector<8x16xf32>
    %c112_210 = arith.constant 112 : index
    %842 = memref.load %arg5[%c112_210] : memref<144xf32, #tpu.memory_space<smem>>
    %843 = vector.broadcast %842 : f32 to vector<8x16xf32>
    %844 = arith.mulf %829, %843 : vector<8x16xf32>
    %845 = arith.addf %827, %844 : vector<8x16xf32>
    %c0_211 = arith.constant 0 : index
    %c1_212 = arith.constant 1 : index
    %c2_213 = arith.constant 2 : index
    %846 = vector.load %arg8[%c0_211, %c1_212, %c2_213] : memref<4x10x18xf32, #tpu.memory_space<vmem>>, vector<1x8x16xf32>
    %847 = vector.shape_cast %846 : vector<1x8x16xf32> to vector<8x16xf32>
    %c5_214 = arith.constant 5 : index
    %848 = memref.load %arg5[%c5_214] : memref<144xf32, #tpu.memory_space<smem>>
    %849 = vector.broadcast %848 : f32 to vector<8x16xf32>
    %850 = arith.mulf %847, %849 : vector<8x16xf32>
    %851 = arith.addf %833, %850 : vector<8x16xf32>
    %c41_215 = arith.constant 41 : index
    %852 = memref.load %arg5[%c41_215] : memref<144xf32, #tpu.memory_space<smem>>
    %853 = vector.broadcast %852 : f32 to vector<8x16xf32>
    %854 = arith.mulf %847, %853 : vector<8x16xf32>
    %855 = arith.addf %837, %854 : vector<8x16xf32>
    %c77_216 = arith.constant 77 : index
    %856 = memref.load %arg5[%c77_216] : memref<144xf32, #tpu.memory_space<smem>>
    %857 = vector.broadcast %856 : f32 to vector<8x16xf32>
    %858 = arith.mulf %847, %857 : vector<8x16xf32>
    %859 = arith.addf %841, %858 : vector<8x16xf32>
    %c113_217 = arith.constant 113 : index
    %860 = memref.load %arg5[%c113_217] : memref<144xf32, #tpu.memory_space<smem>>
    %861 = vector.broadcast %860 : f32 to vector<8x16xf32>
    %862 = arith.mulf %847, %861 : vector<8x16xf32>
    %863 = arith.addf %845, %862 : vector<8x16xf32>
    %c0_218 = arith.constant 0 : index
    %c2_219 = arith.constant 2 : index
    %c0_220 = arith.constant 0 : index
    %864 = vector.load %arg8[%c0_218, %c2_219, %c0_220] : memref<4x10x18xf32, #tpu.memory_space<vmem>>, vector<1x8x16xf32>
    %865 = vector.shape_cast %864 : vector<1x8x16xf32> to vector<8x16xf32>
    %c6_221 = arith.constant 6 : index
    %866 = memref.load %arg5[%c6_221] : memref<144xf32, #tpu.memory_space<smem>>
    %867 = vector.broadcast %866 : f32 to vector<8x16xf32>
    %868 = arith.mulf %865, %867 : vector<8x16xf32>
    %869 = arith.addf %851, %868 : vector<8x16xf32>
    %c42_222 = arith.constant 42 : index
    %870 = memref.load %arg5[%c42_222] : memref<144xf32, #tpu.memory_space<smem>>
    %871 = vector.broadcast %870 : f32 to vector<8x16xf32>
    %872 = arith.mulf %865, %871 : vector<8x16xf32>
    %873 = arith.addf %855, %872 : vector<8x16xf32>
    %c78_223 = arith.constant 78 : index
    %874 = memref.load %arg5[%c78_223] : memref<144xf32, #tpu.memory_space<smem>>
    %875 = vector.broadcast %874 : f32 to vector<8x16xf32>
    %876 = arith.mulf %865, %875 : vector<8x16xf32>
    %877 = arith.addf %859, %876 : vector<8x16xf32>
    %c114_224 = arith.constant 114 : index
    %878 = memref.load %arg5[%c114_224] : memref<144xf32, #tpu.memory_space<smem>>
    %879 = vector.broadcast %878 : f32 to vector<8x16xf32>
    %880 = arith.mulf %865, %879 : vector<8x16xf32>
    %881 = arith.addf %863, %880 : vector<8x16xf32>
    %c0_225 = arith.constant 0 : index
    %c2_226 = arith.constant 2 : index
    %c1_227 = arith.constant 1 : index
    %882 = vector.load %arg8[%c0_225, %c2_226, %c1_227] : memref<4x10x18xf32, #tpu.memory_space<vmem>>, vector<1x8x16xf32>
    %883 = vector.shape_cast %882 : vector<1x8x16xf32> to vector<8x16xf32>
    %c7_228 = arith.constant 7 : index
    %884 = memref.load %arg5[%c7_228] : memref<144xf32, #tpu.memory_space<smem>>
    %885 = vector.broadcast %884 : f32 to vector<8x16xf32>
    %886 = arith.mulf %883, %885 : vector<8x16xf32>
    %887 = arith.addf %869, %886 : vector<8x16xf32>
    %c43_229 = arith.constant 43 : index
    %888 = memref.load %arg5[%c43_229] : memref<144xf32, #tpu.memory_space<smem>>
    %889 = vector.broadcast %888 : f32 to vector<8x16xf32>
    %890 = arith.mulf %883, %889 : vector<8x16xf32>
    %891 = arith.addf %873, %890 : vector<8x16xf32>
    %c79_230 = arith.constant 79 : index
    %892 = memref.load %arg5[%c79_230] : memref<144xf32, #tpu.memory_space<smem>>
    %893 = vector.broadcast %892 : f32 to vector<8x16xf32>
    %894 = arith.mulf %883, %893 : vector<8x16xf32>
    %895 = arith.addf %877, %894 : vector<8x16xf32>
    %c115_231 = arith.constant 115 : index
    %896 = memref.load %arg5[%c115_231] : memref<144xf32, #tpu.memory_space<smem>>
    %897 = vector.broadcast %896 : f32 to vector<8x16xf32>
    %898 = arith.mulf %883, %897 : vector<8x16xf32>
    %899 = arith.addf %881, %898 : vector<8x16xf32>
    %c0_232 = arith.constant 0 : index
    %c2_233 = arith.constant 2 : index
    %c2_234 = arith.constant 2 : index
    %900 = vector.load %arg8[%c0_232, %c2_233, %c2_234] : memref<4x10x18xf32, #tpu.memory_space<vmem>>, vector<1x8x16xf32>
    %901 = vector.shape_cast %900 : vector<1x8x16xf32> to vector<8x16xf32>
    %c8_235 = arith.constant 8 : index
    %902 = memref.load %arg5[%c8_235] : memref<144xf32, #tpu.memory_space<smem>>
    %903 = vector.broadcast %902 : f32 to vector<8x16xf32>
    %904 = arith.mulf %901, %903 : vector<8x16xf32>
    %905 = arith.addf %887, %904 : vector<8x16xf32>
    %c44_236 = arith.constant 44 : index
    %906 = memref.load %arg5[%c44_236] : memref<144xf32, #tpu.memory_space<smem>>
    %907 = vector.broadcast %906 : f32 to vector<8x16xf32>
    %908 = arith.mulf %901, %907 : vector<8x16xf32>
    %909 = arith.addf %891, %908 : vector<8x16xf32>
    %c80_237 = arith.constant 80 : index
    %910 = memref.load %arg5[%c80_237] : memref<144xf32, #tpu.memory_space<smem>>
    %911 = vector.broadcast %910 : f32 to vector<8x16xf32>
    %912 = arith.mulf %901, %911 : vector<8x16xf32>
    %913 = arith.addf %895, %912 : vector<8x16xf32>
    %c116_238 = arith.constant 116 : index
    %914 = memref.load %arg5[%c116_238] : memref<144xf32, #tpu.memory_space<smem>>
    %915 = vector.broadcast %914 : f32 to vector<8x16xf32>
    %916 = arith.mulf %901, %915 : vector<8x16xf32>
    %917 = arith.addf %899, %916 : vector<8x16xf32>
    %c1_239 = arith.constant 1 : index
    %c0_240 = arith.constant 0 : index
    %c0_241 = arith.constant 0 : index
    %918 = vector.load %arg8[%c1_239, %c0_240, %c0_241] : memref<4x10x18xf32, #tpu.memory_space<vmem>>, vector<1x8x16xf32>
    %919 = vector.shape_cast %918 : vector<1x8x16xf32> to vector<8x16xf32>
    %c9_242 = arith.constant 9 : index
    %920 = memref.load %arg5[%c9_242] : memref<144xf32, #tpu.memory_space<smem>>
    %921 = vector.broadcast %920 : f32 to vector<8x16xf32>
    %922 = arith.mulf %919, %921 : vector<8x16xf32>
    %923 = arith.addf %905, %922 : vector<8x16xf32>
    %c45_243 = arith.constant 45 : index
    %924 = memref.load %arg5[%c45_243] : memref<144xf32, #tpu.memory_space<smem>>
    %925 = vector.broadcast %924 : f32 to vector<8x16xf32>
    %926 = arith.mulf %919, %925 : vector<8x16xf32>
    %927 = arith.addf %909, %926 : vector<8x16xf32>
    %c81_244 = arith.constant 81 : index
    %928 = memref.load %arg5[%c81_244] : memref<144xf32, #tpu.memory_space<smem>>
    %929 = vector.broadcast %928 : f32 to vector<8x16xf32>
    %930 = arith.mulf %919, %929 : vector<8x16xf32>
    %931 = arith.addf %913, %930 : vector<8x16xf32>
    %c117_245 = arith.constant 117 : index
    %932 = memref.load %arg5[%c117_245] : memref<144xf32, #tpu.memory_space<smem>>
    %933 = vector.broadcast %932 : f32 to vector<8x16xf32>
    %934 = arith.mulf %919, %933 : vector<8x16xf32>
    %935 = arith.addf %917, %934 : vector<8x16xf32>
    %c1_246 = arith.constant 1 : index
    %c0_247 = arith.constant 0 : index
    %c1_248 = arith.constant 1 : index
    %936 = vector.load %arg8[%c1_246, %c0_247, %c1_248] : memref<4x10x18xf32, #tpu.memory_space<vmem>>, vector<1x8x16xf32>
    %937 = vector.shape_cast %936 : vector<1x8x16xf32> to vector<8x16xf32>
    %c10_249 = arith.constant 10 : index
    %938 = memref.load %arg5[%c10_249] : memref<144xf32, #tpu.memory_space<smem>>
    %939 = vector.broadcast %938 : f32 to vector<8x16xf32>
    %940 = arith.mulf %937, %939 : vector<8x16xf32>
    %941 = arith.addf %923, %940 : vector<8x16xf32>
    %c46_250 = arith.constant 46 : index
    %942 = memref.load %arg5[%c46_250] : memref<144xf32, #tpu.memory_space<smem>>
    %943 = vector.broadcast %942 : f32 to vector<8x16xf32>
    %944 = arith.mulf %937, %943 : vector<8x16xf32>
    %945 = arith.addf %927, %944 : vector<8x16xf32>
    %c82_251 = arith.constant 82 : index
    %946 = memref.load %arg5[%c82_251] : memref<144xf32, #tpu.memory_space<smem>>
    %947 = vector.broadcast %946 : f32 to vector<8x16xf32>
    %948 = arith.mulf %937, %947 : vector<8x16xf32>
    %949 = arith.addf %931, %948 : vector<8x16xf32>
    %c118_252 = arith.constant 118 : index
    %950 = memref.load %arg5[%c118_252] : memref<144xf32, #tpu.memory_space<smem>>
    %951 = vector.broadcast %950 : f32 to vector<8x16xf32>
    %952 = arith.mulf %937, %951 : vector<8x16xf32>
    %953 = arith.addf %935, %952 : vector<8x16xf32>
    %c1_253 = arith.constant 1 : index
    %c0_254 = arith.constant 0 : index
    %c2_255 = arith.constant 2 : index
    %954 = vector.load %arg8[%c1_253, %c0_254, %c2_255] : memref<4x10x18xf32, #tpu.memory_space<vmem>>, vector<1x8x16xf32>
    %955 = vector.shape_cast %954 : vector<1x8x16xf32> to vector<8x16xf32>
    %c11_256 = arith.constant 11 : index
    %956 = memref.load %arg5[%c11_256] : memref<144xf32, #tpu.memory_space<smem>>
    %957 = vector.broadcast %956 : f32 to vector<8x16xf32>
    %958 = arith.mulf %955, %957 : vector<8x16xf32>
    %959 = arith.addf %941, %958 : vector<8x16xf32>
    %c47_257 = arith.constant 47 : index
    %960 = memref.load %arg5[%c47_257] : memref<144xf32, #tpu.memory_space<smem>>
    %961 = vector.broadcast %960 : f32 to vector<8x16xf32>
    %962 = arith.mulf %955, %961 : vector<8x16xf32>
    %963 = arith.addf %945, %962 : vector<8x16xf32>
    %c83_258 = arith.constant 83 : index
    %964 = memref.load %arg5[%c83_258] : memref<144xf32, #tpu.memory_space<smem>>
    %965 = vector.broadcast %964 : f32 to vector<8x16xf32>
    %966 = arith.mulf %955, %965 : vector<8x16xf32>
    %967 = arith.addf %949, %966 : vector<8x16xf32>
    %c119_259 = arith.constant 119 : index
    %968 = memref.load %arg5[%c119_259] : memref<144xf32, #tpu.memory_space<smem>>
    %969 = vector.broadcast %968 : f32 to vector<8x16xf32>
    %970 = arith.mulf %955, %969 : vector<8x16xf32>
    %971 = arith.addf %953, %970 : vector<8x16xf32>
    %c1_260 = arith.constant 1 : index
    %c1_261 = arith.constant 1 : index
    %c0_262 = arith.constant 0 : index
    %972 = vector.load %arg8[%c1_260, %c1_261, %c0_262] : memref<4x10x18xf32, #tpu.memory_space<vmem>>, vector<1x8x16xf32>
    %973 = vector.shape_cast %972 : vector<1x8x16xf32> to vector<8x16xf32>
    %c12_263 = arith.constant 12 : index
    %974 = memref.load %arg5[%c12_263] : memref<144xf32, #tpu.memory_space<smem>>
    %975 = vector.broadcast %974 : f32 to vector<8x16xf32>
    %976 = arith.mulf %973, %975 : vector<8x16xf32>
    %977 = arith.addf %959, %976 : vector<8x16xf32>
    %c48_264 = arith.constant 48 : index
    %978 = memref.load %arg5[%c48_264] : memref<144xf32, #tpu.memory_space<smem>>
    %979 = vector.broadcast %978 : f32 to vector<8x16xf32>
    %980 = arith.mulf %973, %979 : vector<8x16xf32>
    %981 = arith.addf %963, %980 : vector<8x16xf32>
    %c84_265 = arith.constant 84 : index
    %982 = memref.load %arg5[%c84_265] : memref<144xf32, #tpu.memory_space<smem>>
    %983 = vector.broadcast %982 : f32 to vector<8x16xf32>
    %984 = arith.mulf %973, %983 : vector<8x16xf32>
    %985 = arith.addf %967, %984 : vector<8x16xf32>
    %c120_266 = arith.constant 120 : index
    %986 = memref.load %arg5[%c120_266] : memref<144xf32, #tpu.memory_space<smem>>
    %987 = vector.broadcast %986 : f32 to vector<8x16xf32>
    %988 = arith.mulf %973, %987 : vector<8x16xf32>
    %989 = arith.addf %971, %988 : vector<8x16xf32>
    %c1_267 = arith.constant 1 : index
    %c1_268 = arith.constant 1 : index
    %c1_269 = arith.constant 1 : index
    %990 = vector.load %arg8[%c1_267, %c1_268, %c1_269] : memref<4x10x18xf32, #tpu.memory_space<vmem>>, vector<1x8x16xf32>
    %991 = vector.shape_cast %990 : vector<1x8x16xf32> to vector<8x16xf32>
    %c13_270 = arith.constant 13 : index
    %992 = memref.load %arg5[%c13_270] : memref<144xf32, #tpu.memory_space<smem>>
    %993 = vector.broadcast %992 : f32 to vector<8x16xf32>
    %994 = arith.mulf %991, %993 : vector<8x16xf32>
    %995 = arith.addf %977, %994 : vector<8x16xf32>
    %c49_271 = arith.constant 49 : index
    %996 = memref.load %arg5[%c49_271] : memref<144xf32, #tpu.memory_space<smem>>
    %997 = vector.broadcast %996 : f32 to vector<8x16xf32>
    %998 = arith.mulf %991, %997 : vector<8x16xf32>
    %999 = arith.addf %981, %998 : vector<8x16xf32>
    %c85_272 = arith.constant 85 : index
    %1000 = memref.load %arg5[%c85_272] : memref<144xf32, #tpu.memory_space<smem>>
    %1001 = vector.broadcast %1000 : f32 to vector<8x16xf32>
    %1002 = arith.mulf %991, %1001 : vector<8x16xf32>
    %1003 = arith.addf %985, %1002 : vector<8x16xf32>
    %c121_273 = arith.constant 121 : index
    %1004 = memref.load %arg5[%c121_273] : memref<144xf32, #tpu.memory_space<smem>>
    %1005 = vector.broadcast %1004 : f32 to vector<8x16xf32>
    %1006 = arith.mulf %991, %1005 : vector<8x16xf32>
    %1007 = arith.addf %989, %1006 : vector<8x16xf32>
    %c1_274 = arith.constant 1 : index
    %c1_275 = arith.constant 1 : index
    %c2_276 = arith.constant 2 : index
    %1008 = vector.load %arg8[%c1_274, %c1_275, %c2_276] : memref<4x10x18xf32, #tpu.memory_space<vmem>>, vector<1x8x16xf32>
    %1009 = vector.shape_cast %1008 : vector<1x8x16xf32> to vector<8x16xf32>
    %c14_277 = arith.constant 14 : index
    %1010 = memref.load %arg5[%c14_277] : memref<144xf32, #tpu.memory_space<smem>>
    %1011 = vector.broadcast %1010 : f32 to vector<8x16xf32>
    %1012 = arith.mulf %1009, %1011 : vector<8x16xf32>
    %1013 = arith.addf %995, %1012 : vector<8x16xf32>
    %c50_278 = arith.constant 50 : index
    %1014 = memref.load %arg5[%c50_278] : memref<144xf32, #tpu.memory_space<smem>>
    %1015 = vector.broadcast %1014 : f32 to vector<8x16xf32>
    %1016 = arith.mulf %1009, %1015 : vector<8x16xf32>
    %1017 = arith.addf %999, %1016 : vector<8x16xf32>
    %c86_279 = arith.constant 86 : index
    %1018 = memref.load %arg5[%c86_279] : memref<144xf32, #tpu.memory_space<smem>>
    %1019 = vector.broadcast %1018 : f32 to vector<8x16xf32>
    %1020 = arith.mulf %1009, %1019 : vector<8x16xf32>
    %1021 = arith.addf %1003, %1020 : vector<8x16xf32>
    %c122_280 = arith.constant 122 : index
    %1022 = memref.load %arg5[%c122_280] : memref<144xf32, #tpu.memory_space<smem>>
    %1023 = vector.broadcast %1022 : f32 to vector<8x16xf32>
    %1024 = arith.mulf %1009, %1023 : vector<8x16xf32>
    %1025 = arith.addf %1007, %1024 : vector<8x16xf32>
    %c1_281 = arith.constant 1 : index
    %c2_282 = arith.constant 2 : index
    %c0_283 = arith.constant 0 : index
    %1026 = vector.load %arg8[%c1_281, %c2_282, %c0_283] : memref<4x10x18xf32, #tpu.memory_space<vmem>>, vector<1x8x16xf32>
    %1027 = vector.shape_cast %1026 : vector<1x8x16xf32> to vector<8x16xf32>
    %c15_284 = arith.constant 15 : index
    %1028 = memref.load %arg5[%c15_284] : memref<144xf32, #tpu.memory_space<smem>>
    %1029 = vector.broadcast %1028 : f32 to vector<8x16xf32>
    %1030 = arith.mulf %1027, %1029 : vector<8x16xf32>
    %1031 = arith.addf %1013, %1030 : vector<8x16xf32>
    %c51_285 = arith.constant 51 : index
    %1032 = memref.load %arg5[%c51_285] : memref<144xf32, #tpu.memory_space<smem>>
    %1033 = vector.broadcast %1032 : f32 to vector<8x16xf32>
    %1034 = arith.mulf %1027, %1033 : vector<8x16xf32>
    %1035 = arith.addf %1017, %1034 : vector<8x16xf32>
    %c87_286 = arith.constant 87 : index
    %1036 = memref.load %arg5[%c87_286] : memref<144xf32, #tpu.memory_space<smem>>
    %1037 = vector.broadcast %1036 : f32 to vector<8x16xf32>
    %1038 = arith.mulf %1027, %1037 : vector<8x16xf32>
    %1039 = arith.addf %1021, %1038 : vector<8x16xf32>
    %c123_287 = arith.constant 123 : index
    %1040 = memref.load %arg5[%c123_287] : memref<144xf32, #tpu.memory_space<smem>>
    %1041 = vector.broadcast %1040 : f32 to vector<8x16xf32>
    %1042 = arith.mulf %1027, %1041 : vector<8x16xf32>
    %1043 = arith.addf %1025, %1042 : vector<8x16xf32>
    %c1_288 = arith.constant 1 : index
    %c2_289 = arith.constant 2 : index
    %c1_290 = arith.constant 1 : index
    %1044 = vector.load %arg8[%c1_288, %c2_289, %c1_290] : memref<4x10x18xf32, #tpu.memory_space<vmem>>, vector<1x8x16xf32>
    %1045 = vector.shape_cast %1044 : vector<1x8x16xf32> to vector<8x16xf32>
    %c16_291 = arith.constant 16 : index
    %1046 = memref.load %arg5[%c16_291] : memref<144xf32, #tpu.memory_space<smem>>
    %1047 = vector.broadcast %1046 : f32 to vector<8x16xf32>
    %1048 = arith.mulf %1045, %1047 : vector<8x16xf32>
    %1049 = arith.addf %1031, %1048 : vector<8x16xf32>
    %c52_292 = arith.constant 52 : index
    %1050 = memref.load %arg5[%c52_292] : memref<144xf32, #tpu.memory_space<smem>>
    %1051 = vector.broadcast %1050 : f32 to vector<8x16xf32>
    %1052 = arith.mulf %1045, %1051 : vector<8x16xf32>
    %1053 = arith.addf %1035, %1052 : vector<8x16xf32>
    %c88_293 = arith.constant 88 : index
    %1054 = memref.load %arg5[%c88_293] : memref<144xf32, #tpu.memory_space<smem>>
    %1055 = vector.broadcast %1054 : f32 to vector<8x16xf32>
    %1056 = arith.mulf %1045, %1055 : vector<8x16xf32>
    %1057 = arith.addf %1039, %1056 : vector<8x16xf32>
    %c124_294 = arith.constant 124 : index
    %1058 = memref.load %arg5[%c124_294] : memref<144xf32, #tpu.memory_space<smem>>
    %1059 = vector.broadcast %1058 : f32 to vector<8x16xf32>
    %1060 = arith.mulf %1045, %1059 : vector<8x16xf32>
    %1061 = arith.addf %1043, %1060 : vector<8x16xf32>
    %c1_295 = arith.constant 1 : index
    %c2_296 = arith.constant 2 : index
    %c2_297 = arith.constant 2 : index
    %1062 = vector.load %arg8[%c1_295, %c2_296, %c2_297] : memref<4x10x18xf32, #tpu.memory_space<vmem>>, vector<1x8x16xf32>
    %1063 = vector.shape_cast %1062 : vector<1x8x16xf32> to vector<8x16xf32>
    %c17_298 = arith.constant 17 : index
    %1064 = memref.load %arg5[%c17_298] : memref<144xf32, #tpu.memory_space<smem>>
    %1065 = vector.broadcast %1064 : f32 to vector<8x16xf32>
    %1066 = arith.mulf %1063, %1065 : vector<8x16xf32>
    %1067 = arith.addf %1049, %1066 : vector<8x16xf32>
    %c53_299 = arith.constant 53 : index
    %1068 = memref.load %arg5[%c53_299] : memref<144xf32, #tpu.memory_space<smem>>
    %1069 = vector.broadcast %1068 : f32 to vector<8x16xf32>
    %1070 = arith.mulf %1063, %1069 : vector<8x16xf32>
    %1071 = arith.addf %1053, %1070 : vector<8x16xf32>
    %c89_300 = arith.constant 89 : index
    %1072 = memref.load %arg5[%c89_300] : memref<144xf32, #tpu.memory_space<smem>>
    %1073 = vector.broadcast %1072 : f32 to vector<8x16xf32>
    %1074 = arith.mulf %1063, %1073 : vector<8x16xf32>
    %1075 = arith.addf %1057, %1074 : vector<8x16xf32>
    %c125_301 = arith.constant 125 : index
    %1076 = memref.load %arg5[%c125_301] : memref<144xf32, #tpu.memory_space<smem>>
    %1077 = vector.broadcast %1076 : f32 to vector<8x16xf32>
    %1078 = arith.mulf %1063, %1077 : vector<8x16xf32>
    %1079 = arith.addf %1061, %1078 : vector<8x16xf32>
    %c2_302 = arith.constant 2 : index
    %c0_303 = arith.constant 0 : index
    %c0_304 = arith.constant 0 : index
    %1080 = vector.load %arg8[%c2_302, %c0_303, %c0_304] : memref<4x10x18xf32, #tpu.memory_space<vmem>>, vector<1x8x16xf32>
    %1081 = vector.shape_cast %1080 : vector<1x8x16xf32> to vector<8x16xf32>
    %c18_305 = arith.constant 18 : index
    %1082 = memref.load %arg5[%c18_305] : memref<144xf32, #tpu.memory_space<smem>>
    %1083 = vector.broadcast %1082 : f32 to vector<8x16xf32>
    %1084 = arith.mulf %1081, %1083 : vector<8x16xf32>
    %1085 = arith.addf %1067, %1084 : vector<8x16xf32>
    %c54_306 = arith.constant 54 : index
    %1086 = memref.load %arg5[%c54_306] : memref<144xf32, #tpu.memory_space<smem>>
    %1087 = vector.broadcast %1086 : f32 to vector<8x16xf32>
    %1088 = arith.mulf %1081, %1087 : vector<8x16xf32>
    %1089 = arith.addf %1071, %1088 : vector<8x16xf32>
    %c90_307 = arith.constant 90 : index
    %1090 = memref.load %arg5[%c90_307] : memref<144xf32, #tpu.memory_space<smem>>
    %1091 = vector.broadcast %1090 : f32 to vector<8x16xf32>
    %1092 = arith.mulf %1081, %1091 : vector<8x16xf32>
    %1093 = arith.addf %1075, %1092 : vector<8x16xf32>
    %c126_308 = arith.constant 126 : index
    %1094 = memref.load %arg5[%c126_308] : memref<144xf32, #tpu.memory_space<smem>>
    %1095 = vector.broadcast %1094 : f32 to vector<8x16xf32>
    %1096 = arith.mulf %1081, %1095 : vector<8x16xf32>
    %1097 = arith.addf %1079, %1096 : vector<8x16xf32>
    %c2_309 = arith.constant 2 : index
    %c0_310 = arith.constant 0 : index
    %c1_311 = arith.constant 1 : index
    %1098 = vector.load %arg8[%c2_309, %c0_310, %c1_311] : memref<4x10x18xf32, #tpu.memory_space<vmem>>, vector<1x8x16xf32>
    %1099 = vector.shape_cast %1098 : vector<1x8x16xf32> to vector<8x16xf32>
    %c19_312 = arith.constant 19 : index
    %1100 = memref.load %arg5[%c19_312] : memref<144xf32, #tpu.memory_space<smem>>
    %1101 = vector.broadcast %1100 : f32 to vector<8x16xf32>
    %1102 = arith.mulf %1099, %1101 : vector<8x16xf32>
    %1103 = arith.addf %1085, %1102 : vector<8x16xf32>
    %c55_313 = arith.constant 55 : index
    %1104 = memref.load %arg5[%c55_313] : memref<144xf32, #tpu.memory_space<smem>>
    %1105 = vector.broadcast %1104 : f32 to vector<8x16xf32>
    %1106 = arith.mulf %1099, %1105 : vector<8x16xf32>
    %1107 = arith.addf %1089, %1106 : vector<8x16xf32>
    %c91_314 = arith.constant 91 : index
    %1108 = memref.load %arg5[%c91_314] : memref<144xf32, #tpu.memory_space<smem>>
    %1109 = vector.broadcast %1108 : f32 to vector<8x16xf32>
    %1110 = arith.mulf %1099, %1109 : vector<8x16xf32>
    %1111 = arith.addf %1093, %1110 : vector<8x16xf32>
    %c127_315 = arith.constant 127 : index
    %1112 = memref.load %arg5[%c127_315] : memref<144xf32, #tpu.memory_space<smem>>
    %1113 = vector.broadcast %1112 : f32 to vector<8x16xf32>
    %1114 = arith.mulf %1099, %1113 : vector<8x16xf32>
    %1115 = arith.addf %1097, %1114 : vector<8x16xf32>
    %c2_316 = arith.constant 2 : index
    %c0_317 = arith.constant 0 : index
    %c2_318 = arith.constant 2 : index
    %1116 = vector.load %arg8[%c2_316, %c0_317, %c2_318] : memref<4x10x18xf32, #tpu.memory_space<vmem>>, vector<1x8x16xf32>
    %1117 = vector.shape_cast %1116 : vector<1x8x16xf32> to vector<8x16xf32>
    %c20_319 = arith.constant 20 : index
    %1118 = memref.load %arg5[%c20_319] : memref<144xf32, #tpu.memory_space<smem>>
    %1119 = vector.broadcast %1118 : f32 to vector<8x16xf32>
    %1120 = arith.mulf %1117, %1119 : vector<8x16xf32>
    %1121 = arith.addf %1103, %1120 : vector<8x16xf32>
    %c56_320 = arith.constant 56 : index
    %1122 = memref.load %arg5[%c56_320] : memref<144xf32, #tpu.memory_space<smem>>
    %1123 = vector.broadcast %1122 : f32 to vector<8x16xf32>
    %1124 = arith.mulf %1117, %1123 : vector<8x16xf32>
    %1125 = arith.addf %1107, %1124 : vector<8x16xf32>
    %c92_321 = arith.constant 92 : index
    %1126 = memref.load %arg5[%c92_321] : memref<144xf32, #tpu.memory_space<smem>>
    %1127 = vector.broadcast %1126 : f32 to vector<8x16xf32>
    %1128 = arith.mulf %1117, %1127 : vector<8x16xf32>
    %1129 = arith.addf %1111, %1128 : vector<8x16xf32>
    %c128_322 = arith.constant 128 : index
    %1130 = memref.load %arg5[%c128_322] : memref<144xf32, #tpu.memory_space<smem>>
    %1131 = vector.broadcast %1130 : f32 to vector<8x16xf32>
    %1132 = arith.mulf %1117, %1131 : vector<8x16xf32>
    %1133 = arith.addf %1115, %1132 : vector<8x16xf32>
    %c2_323 = arith.constant 2 : index
    %c1_324 = arith.constant 1 : index
    %c0_325 = arith.constant 0 : index
    %1134 = vector.load %arg8[%c2_323, %c1_324, %c0_325] : memref<4x10x18xf32, #tpu.memory_space<vmem>>, vector<1x8x16xf32>
    %1135 = vector.shape_cast %1134 : vector<1x8x16xf32> to vector<8x16xf32>
    %c21_326 = arith.constant 21 : index
    %1136 = memref.load %arg5[%c21_326] : memref<144xf32, #tpu.memory_space<smem>>
    %1137 = vector.broadcast %1136 : f32 to vector<8x16xf32>
    %1138 = arith.mulf %1135, %1137 : vector<8x16xf32>
    %1139 = arith.addf %1121, %1138 : vector<8x16xf32>
    %c57_327 = arith.constant 57 : index
    %1140 = memref.load %arg5[%c57_327] : memref<144xf32, #tpu.memory_space<smem>>
    %1141 = vector.broadcast %1140 : f32 to vector<8x16xf32>
    %1142 = arith.mulf %1135, %1141 : vector<8x16xf32>
    %1143 = arith.addf %1125, %1142 : vector<8x16xf32>
    %c93_328 = arith.constant 93 : index
    %1144 = memref.load %arg5[%c93_328] : memref<144xf32, #tpu.memory_space<smem>>
    %1145 = vector.broadcast %1144 : f32 to vector<8x16xf32>
    %1146 = arith.mulf %1135, %1145 : vector<8x16xf32>
    %1147 = arith.addf %1129, %1146 : vector<8x16xf32>
    %c129_329 = arith.constant 129 : index
    %1148 = memref.load %arg5[%c129_329] : memref<144xf32, #tpu.memory_space<smem>>
    %1149 = vector.broadcast %1148 : f32 to vector<8x16xf32>
    %1150 = arith.mulf %1135, %1149 : vector<8x16xf32>
    %1151 = arith.addf %1133, %1150 : vector<8x16xf32>
    %c2_330 = arith.constant 2 : index
    %c1_331 = arith.constant 1 : index
    %c1_332 = arith.constant 1 : index
    %1152 = vector.load %arg8[%c2_330, %c1_331, %c1_332] : memref<4x10x18xf32, #tpu.memory_space<vmem>>, vector<1x8x16xf32>
    %1153 = vector.shape_cast %1152 : vector<1x8x16xf32> to vector<8x16xf32>
    %c22_333 = arith.constant 22 : index
    %1154 = memref.load %arg5[%c22_333] : memref<144xf32, #tpu.memory_space<smem>>
    %1155 = vector.broadcast %1154 : f32 to vector<8x16xf32>
    %1156 = arith.mulf %1153, %1155 : vector<8x16xf32>
    %1157 = arith.addf %1139, %1156 : vector<8x16xf32>
    %c58_334 = arith.constant 58 : index
    %1158 = memref.load %arg5[%c58_334] : memref<144xf32, #tpu.memory_space<smem>>
    %1159 = vector.broadcast %1158 : f32 to vector<8x16xf32>
    %1160 = arith.mulf %1153, %1159 : vector<8x16xf32>
    %1161 = arith.addf %1143, %1160 : vector<8x16xf32>
    %c94_335 = arith.constant 94 : index
    %1162 = memref.load %arg5[%c94_335] : memref<144xf32, #tpu.memory_space<smem>>
    %1163 = vector.broadcast %1162 : f32 to vector<8x16xf32>
    %1164 = arith.mulf %1153, %1163 : vector<8x16xf32>
    %1165 = arith.addf %1147, %1164 : vector<8x16xf32>
    %c130_336 = arith.constant 130 : index
    %1166 = memref.load %arg5[%c130_336] : memref<144xf32, #tpu.memory_space<smem>>
    %1167 = vector.broadcast %1166 : f32 to vector<8x16xf32>
    %1168 = arith.mulf %1153, %1167 : vector<8x16xf32>
    %1169 = arith.addf %1151, %1168 : vector<8x16xf32>
    %c2_337 = arith.constant 2 : index
    %c1_338 = arith.constant 1 : index
    %c2_339 = arith.constant 2 : index
    %1170 = vector.load %arg8[%c2_337, %c1_338, %c2_339] : memref<4x10x18xf32, #tpu.memory_space<vmem>>, vector<1x8x16xf32>
    %1171 = vector.shape_cast %1170 : vector<1x8x16xf32> to vector<8x16xf32>
    %c23_340 = arith.constant 23 : index
    %1172 = memref.load %arg5[%c23_340] : memref<144xf32, #tpu.memory_space<smem>>
    %1173 = vector.broadcast %1172 : f32 to vector<8x16xf32>
    %1174 = arith.mulf %1171, %1173 : vector<8x16xf32>
    %1175 = arith.addf %1157, %1174 : vector<8x16xf32>
    %c59_341 = arith.constant 59 : index
    %1176 = memref.load %arg5[%c59_341] : memref<144xf32, #tpu.memory_space<smem>>
    %1177 = vector.broadcast %1176 : f32 to vector<8x16xf32>
    %1178 = arith.mulf %1171, %1177 : vector<8x16xf32>
    %1179 = arith.addf %1161, %1178 : vector<8x16xf32>
    %c95_342 = arith.constant 95 : index
    %1180 = memref.load %arg5[%c95_342] : memref<144xf32, #tpu.memory_space<smem>>
    %1181 = vector.broadcast %1180 : f32 to vector<8x16xf32>
    %1182 = arith.mulf %1171, %1181 : vector<8x16xf32>
    %1183 = arith.addf %1165, %1182 : vector<8x16xf32>
    %c131_343 = arith.constant 131 : index
    %1184 = memref.load %arg5[%c131_343] : memref<144xf32, #tpu.memory_space<smem>>
    %1185 = vector.broadcast %1184 : f32 to vector<8x16xf32>
    %1186 = arith.mulf %1171, %1185 : vector<8x16xf32>
    %1187 = arith.addf %1169, %1186 : vector<8x16xf32>
    %c2_344 = arith.constant 2 : index
    %c2_345 = arith.constant 2 : index
    %c0_346 = arith.constant 0 : index
    %1188 = vector.load %arg8[%c2_344, %c2_345, %c0_346] : memref<4x10x18xf32, #tpu.memory_space<vmem>>, vector<1x8x16xf32>
    %1189 = vector.shape_cast %1188 : vector<1x8x16xf32> to vector<8x16xf32>
    %c24_347 = arith.constant 24 : index
    %1190 = memref.load %arg5[%c24_347] : memref<144xf32, #tpu.memory_space<smem>>
    %1191 = vector.broadcast %1190 : f32 to vector<8x16xf32>
    %1192 = arith.mulf %1189, %1191 : vector<8x16xf32>
    %1193 = arith.addf %1175, %1192 : vector<8x16xf32>
    %c60_348 = arith.constant 60 : index
    %1194 = memref.load %arg5[%c60_348] : memref<144xf32, #tpu.memory_space<smem>>
    %1195 = vector.broadcast %1194 : f32 to vector<8x16xf32>
    %1196 = arith.mulf %1189, %1195 : vector<8x16xf32>
    %1197 = arith.addf %1179, %1196 : vector<8x16xf32>
    %c96_349 = arith.constant 96 : index
    %1198 = memref.load %arg5[%c96_349] : memref<144xf32, #tpu.memory_space<smem>>
    %1199 = vector.broadcast %1198 : f32 to vector<8x16xf32>
    %1200 = arith.mulf %1189, %1199 : vector<8x16xf32>
    %1201 = arith.addf %1183, %1200 : vector<8x16xf32>
    %c132_350 = arith.constant 132 : index
    %1202 = memref.load %arg5[%c132_350] : memref<144xf32, #tpu.memory_space<smem>>
    %1203 = vector.broadcast %1202 : f32 to vector<8x16xf32>
    %1204 = arith.mulf %1189, %1203 : vector<8x16xf32>
    %1205 = arith.addf %1187, %1204 : vector<8x16xf32>
    %c2_351 = arith.constant 2 : index
    %c2_352 = arith.constant 2 : index
    %c1_353 = arith.constant 1 : index
    %1206 = vector.load %arg8[%c2_351, %c2_352, %c1_353] : memref<4x10x18xf32, #tpu.memory_space<vmem>>, vector<1x8x16xf32>
    %1207 = vector.shape_cast %1206 : vector<1x8x16xf32> to vector<8x16xf32>
    %c25_354 = arith.constant 25 : index
    %1208 = memref.load %arg5[%c25_354] : memref<144xf32, #tpu.memory_space<smem>>
    %1209 = vector.broadcast %1208 : f32 to vector<8x16xf32>
    %1210 = arith.mulf %1207, %1209 : vector<8x16xf32>
    %1211 = arith.addf %1193, %1210 : vector<8x16xf32>
    %c61_355 = arith.constant 61 : index
    %1212 = memref.load %arg5[%c61_355] : memref<144xf32, #tpu.memory_space<smem>>
    %1213 = vector.broadcast %1212 : f32 to vector<8x16xf32>
    %1214 = arith.mulf %1207, %1213 : vector<8x16xf32>
    %1215 = arith.addf %1197, %1214 : vector<8x16xf32>
    %c97_356 = arith.constant 97 : index
    %1216 = memref.load %arg5[%c97_356] : memref<144xf32, #tpu.memory_space<smem>>
    %1217 = vector.broadcast %1216 : f32 to vector<8x16xf32>
    %1218 = arith.mulf %1207, %1217 : vector<8x16xf32>
    %1219 = arith.addf %1201, %1218 : vector<8x16xf32>
    %c133_357 = arith.constant 133 : index
    %1220 = memref.load %arg5[%c133_357] : memref<144xf32, #tpu.memory_space<smem>>
    %1221 = vector.broadcast %1220 : f32 to vector<8x16xf32>
    %1222 = arith.mulf %1207, %1221 : vector<8x16xf32>
    %1223 = arith.addf %1205, %1222 : vector<8x16xf32>
    %c2_358 = arith.constant 2 : index
    %c2_359 = arith.constant 2 : index
    %c2_360 = arith.constant 2 : index
    %1224 = vector.load %arg8[%c2_358, %c2_359, %c2_360] : memref<4x10x18xf32, #tpu.memory_space<vmem>>, vector<1x8x16xf32>
    %1225 = vector.shape_cast %1224 : vector<1x8x16xf32> to vector<8x16xf32>
    %c26_361 = arith.constant 26 : index
    %1226 = memref.load %arg5[%c26_361] : memref<144xf32, #tpu.memory_space<smem>>
    %1227 = vector.broadcast %1226 : f32 to vector<8x16xf32>
    %1228 = arith.mulf %1225, %1227 : vector<8x16xf32>
    %1229 = arith.addf %1211, %1228 : vector<8x16xf32>
    %c62_362 = arith.constant 62 : index
    %1230 = memref.load %arg5[%c62_362] : memref<144xf32, #tpu.memory_space<smem>>
    %1231 = vector.broadcast %1230 : f32 to vector<8x16xf32>
    %1232 = arith.mulf %1225, %1231 : vector<8x16xf32>
    %1233 = arith.addf %1215, %1232 : vector<8x16xf32>
    %c98_363 = arith.constant 98 : index
    %1234 = memref.load %arg5[%c98_363] : memref<144xf32, #tpu.memory_space<smem>>
    %1235 = vector.broadcast %1234 : f32 to vector<8x16xf32>
    %1236 = arith.mulf %1225, %1235 : vector<8x16xf32>
    %1237 = arith.addf %1219, %1236 : vector<8x16xf32>
    %c134_364 = arith.constant 134 : index
    %1238 = memref.load %arg5[%c134_364] : memref<144xf32, #tpu.memory_space<smem>>
    %1239 = vector.broadcast %1238 : f32 to vector<8x16xf32>
    %1240 = arith.mulf %1225, %1239 : vector<8x16xf32>
    %1241 = arith.addf %1223, %1240 : vector<8x16xf32>
    %c3_365 = arith.constant 3 : index
    %c0_366 = arith.constant 0 : index
    %c0_367 = arith.constant 0 : index
    %1242 = vector.load %arg8[%c3_365, %c0_366, %c0_367] : memref<4x10x18xf32, #tpu.memory_space<vmem>>, vector<1x8x16xf32>
    %1243 = vector.shape_cast %1242 : vector<1x8x16xf32> to vector<8x16xf32>
    %c27_368 = arith.constant 27 : index
    %1244 = memref.load %arg5[%c27_368] : memref<144xf32, #tpu.memory_space<smem>>
    %1245 = vector.broadcast %1244 : f32 to vector<8x16xf32>
    %1246 = arith.mulf %1243, %1245 : vector<8x16xf32>
    %1247 = arith.addf %1229, %1246 : vector<8x16xf32>
    %c63_369 = arith.constant 63 : index
    %1248 = memref.load %arg5[%c63_369] : memref<144xf32, #tpu.memory_space<smem>>
    %1249 = vector.broadcast %1248 : f32 to vector<8x16xf32>
    %1250 = arith.mulf %1243, %1249 : vector<8x16xf32>
    %1251 = arith.addf %1233, %1250 : vector<8x16xf32>
    %c99_370 = arith.constant 99 : index
    %1252 = memref.load %arg5[%c99_370] : memref<144xf32, #tpu.memory_space<smem>>
    %1253 = vector.broadcast %1252 : f32 to vector<8x16xf32>
    %1254 = arith.mulf %1243, %1253 : vector<8x16xf32>
    %1255 = arith.addf %1237, %1254 : vector<8x16xf32>
    %c135_371 = arith.constant 135 : index
    %1256 = memref.load %arg5[%c135_371] : memref<144xf32, #tpu.memory_space<smem>>
    %1257 = vector.broadcast %1256 : f32 to vector<8x16xf32>
    %1258 = arith.mulf %1243, %1257 : vector<8x16xf32>
    %1259 = arith.addf %1241, %1258 : vector<8x16xf32>
    %c3_372 = arith.constant 3 : index
    %c0_373 = arith.constant 0 : index
    %c1_374 = arith.constant 1 : index
    %1260 = vector.load %arg8[%c3_372, %c0_373, %c1_374] : memref<4x10x18xf32, #tpu.memory_space<vmem>>, vector<1x8x16xf32>
    %1261 = vector.shape_cast %1260 : vector<1x8x16xf32> to vector<8x16xf32>
    %c28_375 = arith.constant 28 : index
    %1262 = memref.load %arg5[%c28_375] : memref<144xf32, #tpu.memory_space<smem>>
    %1263 = vector.broadcast %1262 : f32 to vector<8x16xf32>
    %1264 = arith.mulf %1261, %1263 : vector<8x16xf32>
    %1265 = arith.addf %1247, %1264 : vector<8x16xf32>
    %c64_376 = arith.constant 64 : index
    %1266 = memref.load %arg5[%c64_376] : memref<144xf32, #tpu.memory_space<smem>>
    %1267 = vector.broadcast %1266 : f32 to vector<8x16xf32>
    %1268 = arith.mulf %1261, %1267 : vector<8x16xf32>
    %1269 = arith.addf %1251, %1268 : vector<8x16xf32>
    %c100_377 = arith.constant 100 : index
    %1270 = memref.load %arg5[%c100_377] : memref<144xf32, #tpu.memory_space<smem>>
    %1271 = vector.broadcast %1270 : f32 to vector<8x16xf32>
    %1272 = arith.mulf %1261, %1271 : vector<8x16xf32>
    %1273 = arith.addf %1255, %1272 : vector<8x16xf32>
    %c136_378 = arith.constant 136 : index
    %1274 = memref.load %arg5[%c136_378] : memref<144xf32, #tpu.memory_space<smem>>
    %1275 = vector.broadcast %1274 : f32 to vector<8x16xf32>
    %1276 = arith.mulf %1261, %1275 : vector<8x16xf32>
    %1277 = arith.addf %1259, %1276 : vector<8x16xf32>
    %c3_379 = arith.constant 3 : index
    %c0_380 = arith.constant 0 : index
    %c2_381 = arith.constant 2 : index
    %1278 = vector.load %arg8[%c3_379, %c0_380, %c2_381] : memref<4x10x18xf32, #tpu.memory_space<vmem>>, vector<1x8x16xf32>
    %1279 = vector.shape_cast %1278 : vector<1x8x16xf32> to vector<8x16xf32>
    %c29_382 = arith.constant 29 : index
    %1280 = memref.load %arg5[%c29_382] : memref<144xf32, #tpu.memory_space<smem>>
    %1281 = vector.broadcast %1280 : f32 to vector<8x16xf32>
    %1282 = arith.mulf %1279, %1281 : vector<8x16xf32>
    %1283 = arith.addf %1265, %1282 : vector<8x16xf32>
    %c65_383 = arith.constant 65 : index
    %1284 = memref.load %arg5[%c65_383] : memref<144xf32, #tpu.memory_space<smem>>
    %1285 = vector.broadcast %1284 : f32 to vector<8x16xf32>
    %1286 = arith.mulf %1279, %1285 : vector<8x16xf32>
    %1287 = arith.addf %1269, %1286 : vector<8x16xf32>
    %c101_384 = arith.constant 101 : index
    %1288 = memref.load %arg5[%c101_384] : memref<144xf32, #tpu.memory_space<smem>>
    %1289 = vector.broadcast %1288 : f32 to vector<8x16xf32>
    %1290 = arith.mulf %1279, %1289 : vector<8x16xf32>
    %1291 = arith.addf %1273, %1290 : vector<8x16xf32>
    %c137_385 = arith.constant 137 : index
    %1292 = memref.load %arg5[%c137_385] : memref<144xf32, #tpu.memory_space<smem>>
    %1293 = vector.broadcast %1292 : f32 to vector<8x16xf32>
    %1294 = arith.mulf %1279, %1293 : vector<8x16xf32>
    %1295 = arith.addf %1277, %1294 : vector<8x16xf32>
    %c3_386 = arith.constant 3 : index
    %c1_387 = arith.constant 1 : index
    %c0_388 = arith.constant 0 : index
    %1296 = vector.load %arg8[%c3_386, %c1_387, %c0_388] : memref<4x10x18xf32, #tpu.memory_space<vmem>>, vector<1x8x16xf32>
    %1297 = vector.shape_cast %1296 : vector<1x8x16xf32> to vector<8x16xf32>
    %c30_389 = arith.constant 30 : index
    %1298 = memref.load %arg5[%c30_389] : memref<144xf32, #tpu.memory_space<smem>>
    %1299 = vector.broadcast %1298 : f32 to vector<8x16xf32>
    %1300 = arith.mulf %1297, %1299 : vector<8x16xf32>
    %1301 = arith.addf %1283, %1300 : vector<8x16xf32>
    %c66_390 = arith.constant 66 : index
    %1302 = memref.load %arg5[%c66_390] : memref<144xf32, #tpu.memory_space<smem>>
    %1303 = vector.broadcast %1302 : f32 to vector<8x16xf32>
    %1304 = arith.mulf %1297, %1303 : vector<8x16xf32>
    %1305 = arith.addf %1287, %1304 : vector<8x16xf32>
    %c102_391 = arith.constant 102 : index
    %1306 = memref.load %arg5[%c102_391] : memref<144xf32, #tpu.memory_space<smem>>
    %1307 = vector.broadcast %1306 : f32 to vector<8x16xf32>
    %1308 = arith.mulf %1297, %1307 : vector<8x16xf32>
    %1309 = arith.addf %1291, %1308 : vector<8x16xf32>
    %c138_392 = arith.constant 138 : index
    %1310 = memref.load %arg5[%c138_392] : memref<144xf32, #tpu.memory_space<smem>>
    %1311 = vector.broadcast %1310 : f32 to vector<8x16xf32>
    %1312 = arith.mulf %1297, %1311 : vector<8x16xf32>
    %1313 = arith.addf %1295, %1312 : vector<8x16xf32>
    %c3_393 = arith.constant 3 : index
    %c1_394 = arith.constant 1 : index
    %c1_395 = arith.constant 1 : index
    %1314 = vector.load %arg8[%c3_393, %c1_394, %c1_395] : memref<4x10x18xf32, #tpu.memory_space<vmem>>, vector<1x8x16xf32>
    %1315 = vector.shape_cast %1314 : vector<1x8x16xf32> to vector<8x16xf32>
    %c31_396 = arith.constant 31 : index
    %1316 = memref.load %arg5[%c31_396] : memref<144xf32, #tpu.memory_space<smem>>
    %1317 = vector.broadcast %1316 : f32 to vector<8x16xf32>
    %1318 = arith.mulf %1315, %1317 : vector<8x16xf32>
    %1319 = arith.addf %1301, %1318 : vector<8x16xf32>
    %c67_397 = arith.constant 67 : index
    %1320 = memref.load %arg5[%c67_397] : memref<144xf32, #tpu.memory_space<smem>>
    %1321 = vector.broadcast %1320 : f32 to vector<8x16xf32>
    %1322 = arith.mulf %1315, %1321 : vector<8x16xf32>
    %1323 = arith.addf %1305, %1322 : vector<8x16xf32>
    %c103_398 = arith.constant 103 : index
    %1324 = memref.load %arg5[%c103_398] : memref<144xf32, #tpu.memory_space<smem>>
    %1325 = vector.broadcast %1324 : f32 to vector<8x16xf32>
    %1326 = arith.mulf %1315, %1325 : vector<8x16xf32>
    %1327 = arith.addf %1309, %1326 : vector<8x16xf32>
    %c139_399 = arith.constant 139 : index
    %1328 = memref.load %arg5[%c139_399] : memref<144xf32, #tpu.memory_space<smem>>
    %1329 = vector.broadcast %1328 : f32 to vector<8x16xf32>
    %1330 = arith.mulf %1315, %1329 : vector<8x16xf32>
    %1331 = arith.addf %1313, %1330 : vector<8x16xf32>
    %c3_400 = arith.constant 3 : index
    %c1_401 = arith.constant 1 : index
    %c2_402 = arith.constant 2 : index
    %1332 = vector.load %arg8[%c3_400, %c1_401, %c2_402] : memref<4x10x18xf32, #tpu.memory_space<vmem>>, vector<1x8x16xf32>
    %1333 = vector.shape_cast %1332 : vector<1x8x16xf32> to vector<8x16xf32>
    %c32_403 = arith.constant 32 : index
    %1334 = memref.load %arg5[%c32_403] : memref<144xf32, #tpu.memory_space<smem>>
    %1335 = vector.broadcast %1334 : f32 to vector<8x16xf32>
    %1336 = arith.mulf %1333, %1335 : vector<8x16xf32>
    %1337 = arith.addf %1319, %1336 : vector<8x16xf32>
    %c68_404 = arith.constant 68 : index
    %1338 = memref.load %arg5[%c68_404] : memref<144xf32, #tpu.memory_space<smem>>
    %1339 = vector.broadcast %1338 : f32 to vector<8x16xf32>
    %1340 = arith.mulf %1333, %1339 : vector<8x16xf32>
    %1341 = arith.addf %1323, %1340 : vector<8x16xf32>
    %c104_405 = arith.constant 104 : index
    %1342 = memref.load %arg5[%c104_405] : memref<144xf32, #tpu.memory_space<smem>>
    %1343 = vector.broadcast %1342 : f32 to vector<8x16xf32>
    %1344 = arith.mulf %1333, %1343 : vector<8x16xf32>
    %1345 = arith.addf %1327, %1344 : vector<8x16xf32>
    %c140_406 = arith.constant 140 : index
    %1346 = memref.load %arg5[%c140_406] : memref<144xf32, #tpu.memory_space<smem>>
    %1347 = vector.broadcast %1346 : f32 to vector<8x16xf32>
    %1348 = arith.mulf %1333, %1347 : vector<8x16xf32>
    %1349 = arith.addf %1331, %1348 : vector<8x16xf32>
    %c3_407 = arith.constant 3 : index
    %c2_408 = arith.constant 2 : index
    %c0_409 = arith.constant 0 : index
    %1350 = vector.load %arg8[%c3_407, %c2_408, %c0_409] : memref<4x10x18xf32, #tpu.memory_space<vmem>>, vector<1x8x16xf32>
    %1351 = vector.shape_cast %1350 : vector<1x8x16xf32> to vector<8x16xf32>
    %c33_410 = arith.constant 33 : index
    %1352 = memref.load %arg5[%c33_410] : memref<144xf32, #tpu.memory_space<smem>>
    %1353 = vector.broadcast %1352 : f32 to vector<8x16xf32>
    %1354 = arith.mulf %1351, %1353 : vector<8x16xf32>
    %1355 = arith.addf %1337, %1354 : vector<8x16xf32>
    %c69_411 = arith.constant 69 : index
    %1356 = memref.load %arg5[%c69_411] : memref<144xf32, #tpu.memory_space<smem>>
    %1357 = vector.broadcast %1356 : f32 to vector<8x16xf32>
    %1358 = arith.mulf %1351, %1357 : vector<8x16xf32>
    %1359 = arith.addf %1341, %1358 : vector<8x16xf32>
    %c105_412 = arith.constant 105 : index
    %1360 = memref.load %arg5[%c105_412] : memref<144xf32, #tpu.memory_space<smem>>
    %1361 = vector.broadcast %1360 : f32 to vector<8x16xf32>
    %1362 = arith.mulf %1351, %1361 : vector<8x16xf32>
    %1363 = arith.addf %1345, %1362 : vector<8x16xf32>
    %c141_413 = arith.constant 141 : index
    %1364 = memref.load %arg5[%c141_413] : memref<144xf32, #tpu.memory_space<smem>>
    %1365 = vector.broadcast %1364 : f32 to vector<8x16xf32>
    %1366 = arith.mulf %1351, %1365 : vector<8x16xf32>
    %1367 = arith.addf %1349, %1366 : vector<8x16xf32>
    %c3_414 = arith.constant 3 : index
    %c2_415 = arith.constant 2 : index
    %c1_416 = arith.constant 1 : index
    %1368 = vector.load %arg8[%c3_414, %c2_415, %c1_416] : memref<4x10x18xf32, #tpu.memory_space<vmem>>, vector<1x8x16xf32>
    %1369 = vector.shape_cast %1368 : vector<1x8x16xf32> to vector<8x16xf32>
    %c34_417 = arith.constant 34 : index
    %1370 = memref.load %arg5[%c34_417] : memref<144xf32, #tpu.memory_space<smem>>
    %1371 = vector.broadcast %1370 : f32 to vector<8x16xf32>
    %1372 = arith.mulf %1369, %1371 : vector<8x16xf32>
    %1373 = arith.addf %1355, %1372 : vector<8x16xf32>
    %c70_418 = arith.constant 70 : index
    %1374 = memref.load %arg5[%c70_418] : memref<144xf32, #tpu.memory_space<smem>>
    %1375 = vector.broadcast %1374 : f32 to vector<8x16xf32>
    %1376 = arith.mulf %1369, %1375 : vector<8x16xf32>
    %1377 = arith.addf %1359, %1376 : vector<8x16xf32>
    %c106_419 = arith.constant 106 : index
    %1378 = memref.load %arg5[%c106_419] : memref<144xf32, #tpu.memory_space<smem>>
    %1379 = vector.broadcast %1378 : f32 to vector<8x16xf32>
    %1380 = arith.mulf %1369, %1379 : vector<8x16xf32>
    %1381 = arith.addf %1363, %1380 : vector<8x16xf32>
    %c142_420 = arith.constant 142 : index
    %1382 = memref.load %arg5[%c142_420] : memref<144xf32, #tpu.memory_space<smem>>
    %1383 = vector.broadcast %1382 : f32 to vector<8x16xf32>
    %1384 = arith.mulf %1369, %1383 : vector<8x16xf32>
    %1385 = arith.addf %1367, %1384 : vector<8x16xf32>
    %c3_421 = arith.constant 3 : index
    %c2_422 = arith.constant 2 : index
    %c2_423 = arith.constant 2 : index
    %1386 = vector.load %arg8[%c3_421, %c2_422, %c2_423] : memref<4x10x18xf32, #tpu.memory_space<vmem>>, vector<1x8x16xf32>
    %1387 = vector.shape_cast %1386 : vector<1x8x16xf32> to vector<8x16xf32>
    %c35_424 = arith.constant 35 : index
    %1388 = memref.load %arg5[%c35_424] : memref<144xf32, #tpu.memory_space<smem>>
    %1389 = vector.broadcast %1388 : f32 to vector<8x16xf32>
    %1390 = arith.mulf %1387, %1389 : vector<8x16xf32>
    %1391 = arith.addf %1373, %1390 : vector<8x16xf32>
    %c71_425 = arith.constant 71 : index
    %1392 = memref.load %arg5[%c71_425] : memref<144xf32, #tpu.memory_space<smem>>
    %1393 = vector.broadcast %1392 : f32 to vector<8x16xf32>
    %1394 = arith.mulf %1387, %1393 : vector<8x16xf32>
    %1395 = arith.addf %1377, %1394 : vector<8x16xf32>
    %c107_426 = arith.constant 107 : index
    %1396 = memref.load %arg5[%c107_426] : memref<144xf32, #tpu.memory_space<smem>>
    %1397 = vector.broadcast %1396 : f32 to vector<8x16xf32>
    %1398 = arith.mulf %1387, %1397 : vector<8x16xf32>
    %1399 = arith.addf %1381, %1398 : vector<8x16xf32>
    %c143_427 = arith.constant 143 : index
    %1400 = memref.load %arg5[%c143_427] : memref<144xf32, #tpu.memory_space<smem>>
    %1401 = vector.broadcast %1400 : f32 to vector<8x16xf32>
    %1402 = arith.mulf %1387, %1401 : vector<8x16xf32>
    %1403 = arith.addf %1385, %1402 : vector<8x16xf32>
    %c2_i32_428 = arith.constant 2 : i32
    %1404 = arith.addi %1, %c2_i32_428 : i32
    %c0_429 = arith.constant 0 : index
    %c0_430 = arith.constant 0 : index
    %1405 = arith.index_cast %1404 : i32 to index
    %c1_431 = arith.constant 1 : index
    %1406 = vector.load %arg2[%c0_429, %c0_430, %1405, %c1_431] : memref<1x4x20x18xf32, #tpu.memory_space<vmem>>, vector<1x1x8x16xf32>
    %1407 = vector.shape_cast %1406 : vector<1x1x8x16xf32> to vector<8x16xf32>
    %c0_432 = arith.constant 0 : index
    %1408 = memref.load %arg6[%c0_432] : memref<4xf32, #tpu.memory_space<smem>>
    %1409 = vector.broadcast %1408 : f32 to vector<8x16xf32>
    %1410 = arith.addf %1391, %1409 : vector<8x16xf32>
    %1411 = arith.addf %1410, %1407 : vector<8x16xf32>
    %cst_433 = arith.constant 0.000000e+00 : f32
    %1412 = vector.broadcast %cst_433 : f32 to vector<8x16xf32>
    %1413 = arith.maximumf %1411, %1412 : vector<8x16xf32>
    %c0_434 = arith.constant 0 : index
    %c0_435 = arith.constant 0 : index
    %c0_436 = arith.constant 0 : index
    %c0_437 = arith.constant 0 : index
    %1414 = vector.load %arg7[%c0_434, %c0_435, %c0_436, %c0_437] : memref<1x4x8x16xf32, #tpu.memory_space<vmem>>, vector<1x1x8x16xf32>
    %1415 = vector.shape_cast %1414 : vector<1x1x8x16xf32> to vector<8x16xf32>
    %1416 = vector.shape_cast %1413 : vector<8x16xf32> to vector<1x1x8x16xf32>
    tpu.vector_store %arg7[%c0_434, %c0_435, %c0_436, %c0_437], %1416 {strides = array<i32>} : memref<1x4x8x16xf32, #tpu.memory_space<vmem>>, vector<1x1x8x16xf32>,
    %c2_i32_438 = arith.constant 2 : i32
    %1417 = arith.addi %1, %c2_i32_438 : i32
    %c0_439 = arith.constant 0 : index
    %c1_440 = arith.constant 1 : index
    %1418 = arith.index_cast %1417 : i32 to index
    %c1_441 = arith.constant 1 : index
    %1419 = vector.load %arg2[%c0_439, %c1_440, %1418, %c1_441] : memref<1x4x20x18xf32, #tpu.memory_space<vmem>>, vector<1x1x8x16xf32>
    %1420 = vector.shape_cast %1419 : vector<1x1x8x16xf32> to vector<8x16xf32>
    %c1_442 = arith.constant 1 : index
    %1421 = memref.load %arg6[%c1_442] : memref<4xf32, #tpu.memory_space<smem>>
    %1422 = vector.broadcast %1421 : f32 to vector<8x16xf32>
    %1423 = arith.addf %1395, %1422 : vector<8x16xf32>
    %1424 = arith.addf %1423, %1420 : vector<8x16xf32>
    %cst_443 = arith.constant 0.000000e+00 : f32
    %1425 = vector.broadcast %cst_443 : f32 to vector<8x16xf32>
    %1426 = arith.maximumf %1424, %1425 : vector<8x16xf32>
    %c0_444 = arith.constant 0 : index
    %c1_445 = arith.constant 1 : index
    %c0_446 = arith.constant 0 : index
    %c0_447 = arith.constant 0 : index
    %1427 = vector.load %arg7[%c0_444, %c1_445, %c0_446, %c0_447] : memref<1x4x8x16xf32, #tpu.memory_space<vmem>>, vector<1x1x8x16xf32>
    %1428 = vector.shape_cast %1427 : vector<1x1x8x16xf32> to vector<8x16xf32>
    %1429 = vector.shape_cast %1426 : vector<8x16xf32> to vector<1x1x8x16xf32>
    tpu.vector_store %arg7[%c0_444, %c1_445, %c0_446, %c0_447], %1429 {strides = array<i32>} : memref<1x4x8x16xf32, #tpu.memory_space<vmem>>, vector<1x1x8x16xf32>,
    %c2_i32_448 = arith.constant 2 : i32
    %1430 = arith.addi %1, %c2_i32_448 : i32
    %c0_449 = arith.constant 0 : index
    %c2_450 = arith.constant 2 : index
    %1431 = arith.index_cast %1430 : i32 to index
    %c1_451 = arith.constant 1 : index
    %1432 = vector.load %arg2[%c0_449, %c2_450, %1431, %c1_451] : memref<1x4x20x18xf32, #tpu.memory_space<vmem>>, vector<1x1x8x16xf32>
    %1433 = vector.shape_cast %1432 : vector<1x1x8x16xf32> to vector<8x16xf32>
    %c2_452 = arith.constant 2 : index
    %1434 = memref.load %arg6[%c2_452] : memref<4xf32, #tpu.memory_space<smem>>
    %1435 = vector.broadcast %1434 : f32 to vector<8x16xf32>
    %1436 = arith.addf %1399, %1435 : vector<8x16xf32>
    %1437 = arith.addf %1436, %1433 : vector<8x16xf32>
    %cst_453 = arith.constant 0.000000e+00 : f32
    %1438 = vector.broadcast %cst_453 : f32 to vector<8x16xf32>
    %1439 = arith.maximumf %1437, %1438 : vector<8x16xf32>
    %c0_454 = arith.constant 0 : index
    %c2_455 = arith.constant 2 : index
    %c0_456 = arith.constant 0 : index
    %c0_457 = arith.constant 0 : index
    %1440 = vector.load %arg7[%c0_454, %c2_455, %c0_456, %c0_457] : memref<1x4x8x16xf32, #tpu.memory_space<vmem>>, vector<1x1x8x16xf32>
    %1441 = vector.shape_cast %1440 : vector<1x1x8x16xf32> to vector<8x16xf32>
    %1442 = vector.shape_cast %1439 : vector<8x16xf32> to vector<1x1x8x16xf32>
    tpu.vector_store %arg7[%c0_454, %c2_455, %c0_456, %c0_457], %1442 {strides = array<i32>} : memref<1x4x8x16xf32, #tpu.memory_space<vmem>>, vector<1x1x8x16xf32>,
    %c2_i32_458 = arith.constant 2 : i32
    %1443 = arith.addi %1, %c2_i32_458 : i32
    %c0_459 = arith.constant 0 : index
    %c3_460 = arith.constant 3 : index
    %1444 = arith.index_cast %1443 : i32 to index
    %c1_461 = arith.constant 1 : index
    %1445 = vector.load %arg2[%c0_459, %c3_460, %1444, %c1_461] : memref<1x4x20x18xf32, #tpu.memory_space<vmem>>, vector<1x1x8x16xf32>
    %1446 = vector.shape_cast %1445 : vector<1x1x8x16xf32> to vector<8x16xf32>
    %c3_462 = arith.constant 3 : index
    %1447 = memref.load %arg6[%c3_462] : memref<4xf32, #tpu.memory_space<smem>>
    %1448 = vector.broadcast %1447 : f32 to vector<8x16xf32>
    %1449 = arith.addf %1403, %1448 : vector<8x16xf32>
    %1450 = arith.addf %1449, %1446 : vector<8x16xf32>
    %cst_463 = arith.constant 0.000000e+00 : f32
    %1451 = vector.broadcast %cst_463 : f32 to vector<8x16xf32>
    %1452 = arith.maximumf %1450, %1451 : vector<8x16xf32>
    %c0_464 = arith.constant 0 : index
    %c3_465 = arith.constant 3 : index
    %c0_466 = arith.constant 0 : index
    %c0_467 = arith.constant 0 : index
    %1453 = vector.load %arg7[%c0_464, %c3_465, %c0_466, %c0_467] : memref<1x4x8x16xf32, #tpu.memory_space<vmem>>, vector<1x1x8x16xf32>
    %1454 = vector.shape_cast %1453 : vector<1x1x8x16xf32> to vector<8x16xf32>
    %1455 = vector.shape_cast %1452 : vector<8x16xf32> to vector<1x1x8x16xf32>
    tpu.vector_store %arg7[%c0_464, %c3_465, %c0_466, %c0_467], %1455 {strides = array<i32>} : memref<1x4x8x16xf32, #tpu.memory_space<vmem>>, vector<1x1x8x16xf32>,
    return
  }
  func.func @transform_0(%arg0: i32, %arg1: i32) -> (i32, i32, i32, i32) {
    %c0_i32 = arith.constant 0 : i32
    %c0_i32_0 = arith.constant 0 : i32
    %c0_i32_1 = arith.constant 0 : i32
    %c0_i32_2 = arith.constant 0 : i32
    return %arg0, %c0_i32, %c0_i32_0, %c0_i32_1 : i32, i32, i32, i32
  }
  func.func @transform_1(%arg0: i32, %arg1: i32) -> i32 {
    %c0_i32 = arith.constant 0 : i32
    %c0_i32_0 = arith.constant 0 : i32
    return %c0_i32 : i32
  }
  func.func @transform_2(%arg0: i32, %arg1: i32) -> i32 {
    %c0_i32 = arith.constant 0 : i32
    %c0_i32_0 = arith.constant 0 : i32
    return %c0_i32 : i32
  }
  func.func @transform_3(%arg0: i32, %arg1: i32) -> i32 {
    %c0_i32 = arith.constant 0 : i32
    %c0_i32_0 = arith.constant 0 : i32
    return %c0_i32 : i32
  }
  func.func @transform_4(%arg0: i32, %arg1: i32) -> i32 {
    %c0_i32 = arith.constant 0 : i32
    %c0_i32_0 = arith.constant 0 : i32
    return %c0_i32 : i32
  }
  func.func @transform_5(%arg0: i32, %arg1: i32) -> (i32, i32, i32, i32) {
    %c0_i32 = arith.constant 0 : i32
    %c0_i32_0 = arith.constant 0 : i32
    %c0_i32_1 = arith.constant 0 : i32
    return %arg0, %c0_i32, %arg1, %c0_i32_0 : i32, i32, i32, i32
  }
}

</mosaic_0001>

<bundles_post_ra>
// kernel: tpu_custom_call.1
= control target key start
LH: loop header
LB: loop body
LE: loop exit
PB: predicated region body
PF: predicated region fallthrough
CT: control target
= control target key end

     0   :  { %s5932_s0 = inlined_call_operand.vmem [shape: f32[2,4,20,18], index: 0, kind: input, shape index: {}]   ;;  %s5933_s1 = inlined_call_operand.vmem [shape: f32[144], index: 1, kind: input, shape index: {}]   ;;  %s5934_s2 = inlined_call_operand.vmem [shape: f32[4], index: 2, kind: input, shape index: {}]   ;;  %s5935_s3 = inlined_call_operand.vmem [shape: f32[144], index: 3, kind: input, shape index: {}]   ;;  %s5936_s4 = inlined_call_operand.vmem [shape: f32[4], index: 4, kind: input, shape index: {}]   ;;  %s5937_s5 = inlined_call_operand.hbm [shape: f32[2,4,16,16], index: 5, kind: output, shape index: {}]  }
   0x1   :  { %5957 = sst [smem:[#allocation37_spill]] %s5932_s0 }
   0x2   :  { %5958 = sst [smem:[#allocation38_spill]] %s5933_s1 }
   0x3   :  { %5959 = sst [smem:[#allocation39_spill]] %s5934_s2 }
   0x4   :  { %5960 = sst [smem:[#allocation40_spill]] %s5935_s3 }
   0x5   :  { %10 = vsyncpa [#allocation5], 0 }
   0x6   :  { %11 = vsyncpa [#allocation7], 0 }
   0x7   :  { %12 = vsyncpa [#allocation10], 0 }
   0x8   :  { %13 = vsyncpa [#allocation4], 0 }
   0x9   :  { %15 = vsyncpa [#allocation4 + $0x1], 0  ;;  %s4022_s18 = smov 0   ;;  %s4024_s19 = smov 0  }
   0xa   :  { %s4026_s20 = smov 0   ;;  %s4028_s21 = smov 0  }
   0xb   :  { %s4030_s22 = smov 0   ;;  %s4032_s23 = smov 0  }
   0xc   :  { %s4034_s24 = smov 0   ;;  %s4036_s25 = smov 0  }
   0xd LB: > { %s3338_s26 = sadd.s32 4294967295, %s3978_s25   ;;  %s3339_s27 = sadd.s32 4294967294, %s3978_s25   ;;  %s3978_s25 = sphi %s4036_s25, %s21_s25   ;;  %s3974_s24 = sphi %s4034_s24, %s6027_s24   ;;  %s3970_s23 = sphi %s4032_s23, %s6026_s23   ;;  %s3966_s22 = sphi %s4030_s22, %s6025_s22   ;;  %s3962_s21 = sphi %s4028_s21, %s6024_s21   ;;  %s3958_s20 = sphi %s4026_s20, %s6023_s20   ;;  %s3954_s19 = sphi %s4024_s19, %s6022_s19   ;;  %s3950_s18 = sphi %s4022_s18, %s6021_s18  }
   0xe   : > { %s30_s28 = sadd.s32 1, %s3970_s23  ;;  %s33_s29 = sadd.s32 1, %s3974_s24 }
   0xf   : > { %p31_p0 = scmp.ge.s32.totalorder %s30_s28, 2  ;;  %s152_s30 = sadd.s32 1, %s3958_s20 }
  0x10   : > { %p162_p1 = scmp.ne.s32.totalorder %s3958_s20, %s3954_s19  ;;  %p163_p2 = scmp.eq.s32.totalorder %s3338_s26, 3 }
  0x11   : > { %s6029_s28 = smov (%p31_p0, %s30_s28), 0  ;;  %s6031_s29 = smov (!%p31_p0, %s33_s29), %s3974_s24 }
  0x12   : > { %s148_s6 = ssub.s32 %s3970_s23, %s6029_s28  ;;  %p4074_p3 = por %p163_p2, %p162_p1 }
  0x13   : > { %p35_p4 = scmp.ge.s32.totalorder %s6031_s29, 2  ;;  %p168_p5 = scmp.ne.s32.totalorder %s3954_s19, %s3950_s18 }
  0x14   : > { %s5961_s7 = scalar_select %p4074_p3, 1, 0 }
  0x15   : > { %p169_p6 = scmp.eq.s32.totalorder %s3339_s27, 3  ;;  %p3340_p7 = scmp.ge.s32.totalorder %s3978_s25, 1 }
  0x16   : > { %s6033_s29 = smov (%p35_p4, %s6031_s29), 0  ;;  %p176_p9 = scmp.lt.s32.totalorder %s3978_s25, 5 }
  0x17   : > { %p4083_p8 = por %p169_p6, %p168_p5  ;;  %s147_s9 = ssub.s32 %s3974_s24, %s6033_s29 }
  0x18   : > { %s149_s10 = sor.u32 %s148_s6, %s147_s9  ;;  %p4090_p10 = pnand %p3340_p7, %p176_p9 }
  0x19   : > { %s5962_s8 = scalar_select %p4083_p8, 1, 0 }
  0x1a   : > { %s5963_s11 = scalar_select %p4090_p10, 1, 0 }
  0x1b   : > { %p150_p11 = scmp.eq.s32.totalorder %s149_s10, 0  ;;  %p4094_p12 = scmp.eq.s32.totalorder %s3338_s26, 0 }
  0x1c   : > { %p3712_p13 = pneg %p4090_p10  ;;  %s5965_s2 = sld [smem:[#allocation39_spill]] }
  0x1d   : > { %s5964_s12 = scalar_select %p4094_p12, 1, 0 }
  0x1e   : > { %s4104_s16 = scalar_select %p150_p11, %s3958_s20, %s152_s30  }
  0x1f   : > { %p4108_p0 = pnand %p4094_p12, %p3712_p13 }
  0x21   : > { %p3816_p2 = pneg %p4108_p0 }
  0x22   : > { %s200_s15 = sshll.u32 %s5965_s2, 4  ;;  %s201_s15 = int_to_ptr.vmem [resolvable:$true] %s200_s15 }
  0x23   : > { %s3814_s26 = scalar_lea.vmem %s201_s15, 16  ;;  %p3822_p6 = scmp.lt.s32.totalorder %s201_s15, %s201_s15 }
  0x24   : > { %p3815_p1 = scmp.ne.s32.totalorder %s201_s15, %s3814_s26  ;;  %p3823_p7 = scmp.lt.s32.totalorder %s3814_s26, %s3814_s26 }
  0x26   : > { %p3817_p4 = pnand %p3816_p2, %p3815_p1  ;;  %p3824_p9 = por %p3823_p7, %p3822_p6 }
  0x28   : > { %p3818_p5 = pneg %p3817_p4 }
  0x2a   : > { %p3825_p11 = pnand %p3824_p9, %p3818_p5 }
  0x2c   : > { %3828 = shalt.err (!%p3825_p11)
}
  0x2d   : > { %s3980_s27 = smov [#allocation6]   ;;  %s5967_s1 = sld [smem:[#allocation38_spill]] }
  0x2e   : > { %3718 = dma.vmem_to_smem (!%p4108_p0), %s201_s15, 16, %s3980_s27, [#allocation7]  }
  0x2f   : > { %s5968_s3 = sld [smem:[#allocation40_spill]] }
  0x33   : > { %s189_s9 = sshll.u32 %s5967_s1, 4  ;;  %s190_s9 = int_to_ptr.vmem [resolvable:$true] %s189_s9 }
  0x34   : > { %s3829_s2 = scalar_lea.vmem %s190_s9, 32  ;;  %p3837_p5 = scmp.lt.s32.totalorder %s190_s9, %s190_s9 }
  0x35   : > { %s211_s14 = sshll.u32 %s5968_s3, 4  ;;  %p3830_p13 = scmp.ne.s32.totalorder %s190_s9, %s3829_s2  ;;  %s212_s14 = int_to_ptr.vmem [resolvable:$true] %s211_s14 }
  0x36   : > { %p3838_p6 = scmp.lt.s32.totalorder %s3829_s2, %s3829_s2 }
  0x37   : > { %p3832_p1 = pnand %p3830_p13, %p3816_p2 }
  0x38   : > { %p3839_p7 = por %p3838_p6, %p3837_p5 }
  0x39   : > { %p3833_p4 = pneg %p3832_p1 }
  0x3b   : > { %p3840_p9 = pnand %p3839_p7, %p3833_p4 }
  0x3d   : > { %3843 = shalt.err (!%p3840_p9)
}
  0x3e   : > { %s3981_s15 = smov [#allocation3]   ;;  %s3844_s26 = scalar_lea.vmem %s212_s14, 32 }
  0x3f   : > { %3715 = dma.vmem_to_smem (!%p4108_p0), %s190_s9, 32, %s3981_s15, [#allocation5]  }
  0x40   : > { %p3845_p11 = scmp.ne.s32.totalorder %s212_s14, %s3844_s26  ;;  %p3852_p12 = scmp.lt.s32.totalorder %s212_s14, %s212_s14 }
  0x41   : > { %p3853_p13 = scmp.lt.s32.totalorder %s3844_s26, %s3844_s26 }
  0x42   : > { %p3847_p8 = pnand %p3845_p11, %p3816_p2 }
  0x43   : > { %p3854_p1 = por %p3853_p13, %p3852_p12 }
  0x44   : > { %p3848_p3 = pneg %p3847_p8 }
  0x46   : > { %p3855_p10 = pnand %p3854_p1, %p3848_p3 }
  0x48   : > { %3858 = shalt.err (!%p3855_p10)
}
  0x49   : > { %s3982_s2 = smov [#allocation8]   ;;  %s222_s6 = sshll.u32 %s5936_s4, 4  ;;  %s223_s6 = int_to_ptr.vmem [resolvable:$true] %s222_s6 }
  0x4a   : > { %3721 = dma.vmem_to_smem (!%p4108_p0), %s212_s14, 32, %s3982_s2, [#allocation7]  }
  0x4b   : > { %s3859_s9 = scalar_lea.vmem %s223_s6, 16  ;;  %p3867_p6 = scmp.lt.s32.totalorder %s223_s6, %s223_s6 }
  0x4c   : > { %p3860_p4 = scmp.ne.s32.totalorder %s223_s6, %s3859_s9  ;;  %p3868_p12 = scmp.lt.s32.totalorder %s3859_s9, %s3859_s9 }
  0x4e   : > { %p3862_p8 = pnand %p3860_p4, %p3816_p2  ;;  %p3869_p3 = por %p3868_p12, %p3867_p6 }
  0x50   : > { %p3863_p5 = pneg %p3862_p8 }
  0x52   : > { %p3870_p10 = pnand %p3869_p3, %p3863_p5 }
  0x54   : > { %3873 = shalt.err (!%p3870_p10)
}
  0x55   : > { %s3983_s10 = smov [#allocation9]   ;;  %p5969_p7 = scmp.ne.s32.totalorder %s5963_s11, 0 }
  0x56   : > { %3724 = dma.vmem_to_smem (!%p4108_p0), %s223_s6, 16, %s3983_s10, [#allocation10]  }
  0x57   : > { %243 = sbr.rel (%p5969_p7) target bundleno = 1328 (0x530), region = 40 }
  0x5c   : > { %p5970_p9 = scmp.ne.s32.totalorder %s5964_s12, 0 }
  0x5e   : > { %3933 = dma.done.wait (%p5970_p9), [#allocation5], 32  }
  0x5f   : > { %3935 = vsyncadd (%p5970_p9), [#allocation5], 4294967264 }
  0x60   : > { %3937 = dma.done.wait (%p5970_p9), [#allocation7], 48  }
  0x61   : > { %3939 = vsyncadd (%p5970_p9), [#allocation7], 4294967248 }
  0x62   : > { %3941 = dma.done.wait (%p5970_p9), [#allocation10], 16  }
  0x63   : > { %3943 = vsyncadd (%p5970_p9), [#allocation10], 4294967280 }
  0x64   : > { %261 = sfence }
  0x65   : > { %p284_p0 = scmp.lt.s32.totalorder %s3966_s22, 1  ;;  %s3358_s11 = sld [smem:[#allocation3 + $0x25]]  ;;  %vm1977_vm0 = vcmask 132104   ;;  %vm1975_vm1 = vcmask 138248  }
  0x66   : > { %s3353_s13 = sshll.u32 %s3962_s21, 3  ;;  %s3357_s14 = sld [smem:[#allocation3 + $0x1]] }
  0x67   : > { %s285_s17 = scalar_select %p284_p0, %s3966_s22, 1 }
  0x68   : > { %s3359_s26 = sld [smem:[#allocation3 + $0x49]]  ;;  %s5946_s9 = smov 127  }
  0x69   : > { %s3693_s15 = smul.u32 96, %s285_s17  ;;  %s5971_s0 = sld [smem:[#allocation37_spill]] }
  0x6a   : > { %s3360_s12 = sld [smem:[#allocation3 + $0x6d]]  ;;  %p3533_p2 = scmp.ne.s32.totalorder %s3962_s21, 0 }
  0x6b   : > { %v324_v0 = vstv %s3358_s11  ;;  %s3361_s10 = sld [smem:[#allocation3 + $0x2]] }
  0x6c   : > { %v310_v4 = vstv %s3357_s14  ;;  %s3362_s11 = sld [smem:[#allocation3 + $0x26]]  ;;  %s5953_s14 = smov 126  }
  0x6d   : > { %s3363_s17 = sld [smem:[#allocation3 + $0x4a]] }
  0x6e   : > { %v338_v8 = vstv %s3359_s26  ;;  %s3373_s26 = sld [smem:[#allocation3 + $0x28]] }
  0x6f   : > { %s288_s30 = scalar_lea.vmem %s5971_s0, %s3693_s15  ;;  %s3372_s15 = sld [smem:[#allocation3 + $0x4]] }
  0x70   : > { %s4163_s6 = scalar_lea.vmem %s288_s30, %s3353_s13  ;;  %v352_v11 = vstv %s3360_s12  ;;  %s3364_s13 = sld [smem:[#allocation3 + $0x6e]] }
  0x71   : > { %v4166_v1 = vld [vmem:[%s4163_s6] sm:$0xff]  ;;  %v4169_v2 = vld [vmem:[%s4163_s6 + $0x8] sm:$0x3]  ;;  %v366_v14 = vstv %s3361_s10  ;;  %s3374_s2 = sld [smem:[#allocation3 + $0x4c]]  ;;  %v4240_v52 = vld [vmem:[%s4163_s6 + $0xa] sm:$0x3] }
  0x72   : > { %v325_v3 = vmul.f32 %v324_v0, %v4166_v1  ;;  %v311_v5 = vmul.f32 %v310_v4, %v4166_v1  ;;  %v326_v6 = vmul.f32 %v324_v0, %v4169_v2  ;;  %v312_v7 = vmul.f32 %v310_v4, %v4169_v2  ;;  %v4202_v26 = vld [vmem:[%s4163_s6 + $0x9] sm:$0x3]  ;;  %v4205_v28 = vld [vmem:[%s4163_s6 + $0x1] sm:$0xff]  ;;  %s3375_s27 = sld [smem:[#allocation3 + $0x70]]  ;;  %s5988_s0 = smov 127  }
  0x73   : > { %v340_v9 = vmul.f32 %v338_v8, %v4169_v2  ;;  %v339_v10 = vmul.f32 %v338_v8, %v4166_v1  ;;  %v354_v12 = vmul.f32 %v352_v11, %v4169_v2  ;;  %v353_v13 = vmul.f32 %v352_v11, %v4166_v1  ;;  %s3376_s30 = sld [smem:[#allocation3 + $0x5]]  ;;  %v4243_v54 = vld [vmem:[%s4163_s6 + $0x2] sm:$0xff] }
  0x74   : > { %329 = vrot.lane.b32.xlu1 %v325_v3, %s5946_s9  ;;  %315 = vrot.lane.b32.xlu0 %v311_v5, %s5946_s9  ;;  %v368_v15 = vmul.f32 %v366_v14, %v4169_v2  ;;  %v367_v16 = vmul.f32 %v366_v14, %v4166_v1  ;;  %v380_v17 = vstv %s3362_s11  ;;  %v394_v20 = vstv %s3363_s17  ;;  %s3377_s12 = sld [smem:[#allocation3 + $0x29]] }
  0x75   : > { %v382_v18 = vmul.f32 %v380_v17, %v4169_v2  ;;  %v381_v19 = vmul.f32 %v380_v17, %v4166_v1  ;;  %v396_v21 = vmul.f32 %v394_v20, %v4169_v2  ;;  %v395_v22 = vmul.f32 %v394_v20, %v4166_v1  ;;  %s3378_s10 = sld [smem:[#allocation3 + $0x4d]] }
  0x76   : > { %v408_v23 = vstv %s3364_s13  ;;  %v450_v27 = vstv %s3372_s15  ;;  %v464_v31 = vstv %s3373_s26  ;;  %s3379_s11 = sld [smem:[#allocation3 + $0x71]] }
  0x77   : > { %v410_v24 = vmul.f32 %v408_v23, %v4169_v2  ;;  %v409_v25 = vmul.f32 %v408_v23, %v4166_v1  ;;  %v452_v29 = vmul.f32 %v4202_v26, %v450_v27  ;;  %v451_v30 = vmul.f32 %v4205_v28, %v450_v27  ;;  %s3387_s17 = sld [smem:[#allocation3 + $0x7]] }
  0x78   : > { %331 = vrot.lane.b32.xlu1 %v326_v6, %s5946_s9  ;;  %317 = vrot.lane.b32.xlu0 %v312_v7, %s5946_s9  ;;  %v466_v32 = vmul.f32 %v4202_v26, %v464_v31  ;;  %v465_v33 = vmul.f32 %v4205_v28, %v464_v31  ;;  %v478_v34 = vstv %s3374_s2  ;;  %v492_v37 = vstv %s3375_s27  ;;  %s3388_s13 = sld [smem:[#allocation3 + $0x2b]] }
  0x79   : > { %v480_v35 = vmul.f32 %v4202_v26, %v478_v34  ;;  %v479_v36 = vmul.f32 %v4205_v28, %v478_v34  ;;  %v494_v38 = vmul.f32 %v4202_v26, %v492_v37  ;;  %v493_v39 = vmul.f32 %v4205_v28, %v492_v37  ;;  %s3389_s15 = sld [smem:[#allocation3 + $0x4f]] }
  0x7a   : > { %v506_v40 = vstv %s3376_s30  ;;  %v520_v43 = vstv %s3377_s12  ;;  %s3390_s26 = sld [smem:[#allocation3 + $0x73]] }
  0x7b   : > { %v508_v41 = vmul.f32 %v4202_v26, %v506_v40  ;;  %v507_v42 = vmul.f32 %v4205_v28, %v506_v40  ;;  %v522_v44 = vmul.f32 %v4202_v26, %v520_v43  ;;  %v521_v45 = vmul.f32 %v4205_v28, %v520_v43  ;;  %s3391_s2 = sld [smem:[#allocation3 + $0x8]] }
  0x7c   : > { %345 = vrot.lane.b32.xlu1 %v340_v9, %s5946_s9  ;;  %343 = vrot.lane.b32.xlu0 %v339_v10, %s5946_s9  ;;  %v534_v46 = vstv %s3378_s10  ;;  %v548_v49 = vstv %s3379_s11  ;;  %s3392_s27 = sld [smem:[#allocation3 + $0x2c]] }
  0x7d   : > { %v536_v47 = vmul.f32 %v4202_v26, %v534_v46  ;;  %v535_v48 = vmul.f32 %v4205_v28, %v534_v46  ;;  %v550_v50 = vmul.f32 %v4202_v26, %v548_v49  ;;  %v549_v51 = vmul.f32 %v4205_v28, %v548_v49  ;;  %s3393_s30 = sld [smem:[#allocation3 + $0x50]] }
  0x7e   : > { %v590_v53 = vstv %s3387_s17  ;;  %v604_v57 = vstv %s3388_s13  ;;  %s3394_s12 = sld [smem:[#allocation3 + $0x74]] }
  0x7f   : > { %v592_v55 = vmul.f32 %v4240_v52, %v590_v53  ;;  %v591_v56 = vmul.f32 %v4243_v54, %v590_v53  ;;  %v606_v58 = vmul.f32 %v4240_v52, %v604_v57  ;;  %v605_v59 = vmul.f32 %v4243_v54, %v604_v57  ;;  %s3402_s10 = sld [smem:[#allocation3 + $0xa]] }
  0x80   : > { %359 = vrot.lane.b32.xlu1 %v354_v12, %s5946_s9  ;;  %357 = vrot.lane.b32.xlu0 %v353_v13, %s5946_s9  ;;  %v618_v60 = vstv %s3389_s15  ;;  %v632_v63 = vstv %s3390_s26  ;;  %s3403_s11 = sld [smem:[#allocation3 + $0x2e]] }
  0x81   : > { %v620_v61 = vmul.f32 %v4240_v52, %v618_v60  ;;  %v619_v62 = vmul.f32 %v4243_v54, %v618_v60  ;;  %v634_v0 = vmul.f32 %v4240_v52, %v632_v63  ;;  %v633_v3 = vmul.f32 %v4243_v54, %v632_v63  ;;  %s3404_s17 = sld [smem:[#allocation3 + $0x52]] }
  0x82   : > { %v646_v4 = vstv %s3391_s2  ;;  %v660_v7 = vstv %s3392_s27  ;;  %s3405_s13 = sld [smem:[#allocation3 + $0x76]] }
  0x83   : > { %v648_v5 = vmul.f32 %v4240_v52, %v646_v4  ;;  %v647_v6 = vmul.f32 %v4243_v54, %v646_v4  ;;  %v662_v8 = vmul.f32 %v4240_v52, %v660_v7  ;;  %v661_v9 = vmul.f32 %v4243_v54, %v660_v7  ;;  %s3406_s15 = sld [smem:[#allocation3 + $0xb]] }
  0x84   : > { %373 = vrot.lane.b32.xlu1 %v368_v15, %s5953_s14  ;;  %371 = vrot.lane.b32.xlu0 %v367_v16, %s5953_s14  ;;  %v674_v10 = vstv %s3393_s30  ;;  %v688_v13 = vstv %s3394_s12  ;;  %s3407_s26 = sld [smem:[#allocation3 + $0x2f]] }
  0x85   : > { %v676_v11 = vmul.f32 %v4240_v52, %v674_v10  ;;  %v675_v12 = vmul.f32 %v4243_v54, %v674_v10  ;;  %v690_v14 = vmul.f32 %v4240_v52, %v688_v13  ;;  %v689_v15 = vmul.f32 %v4243_v54, %v688_v13  ;;  %v4278_v16 = vld [vmem:[%s4163_s6 + $0x20] sm:$0x3]  ;;  %s3408_s2 = sld [smem:[#allocation3 + $0x53]] }
  0x86   : > { %v730_v17 = vstv %s3402_s10  ;;  %s3409_s27 = sld [smem:[#allocation3 + $0x77]] }
  0x87   : > { %s4307_s30 = sld [smem:[#allocation3 + $0xd]] }
  0x88   : > { %387 = vrot.lane.b32.xlu1 %v382_v18, %s5953_s14  ;;  %385 = vrot.lane.b32.xlu0 %v381_v19, %s5953_s14  ;;  %v4281_v18 = vld [vmem:[%s4163_s6 + $0x18] sm:$0xff]  ;;  %v732_v19 = vmul.f32 %v4278_v16, %v730_v17  ;;  %s4311_s12 = sld [smem:[#allocation3]] }
  0x89   : > { %v731_v20 = vmul.f32 %v4281_v18, %v730_v17  ;;  %s4317_s10 = sld [smem:[#allocation3 + $0x31]] }
  0x8c   : > { %401 = vrot.lane.b32.xlu1 %v396_v21, %s5953_s14  ;;  %399 = vrot.lane.b32.xlu0 %v395_v22, %s5953_s14  ;;  %v744_v21 = vstv %s3403_s11  ;;  %v828_v43 = vstv %s3409_s27  ;;  %s4319_s11 = sld [smem:[#allocation3 + $0x3]] }
  0x8d   : > { %v746_v22 = vmul.f32 %v4278_v16, %v744_v21  ;;  %v745_v23 = vmul.f32 %v4281_v18, %v744_v21  ;;  %v830_v46 = vmul.f32 %v4278_v16, %v828_v43  ;;  %v870_v49 = vstv %s4307_s30  ;;  %s4353_s27 = sld [smem:[#allocation3 + $0x79]] }
  0x8e   : > { %v294_v53 = vstv %s4311_s12  ;;  %s4359_s30 = sld [smem:[#allocation3 + $0x4b]] }
  0x8f   : > { %v296_v57 = vmul.f32 %v294_v53, %v4169_v2  ;;  %v295_v60 = vmul.f32 %v294_v53, %v4166_v1  ;;  %s4371_s12 = sld [smem:[#allocation3 + $0xe]] }
  0x90   : > { %415 = vrot.lane.b32.xlu1 %v410_v24, %s5953_s14  ;;  %413 = vrot.lane.b32.xlu0 %v409_v25, %s5953_s14  ;;  %v758_v24 = vstv %s3404_s17  ;;  %s4321_s17 = sld [smem:[#allocation3 + $0x24]] }
  0x91   : > { %v760_v25 = vmul.f32 %v4278_v16, %v758_v24  ;;  %v759_v27 = vmul.f32 %v4281_v18, %v758_v24 }
  0x94   : > { %457 = vrot.lane.b32.xlu1 %v452_v29, %s5946_s9  ;;  %455 = vrot.lane.b32.xlu0 %v451_v30, %s5946_s9  ;;  %v772_v29 = vstv %s3405_s13  ;;  %s4324_s13 = sld [smem:[#allocation3 + $0x48]] }
  0x95   : > { %v774_v30 = vmul.f32 %v4278_v16, %v772_v29  ;;  %v773_v31 = vmul.f32 %v4281_v18, %v772_v29 }
  0x96   : > { %v298_v63 = vstv %s4321_s17  ;;  %s4407_s17 = sld [smem:[#allocation3 + $0x56]] }
  0x97   : > { %v299_v10 = vmul.f32 %v298_v63, %v4166_v1 }
  0x98   : > { %471 = vrot.lane.b32.xlu1 %v466_v32, %s5946_s9  ;;  %469 = vrot.lane.b32.xlu0 %v465_v33, %s5946_s9  ;;  %v786_v32 = vstv %s3406_s15  ;;  %s4333_s15 = sld [smem:[#allocation3 + $0x55]] }
  0x99   : > { %v788_v33 = vmul.f32 %v4278_v16, %v786_v32  ;;  %v787_v34 = vmul.f32 %v4281_v18, %v786_v32 }
  0x9a   : > { %v302_v4 = vstv %s4324_s13  ;;  %s4423_s13 = sld [smem:[#allocation3 + $0x7a]] }
  0x9b   : > { %v303_v17 = vmul.f32 %v302_v4, %v4166_v1 }
  0x9c   : > { %485 = vrot.lane.b32.xlu1 %v480_v35, %s5946_s9  ;;  %483 = vrot.lane.b32.xlu0 %v479_v36, %s5946_s9  ;;  %v800_v35 = vstv %s3407_s26  ;;  %s4340_s26 = sld [smem:[#allocation3 + $0x27]] }
  0x9d   : > { %v802_v36 = vmul.f32 %v4278_v16, %v800_v35  ;;  %v801_v37 = vmul.f32 %v4281_v18, %v800_v35  ;;  %v438_v35 = vstv %s4359_s30  ;;  %s4458_s30 = sld [smem:[#allocation3 + $0x2a]] }
  0xa0   : > { %499 = vrot.lane.b32.xlu1 %v494_v38, %s5946_s9  ;;  %497 = vrot.lane.b32.xlu0 %v493_v39, %s5946_s9  ;;  %v814_v38 = vstv %s3408_s2  ;;  %s4346_s2 = sld [smem:[#allocation3 + $0x6c]] }
  0xa4   : > { %513 = vrot.lane.b32.xlu1 %v508_v41, %s5953_s14  ;;  %511 = vrot.lane.b32.xlu0 %v507_v42, %s5953_s14  ;;  %v816_v41 = vmul.f32 %v4278_v16, %v814_v38  ;;  %v815_v42 = vmul.f32 %v4281_v18, %v814_v38 }
  0xa6   : > { %v306_v21 = vstv %s4346_s2  ;;  %s4444_s2 = sld [smem:[#allocation3 + $0x6]] }
  0xa8   : > { %527 = vrot.lane.b32.xlu1 %v522_v44, %s5953_s14  ;;  %525 = vrot.lane.b32.xlu0 %v521_v45, %s5953_s14 }
  0xac   : > { %541 = vrot.lane.b32.xlu1 %v536_v47, %s5953_s14  ;;  %539 = vrot.lane.b32.xlu0 %v535_v48, %s5953_s14  ;;  %v829_v47 = vmul.f32 %v4281_v18, %v828_v43  ;;  %v4330_v48 = vld [vmem:[%s4163_s6 + $0x21] sm:$0x3] }
  0xb0   : > { %555 = vrot.lane.b32.xlu1 %v550_v50, %s5953_s14  ;;  %553 = vrot.lane.b32.xlu0 %v549_v51, %s5953_s14  ;;  %v4338_v51 = vld [vmem:[%s4163_s6 + $0x19] sm:$0xff] }
  0xb4   : > { %597 = vrot.lane.b32.xlu1 %v592_v55, %s5946_s9  ;;  %595 = vrot.lane.b32.xlu0 %v591_v56, %s5946_s9  ;;  %v872_v56 = vmul.f32 %v4330_v48, %v870_v49 }
  0xb8   : > { %611 = vrot.lane.b32.xlu1 %v606_v58, %s5946_s9  ;;  %609 = vrot.lane.b32.xlu0 %v605_v59, %s5946_s9  ;;  %v871_v58 = vmul.f32 %v4338_v51, %v870_v49  ;;  %v884_v59 = vstv %s4317_s10  ;;  %s4377_s10 = sld [smem:[#allocation3 + $0x6f]]  ;;  %v439_v49 = vmul.f32 %v4205_v28, %v438_v35 }
  0xb9   : > { %v885_v7 = vmul.f32 %v4338_v51, %v884_v59 }
  0xbc   : > { %625 = vrot.lane.b32.xlu1 %v620_v61, %s5946_s9  ;;  %623 = vrot.lane.b32.xlu0 %v619_v62, %s5946_s9  ;;  %v426_v62 = vstv %s4319_s11  ;;  %s4389_s11 = sld [smem:[#allocation3 + $0x32]] }
  0xbd   : > { %v427_v13 = vmul.f32 %v4205_v28, %v426_v62 }
  0xbe   : > { %v444_v53 = vstv %s4377_s10  ;;  %s4467_s10 = sld [smem:[#allocation3 + $0x4e]] }
  0xc0   : > { %639 = vrot.lane.b32.xlu1 %v634_v0, %s5946_s9  ;;  %637 = vrot.lane.b32.xlu0 %v633_v3, %s5946_s9  ;;  %v300_v3 = vmul.f32 %v298_v63, %v4169_v2  ;;  %v446_v63 = vmul.f32 %v4202_v26, %v444_v53 }
  0xc4   : > { %653 = vrot.lane.b32.xlu1 %v648_v5, %s5953_s14  ;;  %651 = vrot.lane.b32.xlu0 %v647_v6, %s5953_s14  ;;  %v886_v5 = vmul.f32 %v4330_v48, %v884_v59 }
  0xc8   : > { %667 = vrot.lane.b32.xlu1 %v662_v8, %s5953_s14  ;;  %665 = vrot.lane.b32.xlu0 %v661_v9, %s5953_s14  ;;  %v898_v8 = vstv %s4333_s15  ;;  %v428_v9 = vmul.f32 %v4202_v26, %v426_v62  ;;  %s3432_s15 = sld [smem:[#allocation3 + $0x10]] }
  0xc9   : > { %v899_v24 = vmul.f32 %v4338_v51, %v898_v8 }
  0xcc   : > { %681 = vrot.lane.b32.xlu1 %v676_v11, %s5953_s14  ;;  %679 = vrot.lane.b32.xlu0 %v675_v12, %s5953_s14 }
  0xd0   : > { %695 = vrot.lane.b32.xlu1 %v690_v14, %s5953_s14  ;;  %693 = vrot.lane.b32.xlu0 %v689_v15, %s5953_s14  ;;  %v432_v14 = vstv %s4340_s26  ;;  %v304_v15 = vmul.f32 %v302_v4, %v4169_v2  ;;  %s3433_s26 = sld [smem:[#allocation3 + $0x34]] }
  0xd4   : > { %737 = vrot.lane.b32.xlu1 %v732_v19, %s5946_s9  ;;  %735 = vrot.lane.b32.xlu0 %v731_v20, %s5946_s9 }
  0xd8   : > { %751 = vrot.lane.b32.xlu1 %v746_v22, %s5946_s9  ;;  %749 = vrot.lane.b32.xlu0 %v745_v23, %s5946_s9  ;;  %v900_v23 = vmul.f32 %v4330_v48, %v898_v8 }
  0xdc   : > { %765 = vrot.lane.b32.xlu1 %v760_v25, %s5946_s9  ;;  %763 = vrot.lane.b32.xlu0 %v759_v27, %s5946_s9  ;;  %v912_v27 = vstv %s4353_s27  ;;  %s4453_s27 = sld [smem:[#allocation3 + $0x58]] }
  0xe0   : > { %779 = vrot.lane.b32.xlu1 %v774_v30, %s5946_s9  ;;  %777 = vrot.lane.b32.xlu0 %v773_v31, %s5946_s9  ;;  %v434_v30 = vmul.f32 %v4202_v26, %v432_v14 }
  0xe4   : > { %793 = vrot.lane.b32.xlu1 %v788_v33, %s5953_s14  ;;  %791 = vrot.lane.b32.xlu0 %v787_v34, %s5953_s14  ;;  %v433_v34 = vmul.f32 %v4205_v28, %v432_v14 }
  0xe6   : > { %v4309_v39 = vpop.permute.xlu1 %329  ;;  %v316_v40 = vpop.permute.xlu0 %315 }
  0xe7   : > { %v321_v11 = vadd.f32 %v316_v40, %v295_v60  ;;  %v335_v31 = vadd.f32 %v4309_v39, %v299_v10  ;;  %v307_v40 = vmul.f32 %v306_v21, %v4166_v1  ;;  %v913_v39 = vmul.f32 %v4338_v51, %v912_v27 }
  0xe8   : > { %807 = vrot.lane.b32.xlu1 %v802_v36, %s5953_s14  ;;  %805 = vrot.lane.b32.xlu0 %v801_v37, %s5953_s14  ;;  %v308_v36 = vmul.f32 %v306_v21, %v4169_v2  ;;  %v440_v2 = vmul.f32 %v4202_v26, %v438_v35  ;;  %v954_v26 = vstv %s4407_s17  ;;  %v566_v35 = vstv %s4444_s2  ;;  %s4481_s17 = sld [smem:[#allocation3 + $0x72]] }
  0xe9   : > { %v955_v14 = vmul.f32 %v4338_v51, %v954_v26  ;;  %s3447_s2 = sld [smem:[#allocation3 + $0x13]] }
  0xea   : > { %v332_v44 = vpop.permute.xlu1 %331  ;;  %v318_v45 = vpop.permute.xlu0 %317 }
  0xeb   : > { %v322_v6 = vadd.f32 %v318_v45, %v296_v57  ;;  %v336_v25 = vadd.f32 %v332_v44, %v300_v3  ;;  %v926_v44 = vstv %s4371_s12  ;;  %s4464_s12 = sld [smem:[#allocation3 + $0x7c]] }
  0xec   : > { %821 = vrot.lane.b32.xlu1 %v816_v41, %s5953_s14  ;;  %819 = vrot.lane.b32.xlu0 %v815_v42, %s5953_s14  ;;  %v914_v42 = vmul.f32 %v4330_v48, %v912_v27  ;;  %v927_v59 = vmul.f32 %v4338_v51, %v926_v44 }
  0xee   : > { %v4335_v50 = vpop.permute.xlu1 %345  ;;  %v4343_v55 = vpop.permute.xlu0 %343 }
  0xef   : > { %v350_v43 = vadd.f32 %v4335_v50, %v304_v15  ;;  %v349_v1 = vadd.f32 %v4343_v55, %v303_v17  ;;  %v940_v55 = vstv %s4389_s11  ;;  %v968_v15 = vstv %s4423_s13  ;;  %s4475_s11 = sld [smem:[#allocation3 + $0x11]] }
  0xf0   : > { %835 = vrot.lane.b32.xlu1 %v830_v46, %s5953_s14  ;;  %833 = vrot.lane.b32.xlu0 %v829_v47, %s5953_s14  ;;  %v941_v10 = vmul.f32 %v4338_v51, %v940_v55  ;;  %v969_v21 = vmul.f32 %v4338_v51, %v968_v15  ;;  %s4491_s13 = sld [smem:[#allocation3 + $0x35]] }
  0xf2   : > { %v4356_v61 = vpop.permute.xlu1 %359  ;;  %v4362_v0 = vpop.permute.xlu0 %357 }
  0xf3   : > { %v364_v60 = vadd.f32 %v4356_v61, %v308_v36  ;;  %v363_v3 = vadd.f32 %v4362_v0, %v307_v40 }
  0xf4   : > { %877 = vrot.lane.b32.xlu1 %v872_v56, %s5946_s9  ;;  %875 = vrot.lane.b32.xlu0 %v871_v58, %s5946_s9  ;;  %v928_v58 = vmul.f32 %v4330_v48, %v926_v44  ;;  %v567_v44 = vmul.f32 %v4243_v54, %v566_v35 }
  0xf6   : > { %v374_v12 = vpop.permute.xlu1 %373  ;;  %v372_v20 = vpop.permute.xlu0 %371 }
  0xf7   : > { %v378_v19 = vadd.f32 %v374_v12, %v322_v6  ;;  %v377_v22 = vadd.f32 %v372_v20, %v321_v11  ;;  %v445_v6 = vmul.f32 %v4205_v28, %v444_v53  ;;  %v970_v20 = vmul.f32 %v4330_v48, %v968_v15 }
  0xf8   : > { %891 = vrot.lane.b32.xlu1 %v886_v5, %s5946_s9  ;;  %889 = vrot.lane.b32.xlu0 %v885_v7, %s5946_s9 }
  0xf9   : > { %v4387_v29 = vadd.f32 %v428_v9, %v378_v19  ;;  %v4393_v33 = vadd.f32 %v427_v13, %v377_v22  ;;  %v942_v9 = vmul.f32 %v4330_v48, %v940_v55  ;;  %v956_v13 = vmul.f32 %v4330_v48, %v954_v26  ;;  %v4451_v22 = vld [vmem:[%s4163_s6 + $0x22] sm:$0x3] }
  0xfa   : > { %v388_v32 = vpop.permute.xlu1 %387  ;;  %v386_v38 = vpop.permute.xlu0 %385 }
  0xfb   : > { %v392_v37 = vadd.f32 %v388_v32, %v336_v25  ;;  %v391_v41 = vadd.f32 %v386_v38, %v335_v31  ;;  %v4456_v25 = vld [vmem:[%s4163_s6 + $0x1a] sm:$0xff]  ;;  %v1024_v32 = vstv %s3433_s26  ;;  %s4523_s26 = sld [smem:[#allocation3 + $0x7d]] }
  0xfc   : > { %905 = vrot.lane.b32.xlu1 %v900_v23, %s5946_s9  ;;  %903 = vrot.lane.b32.xlu0 %v899_v24, %s5946_s9  ;;  %v1010_v23 = vstv %s3432_s15  ;;  %v1025_v40 = vmul.f32 %v4456_v25, %v1024_v32  ;;  %s4507_s15 = sld [smem:[#allocation3 + $0x59]] }
  0xfd   : > { %v4405_v45 = vadd.f32 %v434_v30, %v392_v37  ;;  %v4411_v47 = vadd.f32 %v433_v34, %v391_v41  ;;  %v1012_v30 = vmul.f32 %v4451_v22, %v1010_v23  ;;  %v1011_v31 = vmul.f32 %v4456_v25, %v1010_v23 }
  0xfe   : > { %v402_v46 = vpop.permute.xlu1 %401  ;;  %v400_v50 = vpop.permute.xlu0 %399  ;;  %v1026_v37 = vmul.f32 %v4451_v22, %v1024_v32  ;;  %v1038_v41 = vstv %s4453_s27  ;;  %s3448_s27 = sld [smem:[#allocation3 + $0x37]] }
  0xff   : > { %v406_v56 = vadd.f32 %v402_v46, %v350_v43  ;;  %v405_v57 = vadd.f32 %v400_v50, %v349_v1  ;;  %v1039_v53 = vmul.f32 %v4456_v25, %v1038_v41 }
 0x100   : > { %919 = vrot.lane.b32.xlu1 %v914_v42, %s5946_s9  ;;  %917 = vrot.lane.b32.xlu0 %v913_v39, %s5946_s9  ;;  %v568_v42 = vmul.f32 %v4240_v52, %v566_v35 }
 0x101   : > { %v4421_v62 = vadd.f32 %v440_v2, %v406_v56  ;;  %v4427_v5 = vadd.f32 %v439_v49, %v405_v57  ;;  %v572_v2 = vstv %s4458_s30  ;;  %v1040_v49 = vmul.f32 %v4451_v22, %v1038_v41  ;;  %s4544_s30 = sld [smem:[#allocation3 + $0x9]] }
 0x102   : > { %v416_v4 = vpop.permute.xlu1 %415  ;;  %v414_v8 = vpop.permute.xlu0 %413  ;;  %v574_v57 = vmul.f32 %v4240_v52, %v572_v2  ;;  %v573_v55 = vmul.f32 %v4243_v54, %v572_v2 }
 0x103   : > { %v420_v7 = vadd.f32 %v416_v4, %v364_v60  ;;  %v419_v61 = vadd.f32 %v414_v8, %v363_v3 }
 0x104   : > { %933 = vrot.lane.b32.xlu1 %v928_v58, %s5953_s14  ;;  %931 = vrot.lane.b32.xlu0 %v927_v59, %s5953_s14 }
 0x105   : > { %v4435_v11 = vadd.f32 %v446_v63, %v420_v7  ;;  %v4437_v12 = vadd.f32 %v445_v6, %v419_v61  ;;  %v578_v63 = vstv %s4467_s10  ;;  %s4558_s10 = sld [smem:[#allocation3 + $0x2d]] }
 0x106   : > { %v458_v0 = vpop.permute.xlu1 %457  ;;  %v456_v28 = vpop.permute.xlu0 %455 }
 0x107   : > { %v462_v38 = vadd.f32 %v458_v0, %v4387_v29  ;;  %v461_v39 = vadd.f32 %v456_v28, %v4393_v33  ;;  %v1052_v33 = vstv %s4464_s12  ;;  %v579_v28 = vmul.f32 %v4243_v54, %v578_v63  ;;  %s4553_s12 = sld [smem:[#allocation3 + $0x5b]] }
 0x108   : > { %947 = vrot.lane.b32.xlu1 %v942_v9, %s5953_s14  ;;  %945 = vrot.lane.b32.xlu0 %v941_v10, %s5953_s14  ;;  %v1054_v6 = vmul.f32 %v4451_v22, %v1052_v33  ;;  %v1053_v7 = vmul.f32 %v4456_v25, %v1052_v33  ;;  %v580_v9 = vmul.f32 %v4240_v52, %v578_v63 }
 0x10a   : > { %v472_v17 = vpop.permute.xlu1 %471  ;;  %v470_v19 = vpop.permute.xlu0 %469 }
 0x10b   : > { %v476_v56 = vadd.f32 %v472_v17, %v4405_v45  ;;  %v475_v58 = vadd.f32 %v470_v19, %v4411_v47  ;;  %v1066_v47 = vstv %s4475_s11  ;;  %s4564_s11 = sld [smem:[#allocation3 + $0x7f]] }
 0x10c   : > { %961 = vrot.lane.b32.xlu1 %v956_v13, %s5953_s14  ;;  %959 = vrot.lane.b32.xlu0 %v955_v14, %s5953_s14  ;;  %v584_v13 = vstv %s4481_s17  ;;  %v1068_v17 = vmul.f32 %v4451_v22, %v1066_v47  ;;  %v1067_v19 = vmul.f32 %v4456_v25, %v1066_v47  ;;  %s4567_s17 = sld [smem:[#allocation3 + $0x51]] }
 0x10d   : > { %v586_v23 = vmul.f32 %v4240_v52, %v584_v13  ;;  %v1094_v52 = vstv %s4507_s15  ;;  %s4581_s15 = sld [smem:[#allocation3 + $0x75]] }
 0x10e   : > { %v486_v24 = vpop.permute.xlu1 %485  ;;  %v484_v27 = vpop.permute.xlu0 %483  ;;  %v1095_v41 = vmul.f32 %v4456_v25, %v1094_v52 }
 0x10f   : > { %v490_v8 = vadd.f32 %v486_v24, %v4421_v62  ;;  %v489_v10 = vadd.f32 %v484_v27, %v4427_v5  ;;  %v1080_v5 = vstv %s4491_s13  ;;  %s4575_s13 = sld [smem:[#allocation3 + $0x14]] }
 0x110   : > { %975 = vrot.lane.b32.xlu1 %v970_v20, %s5953_s14  ;;  %973 = vrot.lane.b32.xlu0 %v969_v21, %s5953_s14 }
 0x112   : > { %v500_v34 = vpop.permute.xlu1 %499  ;;  %v498_v36 = vpop.permute.xlu0 %497 }
 0x113   : > { %v504_v20 = vadd.f32 %v500_v34, %v4435_v11  ;;  %v503_v24 = vadd.f32 %v498_v36, %v4437_v12  ;;  %v1082_v34 = vmul.f32 %v4451_v22, %v1080_v5 }
 0x114   : > { %1017 = vrot.lane.b32.xlu1 %v1012_v30, %s5946_s9  ;;  %1015 = vrot.lane.b32.xlu0 %v1011_v31, %s5946_s9  ;;  %v585_v31 = vmul.f32 %v4243_v54, %v584_v13 }
 0x116   : > { %v514_v43 = vpop.permute.xlu1 %513  ;;  %v512_v29 = vpop.permute.xlu0 %511 }
 0x117   : > { %v518_v1 = vadd.f32 %v514_v43, %v462_v38  ;;  %v517_v46 = vadd.f32 %v512_v29, %v461_v39  ;;  %v1150_v29 = vstv %s3447_s2  ;;  %s4607_s2 = sld [smem:[#allocation3 + $0x5c]] }
 0x118   : > { %1031 = vrot.lane.b32.xlu1 %v1026_v37, %s5946_s9  ;;  %1029 = vrot.lane.b32.xlu0 %v1025_v40, %s5946_s9  ;;  %v1081_v37 = vmul.f32 %v4456_v25, %v1080_v5  ;;  %v1096_v40 = vmul.f32 %v4451_v22, %v1094_v52 }
 0x119   : > { %v4489_v50 = vadd.f32 %v568_v42, %v518_v1  ;;  %v4495_v60 = vadd.f32 %v567_v44, %v517_v46  ;;  %v1108_v42 = vstv %s4523_s26  ;;  %v4551_v1 = vld [vmem:[%s4163_s6 + $0x38] sm:$0x3]  ;;  %s4591_s26 = sld [smem:[#allocation3 + $0x38]] }
 0x11a   : > { %v528_v59 = vpop.permute.xlu1 %527  ;;  %v526_v45 = vpop.permute.xlu0 %525  ;;  %v1110_v44 = vmul.f32 %v4451_v22, %v1108_v42  ;;  %v1109_v2 = vmul.f32 %v4456_v25, %v1108_v42 }
 0x11b   : > { %v532_v3 = vadd.f32 %v528_v59, %v476_v56  ;;  %v531_v4 = vadd.f32 %v526_v45, %v475_v58  ;;  %v1152_v56 = vmul.f32 %v4551_v1, %v1150_v29  ;;  %v706_v59 = vstv %s4544_s30  ;;  %s3462_s30 = sld [smem:[#allocation3 + $0x16]] }
 0x11c   : > { %1045 = vrot.lane.b32.xlu1 %v1040_v49, %s5946_s9  ;;  %1043 = vrot.lane.b32.xlu0 %v1039_v53, %s5946_s9  ;;  %v4556_v49 = vld [vmem:[%s4163_s6 + $0x30] sm:$0xff]  ;;  %v707_v47 = vmul.f32 %v4281_v18, %v706_v59 }
 0x11d   : > { %v4505_v61 = vadd.f32 %v574_v57, %v532_v3  ;;  %v4511_v0 = vadd.f32 %v573_v55, %v531_v4  ;;  %v1151_v33 = vmul.f32 %v4556_v49, %v1150_v29  ;;  %v1164_v57 = vstv %s3448_s27  ;;  %s4623_s27 = sld [smem:[#allocation3 + $0x80]] }
 0x11e   : > { %v542_v26 = vpop.permute.xlu1 %541  ;;  %v540_v62 = vpop.permute.xlu0 %539  ;;  %v1166_v63 = vmul.f32 %v4551_v1, %v1164_v57  ;;  %v1165_v45 = vmul.f32 %v4556_v49, %v1164_v57  ;;  %v1178_v4 = vstv %s4553_s12  ;;  %s3463_s12 = sld [smem:[#allocation3 + $0x3a]] }
 0x11f   : > { %v546_v14 = vadd.f32 %v542_v26, %v490_v8  ;;  %v545_v15 = vadd.f32 %v540_v62, %v489_v10  ;;  %v1179_v13 = vmul.f32 %v4556_v49, %v1178_v4 }
 0x120   : > { %1059 = vrot.lane.b32.xlu1 %v1054_v6, %s5946_s9  ;;  %1057 = vrot.lane.b32.xlu0 %v1053_v7, %s5946_s9  ;;  %v708_v6 = vmul.f32 %v4278_v16, %v706_v59 }
 0x121   : > { %v4521_v21 = vadd.f32 %v580_v9, %v546_v14  ;;  %v4527_v30 = vadd.f32 %v579_v28, %v545_v15  ;;  %v712_v9 = vstv %s4558_s10  ;;  %v1180_v28 = vmul.f32 %v4551_v1, %v1178_v4  ;;  %s3464_s10 = sld [smem:[#allocation3 + $0x5e]] }
 0x122   : > { %v556_v27 = vpop.permute.xlu1 %555  ;;  %v554_v35 = vpop.permute.xlu0 %553  ;;  %v714_v15 = vmul.f32 %v4278_v16, %v712_v9  ;;  %v713_v5 = vmul.f32 %v4281_v18, %v712_v9 }
 0x123   : > { %v560_v32 = vadd.f32 %v556_v27, %v504_v20  ;;  %v559_v11 = vadd.f32 %v554_v35, %v503_v24 }
 0x124   : > { %1073 = vrot.lane.b32.xlu1 %v1068_v17, %s5953_s14  ;;  %1071 = vrot.lane.b32.xlu0 %v1067_v19, %s5953_s14 }
 0x125   : > { %v4535_v38 = vadd.f32 %v586_v23, %v560_v32  ;;  %v4537_v36 = vadd.f32 %v585_v31, %v559_v11  ;;  %v718_v23 = vstv %s4567_s17  ;;  %s3466_s17 = sld [smem:[#allocation3 + $0x17]] }
 0x126   : > { %v598_v12 = vpop.permute.xlu1 %597  ;;  %v596_v54 = vpop.permute.xlu0 %595 }
 0x127   : > { %v602_v3 = vadd.f32 %v598_v12, %v4489_v50  ;;  %v601_v7 = vadd.f32 %v596_v54, %v4495_v60  ;;  %v1192_v60 = vstv %s4564_s11  ;;  %v719_v54 = vmul.f32 %v4281_v18, %v718_v23  ;;  %s3465_s11 = sld [smem:[#allocation3 + $0x82]] }
 0x128   : > { %1087 = vrot.lane.b32.xlu1 %v1082_v34, %s5953_s14  ;;  %1085 = vrot.lane.b32.xlu0 %v1081_v37, %s5953_s14  ;;  %v1194_v31 = vmul.f32 %v4551_v1, %v1192_v60  ;;  %v1193_v32 = vmul.f32 %v4556_v49, %v1192_v60  ;;  %v720_v34 = vmul.f32 %v4278_v16, %v718_v23 }
 0x12a   : > { %v612_v39 = vpop.permute.xlu1 %611  ;;  %v610_v43 = vpop.permute.xlu0 %609 }
 0x12b   : > { %v616_v14 = vadd.f32 %v612_v39, %v4505_v61  ;;  %v615_v17 = vadd.f32 %v610_v43, %v4511_v0  ;;  %v1206_v0 = vstv %s4575_s13  ;;  %s3467_s13 = sld [smem:[#allocation3 + $0x3b]] }
 0x12c   : > { %1101 = vrot.lane.b32.xlu1 %v1096_v40, %s5953_s14  ;;  %1099 = vrot.lane.b32.xlu0 %v1095_v41, %s5953_s14  ;;  %v724_v40 = vstv %s4581_s15  ;;  %v1208_v39 = vmul.f32 %v4551_v1, %v1206_v0  ;;  %v1207_v43 = vmul.f32 %v4556_v49, %v1206_v0  ;;  %s3468_s15 = sld [smem:[#allocation3 + $0x5f]] }
 0x12d   : > { %v726_v29 = vmul.f32 %v4278_v16, %v724_v40  ;;  %v1234_v16 = vstv %s4607_s2  ;;  %s3477_s2 = sld [smem:[#allocation3 + $0x19]] }
 0x12e   : > { %v626_v46 = vpop.permute.xlu1 %625  ;;  %v624_v53 = vpop.permute.xlu0 %623  ;;  %v1235_v4 = vmul.f32 %v4556_v49, %v1234_v16 }
 0x12f   : > { %v630_v35 = vadd.f32 %v626_v46, %v4521_v21  ;;  %v629_v37 = vadd.f32 %v624_v53, %v4527_v30  ;;  %v1220_v30 = vstv %s4591_s26  ;;  %s3469_s26 = sld [smem:[#allocation3 + $0x83]] }
 0x130   : > { %1115 = vrot.lane.b32.xlu1 %v1110_v44, %s5953_s14  ;;  %1113 = vrot.lane.b32.xlu0 %v1109_v2, %s5953_s14 }
 0x132   : > { %v640_v58 = vpop.permute.xlu1 %639  ;;  %v638_v55 = vpop.permute.xlu0 %637 }
 0x133   : > { %v644_v44 = vadd.f32 %v640_v58, %v4535_v38  ;;  %v643_v46 = vadd.f32 %v638_v55, %v4537_v36  ;;  %v1222_v58 = vmul.f32 %v4551_v1, %v1220_v30 }
 0x134   : > { %1157 = vrot.lane.b32.xlu1 %v1152_v56, %s5946_s9  ;;  %1155 = vrot.lane.b32.xlu0 %v1151_v33, %s5946_s9  ;;  %v725_v33 = vmul.f32 %v4281_v18, %v724_v40 }
 0x136   : > { %v654_v8 = vpop.permute.xlu1 %653  ;;  %v652_v50 = vpop.permute.xlu0 %651 }
 0x137   : > { %v658_v10 = vadd.f32 %v654_v8, %v602_v3  ;;  %v657_v26 = vadd.f32 %v652_v50, %v601_v7  ;;  %v1290_v50 = vstv %s3462_s30  ;;  %s3479_s30 = sld [smem:[#allocation3 + $0x61]] }
 0x138   : > { %1171 = vrot.lane.b32.xlu1 %v1166_v63, %s5946_s9  ;;  %1169 = vrot.lane.b32.xlu0 %v1165_v45, %s5946_s9  ;;  %v1221_v63 = vmul.f32 %v4556_v49, %v1220_v30  ;;  %v1236_v45 = vmul.f32 %v4551_v1, %v1234_v16 }
 0x139   : > { %v4589_v62 = vadd.f32 %v708_v6, %v658_v10  ;;  %v4595_v20 = vadd.f32 %v707_v47, %v657_v26  ;;  %v1248_v6 = vstv %s4623_s27  ;;  %v4657_v10 = vld [vmem:[%s4163_s6 + $0x39] sm:$0x3]  ;;  %s3478_s27 = sld [smem:[#allocation3 + $0x3d]] }
 0x13a   : > { %v668_v19 = vpop.permute.xlu1 %667  ;;  %v666_v61 = vpop.permute.xlu0 %665  ;;  %v1250_v47 = vmul.f32 %v4551_v1, %v1248_v6  ;;  %v1249_v9 = vmul.f32 %v4556_v49, %v1248_v6  ;;  %5972 = vst [vmem:[#allocation16_spill] sm:$0xff] %v4657_v10  ;;  %v1430_v6 = vstv %s3477_s2  ;;  %s4792_s2 = sld [smem:[#allocation3 + $0xc]] }
 0x13b   : > { %v672_v24 = vadd.f32 %v668_v19, %v616_v14  ;;  %v671_v27 = vadd.f32 %v666_v61, %v615_v17  ;;  %v1292_v14 = vmul.f32 %v4657_v10, %v1290_v50 }
 0x13c   : > { %1185 = vrot.lane.b32.xlu1 %v1180_v28, %s5946_s9  ;;  %1183 = vrot.lane.b32.xlu0 %v1179_v13, %s5946_s9  ;;  %v4662_v28 = vld [vmem:[%s4163_s6 + $0x31] sm:$0xff] }
 0x13d   : > { %v4605_v11 = vadd.f32 %v714_v15, %v672_v24  ;;  %v4611_v12 = vadd.f32 %v713_v5, %v671_v27  ;;  %5973 = vst [vmem:[#allocation17_spill] sm:$0xff] %v4662_v28  ;;  %v1291_v60 = vmul.f32 %v4662_v28, %v1290_v50  ;;  %v1304_v15 = vstv %s3463_s12  ;;  %s3480_s12 = sld [smem:[#allocation3 + $0x85]] }
 0x13e   : > { %v682_v52 = vpop.permute.xlu1 %681  ;;  %v680_v21 = vpop.permute.xlu0 %679  ;;  %v1306_v5 = vmul.f32 %v4657_v10, %v1304_v15  ;;  %v1305_v23 = vmul.f32 %v4662_v28, %v1304_v15  ;;  %v1318_v24 = vstv %s3464_s10  ;;  %s3481_s10 = sld [smem:[#allocation3 + $0x1a]] }
 0x13f   : > { %v686_v41 = vadd.f32 %v682_v52, %v630_v35  ;;  %v685_v42 = vadd.f32 %v680_v21, %v629_v37  ;;  %v1332_v35 = vstv %s3465_s11  ;;  %v1444_v15 = vstv %s3478_s27  ;;  %s3482_s11 = sld [smem:[#allocation3 + $0x3e]] }
 0x140   : > { %1199 = vrot.lane.b32.xlu1 %v1194_v31, %s5946_s9  ;;  %1197 = vrot.lane.b32.xlu0 %v1193_v32, %s5946_s9  ;;  %v1320_v31 = vmul.f32 %v4657_v10, %v1318_v24  ;;  %v1319_v32 = vmul.f32 %v4662_v28, %v1318_v24  ;;  %v1334_v37 = vmul.f32 %v4657_v10, %v1332_v35  ;;  %s4796_s27 = sld [smem:[#allocation3 + $0x30]] }
 0x141   : > { %v4621_v2 = vadd.f32 %v720_v34, %v686_v41  ;;  %v4627_v56 = vadd.f32 %v719_v54, %v685_v42  ;;  %v1333_v52 = vmul.f32 %v4662_v28, %v1332_v35  ;;  %v1346_v54 = vstv %s3466_s17  ;;  %s3483_s17 = sld [smem:[#allocation3 + $0x62]] }
 0x142   : > { %v696_v53 = vpop.permute.xlu1 %695  ;;  %v694_v59 = vpop.permute.xlu0 %693  ;;  %v1348_v21 = vmul.f32 %v4657_v10, %v1346_v54  ;;  %v1347_v42 = vmul.f32 %v4662_v28, %v1346_v54 }
 0x143   : > { %v700_v57 = vadd.f32 %v696_v53, %v644_v44  ;;  %v699_v38 = vadd.f32 %v694_v59, %v643_v46  ;;  %v1374_v46 = vstv %s3468_s15  ;;  %s4780_s15 = sld [smem:[#allocation3 + $0x1c]] }
 0x144   : > { %1213 = vrot.lane.b32.xlu1 %v1208_v39, %s5953_s14  ;;  %1211 = vrot.lane.b32.xlu0 %v1207_v43, %s5953_s14  ;;  %v1360_v39 = vstv %s3467_s13  ;;  %v1375_v59 = vmul.f32 %v4662_v28, %v1374_v46  ;;  %s3484_s13 = sld [smem:[#allocation3 + $0x86]] }
 0x145   : > { %v4635_v3 = vadd.f32 %v726_v29, %v700_v57  ;;  %v4639_v18 = vadd.f32 %v725_v33, %v699_v38  ;;  %v1362_v30 = vmul.f32 %v4657_v10, %v1360_v39  ;;  %v1361_v29 = vmul.f32 %v4662_v28, %v1360_v39 }
 0x146   : > { %v4637_v36 = vpop.permute.xlu1 %737  ;;  %v4641_v55 = vpop.permute.xlu0 %735  ;;  %v1376_v57 = vmul.f32 %v4657_v10, %v1374_v46  ;;  %v1388_v38 = vstv %s3469_s26  ;;  %v1486_v46 = vstv %s3481_s10  ;;  %s4790_s26 = sld [smem:[#allocation3 + $0x40]] }
 0x147   : > { %v1390_v16 = vmul.f32 %v4657_v10, %v1388_v38  ;;  %s4812_s10 = sld [smem:[#allocation3 + $0x78]] }
 0x148   : > { %1227 = vrot.lane.b32.xlu1 %v1222_v58, %s5953_s14  ;;  %1225 = vrot.lane.b32.xlu0 %v1221_v63, %s5953_s14 }
 0x14a   : > { %v4648_v7 = vpop.permute.xlu1 %751  ;;  %v4650_v8 = vpop.permute.xlu0 %749 }
 0x14c   : > { %1241 = vrot.lane.b32.xlu1 %v1236_v45, %s5953_s14  ;;  %1239 = vrot.lane.b32.xlu0 %v1235_v4, %s5953_s14  ;;  %v1389_v45 = vmul.f32 %v4662_v28, %v1388_v38  ;;  %v4727_v4 = vld [vmem:[%s4163_s6 + $0x3a] sm:$0x3] }
 0x14d   : > { %5974 = vst [vmem:[#allocation18_spill] sm:$0xff] %v4727_v4  ;;  %v1446_v24 = vmul.f32 %v4727_v4, %v1444_v15  ;;  %v1488_v38 = vmul.f32 %v4727_v4, %v1486_v46 }
 0x14e   : > { %v4659_v26 = vpop.permute.xlu1 %765  ;;  %v4664_v13 = vpop.permute.xlu0 %763 }
 0x150   : > { %1255 = vrot.lane.b32.xlu1 %v1250_v47, %s5953_s14  ;;  %1253 = vrot.lane.b32.xlu0 %v1249_v9, %s5953_s14  ;;  %v4732_v9 = vld [vmem:[%s4163_s6 + $0x32] sm:$0xff] }
 0x151   : > { %5976 = vst [vmem:[#allocation20_spill] sm:$0xff] %v4732_v9 }
 0x152   : > { %v4670_v17 = vpop.permute.xlu1 %779  ;;  %v4672_v19 = vpop.permute.xlu0 %777 }
 0x154   : > { %1297 = vrot.lane.b32.xlu1 %v1292_v14, %s5946_s9  ;;  %1295 = vrot.lane.b32.xlu0 %v1291_v60, %s5946_s9  ;;  %v1432_v14 = vmul.f32 %v4727_v4, %v1430_v6  ;;  %v1431_v60 = vmul.f32 %v4732_v9, %v1430_v6 }
 0x156   : > { %v4678_v61 = vpop.permute.xlu1 %793  ;;  %v4680_v27 = vpop.permute.xlu0 %791 }
 0x158   : > { %1311 = vrot.lane.b32.xlu1 %v1306_v5, %s5946_s9  ;;  %1309 = vrot.lane.b32.xlu0 %v1305_v23, %s5946_s9 }
 0x15a   : > { %v4686_v0 = vpop.permute.xlu1 %807  ;;  %v4688_v34 = vpop.permute.xlu0 %805 }
 0x15c   : > { %1325 = vrot.lane.b32.xlu1 %v1320_v31, %s5946_s9  ;;  %1323 = vrot.lane.b32.xlu0 %v1319_v32, %s5946_s9  ;;  %v1445_v31 = vmul.f32 %v4732_v9, %v1444_v15  ;;  %v1458_v32 = vstv %s3479_s30  ;;  %s4800_s30 = sld [smem:[#allocation3 + $0x54]] }
 0x15d   : > { %v1459_v54 = vmul.f32 %v4732_v9, %v1458_v32 }
 0x15e   : > { %v4694_v40 = vpop.permute.xlu1 %821  ;;  %v4696_v41 = vpop.permute.xlu0 %819 }
 0x160   : > { %1339 = vrot.lane.b32.xlu1 %v1334_v37, %s5946_s9  ;;  %1337 = vrot.lane.b32.xlu0 %v1333_v52, %s5946_s9  ;;  %v1460_v52 = vmul.f32 %v4727_v4, %v1458_v32 }
 0x162   : > { %v4702_v43 = vpop.permute.xlu1 %835  ;;  %v4704_v44 = vpop.permute.xlu0 %833 }
 0x164   : > { %1353 = vrot.lane.b32.xlu1 %v1348_v21, %s5953_s14  ;;  %1351 = vrot.lane.b32.xlu0 %v1347_v42, %s5953_s14  ;;  %v1472_v21 = vstv %s3480_s12  ;;  %s4810_s12 = sld [smem:[#allocation3 + $0x64]] }
 0x166   : > { %v4710_v53 = vpop.permute.xlu1 %877  ;;  %v4712_v33 = vpop.permute.xlu0 %875 }
 0x168   : > { %1367 = vrot.lane.b32.xlu1 %v1362_v30, %s5953_s14  ;;  %1365 = vrot.lane.b32.xlu0 %v1361_v29, %s5953_s14  ;;  %v1474_v30 = vmul.f32 %v4727_v4, %v1472_v21  ;;  %v1473_v29 = vmul.f32 %v4732_v9, %v1472_v21  ;;  %v1528_v21 = vstv %s3484_s13  ;;  %s4830_s13 = sld [smem:[#allocation3 + $0x88]] }
 0x16a   : > { %v4718_v58 = vpop.permute.xlu1 %891  ;;  %v4720_v63 = vpop.permute.xlu0 %889  ;;  %v1598_v10 = vstv %s4810_s12  ;;  %s4939_s12 = sld [smem:[#allocation3 + $0x89]] }
 0x16c   : > { %1381 = vrot.lane.b32.xlu1 %v1376_v57, %s5953_s14  ;;  %1379 = vrot.lane.b32.xlu0 %v1375_v59, %s5953_s14 }
 0x16e   : > { %v4729_v47 = vpop.permute.xlu1 %905  ;;  %v4734_v50 = vpop.permute.xlu0 %903 }
 0x16f   : > { %5975 = vst [vmem:[#allocation19_spill] sm:$0xff] %v4729_v47  ;;  %5977 = vst [vmem:[#allocation21_spill] sm:$0xff] %v4734_v50  ;;  %v1612_v50 = vstv %s4830_s13  ;;  %s5029_s13 = sld [smem:[#allocation3 + $0x67]] }
 0x170   : > { %1395 = vrot.lane.b32.xlu1 %v1390_v16, %s5953_s14  ;;  %1393 = vrot.lane.b32.xlu0 %v1389_v45, %s5953_s14  ;;  %v1487_v16 = vmul.f32 %v4732_v9, %v1486_v46  ;;  %v1500_v45 = vstv %s3482_s11  ;;  %v1530_v46 = vmul.f32 %v4727_v4, %v1528_v21  ;;  %s4819_s11 = sld [smem:[#allocation3 + $0xf]] }
 0x171   : > { %v1501_v15 = vmul.f32 %v4732_v9, %v1500_v45 }
 0x172   : > { %v4740_v5 = vpop.permute.xlu1 %919  ;;  %v4742_v23 = vpop.permute.xlu0 %917 }
 0x174   : > { %1437 = vrot.lane.b32.xlu1 %v1432_v14, %s5946_s9  ;;  %1435 = vrot.lane.b32.xlu0 %v1431_v60, %s5946_s9  ;;  %v1502_v60 = vmul.f32 %v4727_v4, %v1500_v45  ;;  %v1570_v45 = vstv %s4780_s15  ;;  %s4834_s15 = sld [smem:[#allocation3 + $0x57]] }
 0x176   : > { %v4748_v35 = vpop.permute.xlu1 %933  ;;  %v4750_v37 = vpop.permute.xlu0 %931 }
 0x178   : > { %1451 = vrot.lane.b32.xlu1 %v1446_v24, %s5946_s9  ;;  %1449 = vrot.lane.b32.xlu0 %v1445_v31, %s5946_s9  ;;  %v1514_v24 = vstv %s3483_s17  ;;  %s4823_s17 = sld [smem:[#allocation3 + $0x33]] }
 0x17a   : > { %v4756_v42 = vpop.permute.xlu1 %947  ;;  %v4758_v39 = vpop.permute.xlu0 %945 }
 0x17b   : > { %5978 = vst [vmem:[#allocation22_spill] sm:$0xff] %v4758_v39 }
 0x17c   : > { %1465 = vrot.lane.b32.xlu1 %v1460_v52, %s5946_s9  ;;  %1463 = vrot.lane.b32.xlu0 %v1459_v54, %s5946_s9  ;;  %v1516_v52 = vmul.f32 %v4727_v4, %v1514_v24  ;;  %v1515_v54 = vmul.f32 %v4732_v9, %v1514_v24 }
 0x17e   : > { %v4764_v57 = vpop.permute.xlu1 %961  ;;  %v4766_v59 = vpop.permute.xlu0 %959 }
 0x17f   : > { %5979 = vst [vmem:[#allocation23_spill] sm:$0xff] %v4764_v57  ;;  %5980 = vst [vmem:[#allocation24_spill] sm:$0xff] %v4766_v59 }
 0x180   : > { %1479 = vrot.lane.b32.xlu1 %v1474_v30, %s5946_s9  ;;  %1477 = vrot.lane.b32.xlu0 %v1473_v29, %s5946_s9  ;;  %s4839_s9 = sld [smem:[#allocation3 + $0x7b]] }
 0x182   : > { %v4772_v6 = vpop.permute.xlu1 %975  ;;  %v4774_v14 = vpop.permute.xlu0 %973 }
 0x184   : > { %1493 = vrot.lane.b32.xlu1 %v1488_v38, %s5953_s14  ;;  %1491 = vrot.lane.b32.xlu0 %v1487_v16, %s5953_s14  ;;  %v1529_v38 = vmul.f32 %v4732_v9, %v1528_v21  ;;  %v4807_v16 = vld [vmem:[%s4163_s6 + $0x50] sm:$0x3]  ;;  %v1584_v21 = vstv %s4790_s26  ;;  %s4847_s26 = sld [smem:[#allocation3 + $0x1d]] }
 0x185   : > { %v1600_v57 = vmul.f32 %v4807_v16, %v1598_v10 }
 0x186   : > { %v4782_v31 = vpop.permute.xlu1 %1017  ;;  %v4784_v32 = vpop.permute.xlu0 %1015 }
 0x187   : > { %5981 = vst [vmem:[#allocation25_spill] sm:$0xff] %v4782_v31  ;;  %5982 = vst [vmem:[#allocation26_spill] sm:$0xff] %v4784_v32 }
 0x188   : > { %1507 = vrot.lane.b32.xlu1 %v1502_v60, %s5953_s14  ;;  %1505 = vrot.lane.b32.xlu0 %v1501_v15, %s5953_s14  ;;  %v4817_v15 = vld [vmem:[%s4163_s6 + $0x48] sm:$0xff] }
 0x189   : > { %v1585_v28 = vmul.f32 %v4817_v15, %v1584_v21 }
 0x18a   : > { %v4794_v30 = vpop.permute.xlu1 %1031  ;;  %v4798_v29 = vpop.permute.xlu0 %1029 }
 0x18b   : > { %5983 = vst [vmem:[#allocation27_spill] sm:$0xff] %v4794_v30  ;;  %5984 = vst [vmem:[#allocation28_spill] sm:$0xff] %v4798_v29  ;;  %v986_v30 = vstv %s4819_s11  ;;  %s4993_s11 = sld [smem:[#allocation3 + $0x43]] }
 0x18c   : > { %1521 = vrot.lane.b32.xlu1 %v1516_v52, %s5953_s14  ;;  %1519 = vrot.lane.b32.xlu0 %v1515_v54, %s5953_s14  ;;  %v1572_v52 = vmul.f32 %v4807_v16, %v1570_v45  ;;  %v1571_v54 = vmul.f32 %v4817_v15, %v1570_v45  ;;  %v852_v45 = vstv %s4796_s27  ;;  %s4872_s27 = sld [smem:[#allocation3 + $0x41]]  ;;  %v4889_v39 = vmul.f32 %v4451_v22, %v986_v30 }
 0x18d   : > { %v4875_v32 = vmul.f32 %v4338_v51, %v852_v45 }
 0x18e   : > { %v4814_v60 = vpop.permute.xlu1 %1045  ;;  %v4821_v24 = vpop.permute.xlu0 %1043 }
 0x18f   : > { %5985 = vst [vmem:[#allocation29_spill] sm:$0xff] %v4814_v60  ;;  %5986 = vst [vmem:[#allocation30_spill] sm:$0xff] %v4821_v24  ;;  %v858_v24 = vstv %s4800_s30  ;;  %s4918_s30 = sld [smem:[#allocation3 + $0x65]] }
 0x190   : > { %1535 = vrot.lane.b32.xlu1 %v1530_v46, %s5953_s14  ;;  %1533 = vrot.lane.b32.xlu0 %v1529_v38, %s5953_s14  ;;  %v846_v46 = vstv %s4792_s2  ;;  %v1586_v38 = vmul.f32 %v4807_v16, %v1584_v21  ;;  %s4852_s14 = sld [smem:[#allocation3 + $0x12]]  ;;  %v4867_v21 = vmul.f32 %v4330_v48, %v852_v45  ;;  %v4884_v31 = vmul.f32 %v4338_v51, %v858_v24 }
 0x191   : > { %v4855_v29 = vmul.f32 %v4330_v48, %v846_v46  ;;  %s4861_s2 = sld [smem:[#allocation3 + $0x36]] }
 0x192   : > { %v4832_v9 = vpop.permute.xlu1 %1059  ;;  %v4836_v4 = vpop.permute.xlu0 %1057  ;;  %5991 = vst [vmem:[#allocation34_spill] sm:$0xff] %v4884_v31 }
 0x193   : > { %5987 = vst [vmem:[#allocation31_spill] sm:$0xff] %v4836_v4 }
 0x194   : > { %1577 = vrot.lane.b32.xlu1 %v1572_v52, %s5988_s0  ;;  %1575 = vrot.lane.b32.xlu0 %v1571_v54, %s5988_s0  ;;  %v864_v52 = vstv %s4812_s10  ;;  %v4864_v54 = vmul.f32 %v4338_v51, %v846_v46  ;;  %v1599_v46 = vmul.f32 %v4817_v15, %v1598_v10  ;;  %s4978_s10 = sld [smem:[#allocation3 + $0x1f]] }
 0x195   : > { %v865_v4 = vmul.f32 %v4338_v51, %v864_v52  ;;  %v783_v51 = vadd.f32 %v4672_v19, %v4639_v18  ;;  %v741_v18 = vadd.f32 %v4641_v55, %v4595_v20 }
 0x196   : > { %v4850_v60 = vpop.permute.xlu1 %1073  ;;  %v4859_v59 = vpop.permute.xlu0 %1071 }
 0x197   : > { %5989 = vst [vmem:[#allocation32_spill] sm:$0xff] %v4850_v60  ;;  %5990 = vst [vmem:[#allocation33_spill] sm:$0xff] %v4859_v59  ;;  %v992_v60 = vstv %s4823_s17  ;;  %v4878_v59 = vmul.f32 %v4330_v48, %v858_v24  ;;  %v784_v48 = vadd.f32 %v4670_v17, %v4635_v3  ;;  %v998_v24 = vstv %s4834_s15  ;;  %s5007_s17 = sld [smem:[#allocation3 + $0x5a]] }
 0x198   : > { %1591 = vrot.lane.b32.xlu1 %v1586_v38, %s5988_s0  ;;  %1589 = vrot.lane.b32.xlu0 %v1585_v28, %s5988_s0  ;;  %v3813_v38 = vld [vmem:[%s4163_s6 + $0x21] sm:$0x3]  ;;  %v4896_v28 = vmul.f32 %v4456_v25, %v986_v30  ;;  %v4899_v10 = vmul.f32 %v4451_v22, %v992_v60  ;;  %v1614_v3 = vmul.f32 %v4807_v16, %v1612_v50  ;;  %v1132_v20 = vstv %s4861_s2  ;;  %s5056_s15 = sld [smem:[#allocation3 + $0x8b]] }
 0x199   : > { %v866_v47 = vmul.f32 %v3813_v38, %v864_v52  ;;  %v4907_v52 = vmul.f32 %v4456_v25, %v992_v60  ;;  %v1004_v38 = vstv %s4839_s9  ;;  %v742_v17 = vadd.f32 %v4637_v36, %v4589_v62  ;;  %s4929_s9 = sld [smem:[#allocation3 + $0x7e]] }
 0x19a   : > { %v4891_v45 = vpop.permute.xlu1 %1087  ;;  %v4902_v31 = vpop.permute.xlu0 %1085  ;;  %v840_v30 = vadd.f32 %v4702_v43, %v784_v48  ;;  %v839_v19 = vadd.f32 %v4704_v44, %v783_v51  ;;  %v1126_v36 = vstv %s4852_s14  ;;  %v1006_v60 = vmul.f32 %v4451_v22, %v1004_v38  ;;  %s5994_s14 = smov 126   ;;  %s5082_s2 = sld [smem:[#allocation3 + $0x15]] }
 0x19b   : > { %5992 = vst [vmem:[#allocation35_spill] sm:$0xff] %v4891_v45  ;;  %5993 = vst [vmem:[#allocation36_spill] sm:$0xff] %v4902_v31  ;;  %v1613_v31 = vmul.f32 %v4817_v15, %v1612_v50  ;;  %v1626_v45 = vstv %s4847_s26  ;;  %v798_v43 = vadd.f32 %v4678_v61, %v742_v17  ;;  %v4933_v50 = vmul.f32 %v4456_v25, %v998_v24  ;;  %s5077_s26 = sld [smem:[#allocation3 + $0x20]] }
 0x19c   : > { %1605 = vrot.lane.b32.xlu1 %v1600_v57, %s5988_s0  ;;  %1603 = vrot.lane.b32.xlu0 %v1599_v46, %s5988_s0  ;;  %v4924_v57 = vmul.f32 %v4451_v22, %v998_v24  ;;  %v797_v55 = vadd.f32 %v4680_v27, %v741_v18  ;;  %v1005_v44 = vmul.f32 %v4456_v25, %v1004_v38  ;;  %v1640_v61 = vstv %s4872_s27  ;;  %s5094_s27 = sld [smem:[#allocation3 + $0x44]] }
 0x19d   : > { %v1628_v48 = vmul.f32 %v4807_v16, %v1626_v45  ;;  %v756_v24 = vadd.f32 %v4648_v7, %v4605_v11  ;;  %v868_v51 = vadd.f32 %v866_v47, %v840_v30  ;;  %v1627_v22 = vmul.f32 %v4817_v15, %v1626_v45 }
 0x19e   : > { %v4926_v62 = vpop.permute.xlu1 %1101  ;;  %v4936_v46 = vpop.permute.xlu0 %1099  ;;  %v4951_v17 = vmul.f32 %v4551_v1, %v1126_v36  ;;  %v755_v27 = vadd.f32 %v4650_v8, %v4611_v12  ;;  %v867_v25 = vadd.f32 %v865_v4, %v839_v19  ;;  %v4961_v11 = vmul.f32 %v4551_v1, %v1132_v20 }
 0x19f   : > { %v812_v7 = vadd.f32 %v4686_v0, %v756_v24  ;;  %v850_v47 = vadd.f32 %v4855_v29, %v798_v43  ;;  %v1642_v30 = vmul.f32 %v4807_v16, %v1640_v61  ;;  %v849_v8 = vadd.f32 %v4864_v54, %v797_v55 }
 0x1a0   : > { %1619 = vrot.lane.b32.xlu1 %v1614_v3, %s5988_s0  ;;  %1617 = vrot.lane.b32.xlu0 %v1613_v31, %s5988_s0  ;;  %v4956_v3 = vmul.f32 %v4556_v49, %v1126_v36  ;;  %v924_v31 = vadd.f32 %v4740_v5, %v868_v51  ;;  %v811_v12 = vadd.f32 %v4688_v34, %v755_v27  ;;  %v1654_v19 = vstv %s4918_s30  ;;  %s5097_s30 = sld [smem:[#allocation3 + $0x39]] }
 0x1a1   : > { %v923_v4 = vadd.f32 %v4742_v23, %v867_v25  ;;  %v1641_v18 = vmul.f32 %v4817_v15, %v1640_v61  ;;  %v770_v0 = vadd.f32 %v4659_v26, %v4621_v2  ;;  %v882_v5 = vadd.f32 %v4710_v53, %v850_v47  ;;  %v5996_v25 = vld [vmem:[#allocation22_spill] sm:$0xff] }
 0x1a2   : > { %v1116_v38 = vpop.permute.xlu1 %1115  ;;  %v1114_v45 = vpop.permute.xlu0 %1113  ;;  %v980_v29 = vadd.f32 %v4772_v6, %v924_v31  ;;  %v769_v34 = vadd.f32 %v4664_v13, %v4627_v56  ;;  %v881_v23 = vadd.f32 %v4712_v33, %v849_v8  ;;  %v1144_v43 = vstv %s4929_s9  ;;  %v5997_v31 = vld [vmem:[#allocation31_spill] sm:$0xff]  ;;  %s5105_s9 = sld [smem:[#allocation3 + $0x68]] }
 0x1a3   : > { %v979_v54 = vadd.f32 %v4774_v14, %v923_v4  ;;  %v826_v2 = vadd.f32 %v4694_v40, %v770_v0  ;;  %v856_v26 = vadd.f32 %v4867_v21, %v812_v7  ;;  %v938_v53 = vadd.f32 %v4748_v35, %v882_v5 }
 0x1a4   : > { %1633 = vrot.lane.b32.xlu1 %v1628_v48, %s5994_s14  ;;  %1631 = vrot.lane.b32.xlu0 %v1627_v22, %s5994_s14  ;;  %v1668_v55 = vstv %s4939_s12  ;;  %v825_v56 = vadd.f32 %v4696_v41, %v769_v34  ;;  %v855_v13 = vadd.f32 %v4875_v32, %v811_v12  ;;  %v937_v33 = vadd.f32 %v4750_v37, %v881_v23  ;;  %v5037_v23 = vld [vmem:[%s4163_s6 + $0x49] sm:$0xff]  ;;  %s5109_s12 = sld [smem:[#allocation3 + $0x5d]] }
 0x1a5   : > { %v1656_v14 = vmul.f32 %v4807_v16, %v1654_v19  ;;  %v896_v40 = vadd.f32 %v4718_v58, %v856_v26  ;;  %v1008_v21 = vadd.f32 %v1006_v60, %v980_v29  ;;  %v1655_v35 = vmul.f32 %v4817_v15, %v1654_v19  ;;  %v6003_v26 = vld [vmem:[#allocation32_spill] sm:$0xff] }
 0x1a6   : > { %v4984_v36 = vpop.permute.xlu1 %1157  ;;  %v4990_v6 = vpop.permute.xlu0 %1155  ;;  %v1146_v48 = vmul.f32 %v4551_v1, %v1144_v43  ;;  %v895_v61 = vadd.f32 %v4720_v63, %v855_v13  ;;  %v1007_v41 = vadd.f32 %v1005_v44, %v979_v54  ;;  %v1670_v37 = vmul.f32 %v4807_v16, %v1668_v55  ;;  %v5995_v44 = vld [vmem:[#allocation34_spill] sm:$0xff]  ;;  %v6004_v13 = vld [vmem:[#allocation24_spill] sm:$0xff] }
 0x1a7   : > { %v1669_v32 = vmul.f32 %v4817_v15, %v1668_v55  ;;  %v862_v58 = vadd.f32 %v4878_v59, %v826_v2  ;;  %v952_v60 = vadd.f32 %v4756_v42, %v896_v40  ;;  %v990_v51 = vadd.f32 %v4889_v39, %v938_v53  ;;  %v5998_v59 = vld [vmem:[#allocation19_spill] sm:$0xff]  ;;  %v5999_v42 = vld [vmem:[#allocation25_spill] sm:$0xff] }
 0x1a8   : > { %1647 = vrot.lane.b32.xlu1 %v1642_v30, %s5994_s14  ;;  %1645 = vrot.lane.b32.xlu0 %v1641_v18, %s5994_s14  ;;  %v1064_v22 = vadd.f32 %v4832_v9, %v1008_v21  ;;  %v861_v27 = vadd.f32 %v5995_v44, %v825_v56  ;;  %v951_v7 = vadd.f32 %v5996_v25, %v895_v61  ;;  %v5026_v9 = vld [vmem:[%s4163_s6 + $0x51] sm:$0x3]  ;;  %v1710_v4 = vstv %s4978_s10  ;;  %v6000_v18 = vld [vmem:[#allocation21_spill] sm:$0xff]  ;;  %v6006_v21 = vld [vmem:[#allocation27_spill] sm:$0xff]  ;;  %s5117_s10 = sld [smem:[#allocation3 + $0x8c]] }
 0x1a9   : > { %v989_v47 = vadd.f32 %v4896_v28, %v937_v33  ;;  %v1063_v30 = vadd.f32 %v5997_v31, %v1007_v41  ;;  %v910_v12 = vadd.f32 %v5998_v59, %v862_v58  ;;  %v1022_v8 = vadd.f32 %v5999_v42, %v990_v51  ;;  %v6001_v28 = vld [vmem:[#allocation26_spill] sm:$0xff]  ;;  %v6007_v58 = vld [vmem:[#allocation28_spill] sm:$0xff] }
 0x1aa   : > { %v5005_v24 = vpop.permute.xlu1 %1171  ;;  %v5015_v63 = vpop.permute.xlu0 %1169  ;;  %v1120_v39 = vadd.f32 %v1116_v38, %v1064_v22  ;;  %v909_v0 = vadd.f32 %v6000_v18, %v861_v27  ;;  %v1145_v34 = vmul.f32 %v4556_v49, %v1144_v43  ;;  %v6002_v38 = vld [vmem:[#allocation23_spill] sm:$0xff]  ;;  %v996_v2 = vadd.f32 %v4899_v10, %v952_v60 }
 0x1ab   : > { %v1021_v5 = vadd.f32 %v6001_v28, %v989_v47  ;;  %v1119_v29 = vadd.f32 %v1114_v45, %v1063_v30  ;;  %v966_v54 = vadd.f32 %v6002_v38, %v910_v12  ;;  %v1078_v53 = vadd.f32 %v6003_v26, %v1022_v8  ;;  %v6008_v27 = vld [vmem:[#allocation35_spill] sm:$0xff]  ;;  %v6009_v47 = vld [vmem:[#allocation36_spill] sm:$0xff]  ;;  %v6010_v12 = vld [vmem:[#allocation29_spill] sm:$0xff] }
 0x1ac   : > { %1661 = vrot.lane.b32.xlu1 %v1656_v14, %s5994_s14  ;;  %1659 = vrot.lane.b32.xlu0 %v1655_v35, %s5994_s14  ;;  %v1724_v56 = vstv %s4993_s11  ;;  %v965_v33 = vadd.f32 %v6004_v13, %v909_v0  ;;  %v995_v45 = vadd.f32 %v4907_v52, %v951_v7  ;;  %v6005_v14 = vld [vmem:[#allocation33_spill] sm:$0xff]  ;;  %v1712_v43 = vmul.f32 %v5026_v9, %v1710_v4  ;;  %s5121_s11 = sld [smem:[#allocation3 + $0x81]] }
 0x1ad   : > { %v1077_v40 = vadd.f32 %v6005_v14, %v1021_v5  ;;  %v1036_v35 = vadd.f32 %v6006_v21, %v996_v2  ;;  %v1133_v10 = vmul.f32 %v4556_v49, %v1132_v20  ;;  %v1148_v61 = vadd.f32 %v1146_v48, %v1120_v39 }
 0x1ae   : > { %v5033_v19 = vpop.permute.xlu1 %1185  ;;  %v5042_v55 = vpop.permute.xlu0 %1183  ;;  %v1711_v41 = vmul.f32 %v5037_v23, %v1710_v4  ;;  %v1035_v52 = vadd.f32 %v6007_v58, %v995_v45  ;;  %v1138_v60 = vstv %s5007_s17  ;;  %v1147_v22 = vadd.f32 %v1145_v34, %v1119_v29  ;;  %s5131_s17 = sld [smem:[#allocation3 + $0x22]] }
 0x1af   : > { %v1002_v44 = vadd.f32 %v4924_v57, %v966_v54  ;;  %v1092_v25 = vadd.f32 %v6008_v27, %v1036_v35  ;;  %v1130_v20 = vadd.f32 %v4951_v17, %v1078_v53  ;;  %v1001_v7 = vadd.f32 %v4933_v50, %v965_v33  ;;  %v6011_v50 = vld [vmem:[#allocation30_spill] sm:$0xff] }
 0x1b0   : > { %1675 = vrot.lane.b32.xlu1 %v1670_v37, %s5994_s14  ;;  %1673 = vrot.lane.b32.xlu0 %v1669_v32, %s5994_s14  ;;  %v1726_v37 = vmul.f32 %v5026_v9, %v1724_v56  ;;  %v1091_v31 = vadd.f32 %v6009_v47, %v1035_v52  ;;  %v1129_v30 = vadd.f32 %v4956_v3, %v1077_v40  ;;  %v1738_v8 = vstv %s5029_s13  ;;  %s5141_s13 = sld [smem:[#allocation3 + $0x46]] }
 0x1b1   : > { %v1050_v42 = vadd.f32 %v6010_v12, %v1002_v44  ;;  %v1162_v57 = vadd.f32 %v4984_v36, %v1130_v20  ;;  %v1725_v17 = vmul.f32 %v5037_v23, %v1724_v56  ;;  %v1049_v39 = vadd.f32 %v6011_v50, %v1001_v7 }
 0x1b2   : > { %v1200_v51 = vpop.permute.xlu1 %1199  ;;  %v1198_v48 = vpop.permute.xlu0 %1197  ;;  %v1161_v4 = vadd.f32 %v4990_v6, %v1129_v30  ;;  %v1140_v3 = vmul.f32 %v4551_v1, %v1138_v60  ;;  %v1136_v36 = vadd.f32 %v4961_v11, %v1092_v25  ;;  %v1139_v28 = vmul.f32 %v4556_v49, %v1138_v60  ;;  %v6013_v60 = vld [vmem:[#allocation17_spill] sm:$0xff] }
 0x1b3   : > { %v5064_v32 = vadd.f32 %v1200_v51, %v1148_v61  ;;  %v5069_v59 = vadd.f32 %v1198_v48, %v1147_v22  ;;  %v1106_v0 = vadd.f32 %v4926_v62, %v1050_v42  ;;  %v1105_v34 = vadd.f32 %v4936_v46, %v1049_v39 }
 0x1b4   : > { %1717 = vrot.lane.b32.xlu1 %v1712_v43, %s5988_s0  ;;  %1715 = vrot.lane.b32.xlu0 %v1711_v41, %s5988_s0  ;;  %v1135_v38 = vadd.f32 %v1133_v10, %v1091_v31  ;;  %v1740_v1 = vmul.f32 %v5026_v9, %v1738_v8  ;;  %v1176_v6 = vadd.f32 %v5005_v24, %v1136_v36  ;;  %v1752_v11 = vstv %s5056_s15  ;;  %v6012_v41 = vld [vmem:[#allocation16_spill] sm:$0xff]  ;;  %s5154_s15 = sld [smem:[#allocation3 + $0x6a]] }
 0x1b5   : > { %v1739_v62 = vmul.f32 %v5037_v23, %v1738_v8  ;;  %v1142_v46 = vadd.f32 %v1140_v3, %v1106_v0  ;;  %v1141_v56 = vadd.f32 %v1139_v28, %v1105_v34  ;;  %v1754_v24 = vmul.f32 %v5026_v9, %v1752_v11 }
 0x1b6   : > { %v1214_v18 = vpop.permute.xlu1 %1213  ;;  %v1212_v29 = vpop.permute.xlu0 %1211  ;;  %v1175_v49 = vadd.f32 %v5015_v63, %v1135_v38  ;;  %v1753_v63 = vmul.f32 %v5037_v23, %v1752_v11  ;;  %v1766_v45 = vstv %s5077_s26  ;;  %v1266_v43 = vstv %s5082_s2  ;;  %s5165_s26 = sld [smem:[#allocation3 + $0x8e]] }
 0x1b7   : > { %v1218_v5 = vadd.f32 %v1214_v18, %v1162_v57  ;;  %v1217_v54 = vadd.f32 %v1212_v29, %v1161_v4  ;;  %v1190_v33 = vadd.f32 %v5033_v19, %v1142_v46  ;;  %v1189_v14 = vadd.f32 %v5042_v55, %v1141_v56  ;;  %v5158_v46 = vld [vmem:[%s4163_s6 + $0x4a] sm:$0xff]  ;;  %s5172_s2 = sld [smem:[#allocation3 + $0x23]] }
 0x1b8   : > { %1731 = vrot.lane.b32.xlu1 %v1726_v37, %s5988_s0  ;;  %1729 = vrot.lane.b32.xlu0 %v1725_v17, %s5988_s0  ;;  %v1768_v19 = vmul.f32 %v5026_v9, %v1766_v45  ;;  %v1767_v61 = vmul.f32 %v5037_v23, %v1766_v45  ;;  %v1268_v58 = vmul.f32 %v6012_v41, %v1266_v43  ;;  %v1780_v55 = vstv %s5094_s27  ;;  %s5174_s27 = sld [smem:[#allocation3 + $0x18]] }
 0x1b9   : > { %v1267_v51 = vmul.f32 %v6013_v60, %v1266_v43  ;;  %v1272_v22 = vstv %s5097_s30  ;;  %v1782_v25 = vmul.f32 %v5026_v9, %v1780_v55  ;;  %v1781_v48 = vmul.f32 %v5037_v23, %v1780_v55  ;;  %s5181_s30 = sld [smem:[#allocation3 + $0x47]] }
 0x1ba   : > { %v1228_v2 = vpop.permute.xlu1 %1227  ;;  %v1226_v53 = vpop.permute.xlu0 %1225  ;;  %v1270_v20 = vadd.f32 %v1268_v58, %v1218_v5  ;;  %v1274_v7 = vmul.f32 %v6012_v41, %v1272_v22  ;;  %v1794_v47 = vstv %s5105_s9  ;;  %v1273_v30 = vmul.f32 %v6013_v60, %v1272_v22  ;;  %s5183_s9 = sld [smem:[#allocation3 + $0x3c]] }
 0x1bb   : > { %v1232_v26 = vadd.f32 %v1228_v2, %v1176_v6  ;;  %v1231_v13 = vadd.f32 %v1226_v53, %v1175_v49  ;;  %v1796_v17 = vmul.f32 %v5026_v9, %v1794_v47  ;;  %v1795_v50 = vmul.f32 %v5037_v23, %v1794_v47  ;;  %v5151_v6 = vld [vmem:[%s4163_s6 + $0x52] sm:$0x3] }
 0x1bc   : > { %1745 = vrot.lane.b32.xlu1 %v1740_v1, %s5988_s0  ;;  %1743 = vrot.lane.b32.xlu0 %v1739_v62, %s5988_s0  ;;  %v1808_v4 = vstv %s5117_s10  ;;  %v1284_v36 = vstv %s5121_s11  ;;  %s5193_s10 = sld [smem:[#allocation3 + $0x60]] }
 0x1bd   : > { %v1276_v8 = vadd.f32 %v1274_v7, %v1232_v26  ;;  %v1275_v18 = vadd.f32 %v1273_v30, %v1231_v13  ;;  %v1810_v34 = vmul.f32 %v5026_v9, %v1808_v4  ;;  %v1286_v1 = vmul.f32 %v6012_v41, %v1284_v36  ;;  %s5201_s11 = sld [smem:[#allocation3 + $0x8f]] }
 0x1be   : > { %v1242_v40 = vpop.permute.xlu1 %1241  ;;  %v1240_v35 = vpop.permute.xlu0 %1239  ;;  %v1850_v62 = vstv %s5131_s17  ;;  %v1285_v2 = vmul.f32 %v6013_v60, %v1284_v36  ;;  %v1406_v47 = vstv %s5174_s27  ;;  %s5205_s17 = sld [smem:[#allocation3 + $0x84]] }
 0x1bf   : > { %v1246_v21 = vadd.f32 %v1242_v40, %v1190_v33  ;;  %v1245_v10 = vadd.f32 %v1240_v35, %v1189_v14  ;;  %v1852_v13 = vmul.f32 %v5151_v6, %v1850_v62  ;;  %v1851_v33 = vmul.f32 %v5158_v46, %v1850_v62  ;;  %s3505_s27 = sld [smem:[#allocation3 + $0x66]] }
 0x1c0   : > { %1759 = vrot.lane.b32.xlu1 %v1754_v24, %s5988_s0  ;;  %1757 = vrot.lane.b32.xlu0 %v1753_v63, %s5988_s0  ;;  %v1864_v63 = vstv %s5141_s13  ;;  %s3489_s13 = sld [smem:[#allocation3 + $0x3f]] }
 0x1c1   : > { %v1866_v35 = vmul.f32 %v5151_v6, %v1864_v63 }
 0x1c2   : > { %v1256_v52 = vpop.permute.xlu1 %1255  ;;  %v1254_v44 = vpop.permute.xlu0 %1253  ;;  %v1418_v62 = vstv %s5193_s10  ;;  %s5277_s10 = sld [smem:[#allocation3 + $0x69]] }
 0x1c3   : > { %v1260_v37 = vadd.f32 %v1256_v52, %v5064_v32  ;;  %v1259_v27 = vadd.f32 %v1254_v44, %v5069_v59  ;;  %v1269_v32 = vadd.f32 %v1267_v51, %v1217_v54  ;;  %v1278_v59 = vstv %s5109_s12  ;;  %s5190_s12 = sld [smem:[#allocation3 + $0x6b]] }
 0x1c4   : > { %1773 = vrot.lane.b32.xlu1 %v1768_v19, %s5994_s14  ;;  %1771 = vrot.lane.b32.xlu0 %v1767_v61, %s5994_s14  ;;  %v1280_v39 = vmul.f32 %v6012_v41, %v1278_v59  ;;  %v1279_v0 = vmul.f32 %v6013_v60, %v1278_v59  ;;  %v1809_v54 = vmul.f32 %v5037_v23, %v1808_v4  ;;  %v1878_v19 = vstv %s5154_s15  ;;  %s3490_s15 = sld [smem:[#allocation3 + $0x63]] }
 0x1c5   : > { %v1288_v24 = vadd.f32 %v1286_v1, %v1260_v37  ;;  %v1287_v14 = vadd.f32 %v1285_v2, %v1259_v27  ;;  %v1880_v52 = vmul.f32 %v5151_v6, %v1878_v19  ;;  %v1879_v60 = vmul.f32 %v5158_v46, %v1878_v19 }
 0x1c6   : > { %v1298_v31 = vpop.permute.xlu1 %1297  ;;  %v1296_v42 = vpop.permute.xlu0 %1295  ;;  %v1282_v38 = vadd.f32 %v1280_v39, %v1246_v21  ;;  %v1281_v49 = vadd.f32 %v1279_v0, %v1245_v10  ;;  %v1865_v10 = vmul.f32 %v5158_v46, %v1864_v63  ;;  %v1892_v51 = vstv %s5165_s26  ;;  %s3503_s26 = sld [smem:[#allocation3 + $0x1e]] }
 0x1c7   : > { %v1302_v12 = vadd.f32 %v1298_v31, %v1270_v20  ;;  %v1301_v57 = vadd.f32 %v1296_v42, %v1269_v32  ;;  %v1893_v20 = vmul.f32 %v5158_v46, %v1892_v51  ;;  %v6014_v42 = vld [vmem:[#allocation18_spill] sm:$0xff]  ;;  %v1412_v4 = vstv %s5183_s9  ;;  %s5271_s9 = sld [smem:[#allocation3 + $0x8a]] }
 0x1c8   : > { %1787 = vrot.lane.b32.xlu1 %v1782_v25, %s5994_s14  ;;  %1785 = vrot.lane.b32.xlu0 %v1781_v48, %s5994_s14  ;;  %v1894_v25 = vmul.f32 %v5151_v6, %v1892_v51  ;;  %v1906_v48 = vstv %s5172_s2  ;;  %s3504_s2 = sld [smem:[#allocation3 + $0x42]] }
 0x1c9   : > { %v1908_v59 = vmul.f32 %v5151_v6, %v1906_v48 }
 0x1ca   : > { %v1312_v3 = vpop.permute.xlu1 %1311  ;;  %v1310_v5 = vpop.permute.xlu0 %1309 }
 0x1cb   : > { %v1316_v28 = vadd.f32 %v1312_v3, %v1276_v8  ;;  %v1315_v29 = vadd.f32 %v1310_v5, %v1275_v18 }
 0x1cc   : > { %1801 = vrot.lane.b32.xlu1 %v1796_v17, %s5994_s14  ;;  %1799 = vrot.lane.b32.xlu0 %v1795_v50, %s5994_s14  ;;  %v1920_v17 = vstv %s5181_s30  ;;  %v6015_v50 = vld [vmem:[#allocation20_spill] sm:$0xff]  ;;  %s5269_s30 = sld [smem:[#allocation3 + $0x21]] }
 0x1cd   : > { %v1407_v39 = vmul.f32 %v6015_v50, %v1406_v47  ;;  %v1922_v36 = vmul.f32 %v5151_v6, %v1920_v17  ;;  %v1921_v5 = vmul.f32 %v5158_v46, %v1920_v17  ;;  %v1413_v1 = vmul.f32 %v6015_v50, %v1412_v4 }
 0x1ce   : > { %v1326_v11 = vpop.permute.xlu1 %1325  ;;  %v1324_v53 = vpop.permute.xlu0 %1323 }
 0x1cf   : > { %v1330_v26 = vadd.f32 %v1326_v11, %v1282_v38  ;;  %v1329_v56 = vadd.f32 %v1324_v53, %v1281_v49 }
 0x1d0   : > { %1815 = vrot.lane.b32.xlu1 %v1810_v34, %s5994_s14  ;;  %1813 = vrot.lane.b32.xlu0 %v1809_v54, %s5994_s14  ;;  %v1934_v34 = vstv %s5190_s12  ;;  %s5273_s12 = sld [smem:[#allocation3 + $0x45]] }
 0x1d2   : > { %v1340_v45 = vpop.permute.xlu1 %1339  ;;  %v1338_v43 = vpop.permute.xlu0 %1337 }
 0x1d3   : > { %v1344_v40 = vadd.f32 %v1340_v45, %v1288_v24  ;;  %v1343_v21 = vadd.f32 %v1338_v43, %v1287_v14  ;;  %v1948_v24 = vstv %s5201_s11  ;;  %v1419_v45 = vmul.f32 %v6015_v50, %v1418_v62  ;;  %s5281_s11 = sld [smem:[#allocation3 + $0x8d]] }
 0x1d4   : > { %1857 = vrot.lane.b32.xlu1 %v1852_v13, %s5988_s0  ;;  %1855 = vrot.lane.b32.xlu0 %v1851_v33, %s5988_s0  ;;  %v1420_v13 = vmul.f32 %v6014_v42, %v1418_v62  ;;  %v1424_v14 = vstv %s5205_s17  ;;  %v1949_v19 = vmul.f32 %v5158_v46, %v1948_v24  ;;  %s5294_s17 = sld [smem:[#allocation6]] }
 0x1d6   : > { %v1354_v61 = vpop.permute.xlu1 %1353  ;;  %v1352_v58 = vpop.permute.xlu0 %1351 }
 0x1d7   : > { %v1358_v41 = vadd.f32 %v1354_v61, %v1302_v12  ;;  %v1357_v55 = vadd.f32 %v1352_v58, %v1301_v57  ;;  %v1907_v12 = vmul.f32 %v5158_v46, %v1906_v48  ;;  %v1408_v57 = vmul.f32 %v6014_v42, %v1406_v47 }
 0x1d8   : > { %1871 = vrot.lane.b32.xlu1 %v1866_v35, %s5988_s0  ;;  %1869 = vrot.lane.b32.xlu0 %v1865_v10, %s5988_s0  ;;  %v1950_v35 = vmul.f32 %v5151_v6, %v1948_v24  ;;  %v1426_v61 = vmul.f32 %v6014_v42, %v1424_v14 }
 0x1d9   : > { %v1409_v54 = vadd.f32 %v1407_v39, %v1357_v55  ;;  %v1425_v55 = vmul.f32 %v6015_v50, %v1424_v14 }
 0x1da   : > { %v1368_v22 = vpop.permute.xlu1 %1367  ;;  %v1366_v44 = vpop.permute.xlu0 %1365 }
 0x1db   : > { %v1372_v37 = vadd.f32 %v1368_v22, %v1316_v28  ;;  %v1371_v27 = vadd.f32 %v1366_v44, %v1315_v29  ;;  %v1410_v28 = vadd.f32 %v1408_v57, %v1358_v41  ;;  %v1414_v29 = vmul.f32 %v6014_v42, %v1412_v4 }
 0x1dc   : > { %1885 = vrot.lane.b32.xlu1 %v1880_v52, %s5988_s0  ;;  %1883 = vrot.lane.b32.xlu0 %v1879_v60, %s5988_s0 }
 0x1dd   : > { %v1416_v53 = vadd.f32 %v1414_v29, %v1372_v37  ;;  %v1415_v63 = vadd.f32 %v1413_v1, %v1371_v27  ;;  %v1558_v1 = vstv %s3490_s15  ;;  %s5335_s15 = sld [smem:[#allocation6 + $0x3]] }
 0x1de   : > { %v1382_v7 = vpop.permute.xlu1 %1381  ;;  %v1380_v32 = vpop.permute.xlu0 %1379 }
 0x1df   : > { %v1386_v31 = vadd.f32 %v1382_v7, %v1330_v26  ;;  %v1385_v30 = vadd.f32 %v1380_v32, %v1329_v56  ;;  %v1936_v26 = vmul.f32 %v5151_v6, %v1934_v34  ;;  %v1935_v56 = vmul.f32 %v5158_v46, %v1934_v34 }
 0x1e0   : > { %1899 = vrot.lane.b32.xlu1 %v1894_v25, %s5988_s0  ;;  %1897 = vrot.lane.b32.xlu0 %v1893_v20, %s5988_s0  ;;  %s3488_s0 = sld [smem:[#allocation3 + $0x1b]] }
 0x1e1   : > { %v1422_v10 = vadd.f32 %v1420_v13, %v1386_v31  ;;  %v1421_v58 = vadd.f32 %v1419_v45, %v1385_v30  ;;  %v1559_v13 = vmul.f32 %v4817_v15, %v1558_v1 }
 0x1e2   : > { %v1396_v8 = vpop.permute.xlu1 %1395  ;;  %v1394_v18 = vpop.permute.xlu0 %1393 }
 0x1e3   : > { %v1400_v3 = vadd.f32 %v1396_v8, %v1344_v40  ;;  %v1399_v0 = vadd.f32 %v1394_v18, %v1343_v21  ;;  %v1552_v18 = vstv %s3489_s13  ;;  %s5325_s13 = sld [smem:[#allocation6 + $0x2]] }
 0x1e4   : > { %1913 = vrot.lane.b32.xlu1 %v1908_v59, %s5994_s14  ;;  %1911 = vrot.lane.b32.xlu0 %v1907_v12, %s5994_s14  ;;  %v1554_v29 = vmul.f32 %v4807_v16, %v1552_v18 }
 0x1e5   : > { %v1428_v22 = vadd.f32 %v1426_v61, %v1400_v3  ;;  %v1427_v44 = vadd.f32 %v1425_v55, %v1399_v0 }
 0x1e6   : > { %v1438_v38 = vpop.permute.xlu1 %1437  ;;  %v1436_v49 = vpop.permute.xlu0 %1435  ;;  %v1546_v57 = vstv %s3488_s0  ;;  %s5310_s0 = sld [smem:[#allocation6 + $0x1]] }
 0x1e7   : > { %v1442_v11 = vadd.f32 %v1438_v38, %v1410_v28  ;;  %v1441_v2 = vadd.f32 %v1436_v49, %v1409_v54  ;;  %v1548_v39 = vmul.f32 %v4807_v16, %v1546_v57  ;;  %v1547_v3 = vmul.f32 %v4817_v15, %v1546_v57 }
 0x1e8   : > { %1927 = vrot.lane.b32.xlu1 %v1922_v36, %s5994_s14  ;;  %1925 = vrot.lane.b32.xlu0 %v1921_v5, %s5994_s14  ;;  %v1553_v54 = vmul.f32 %v4817_v15, %v1552_v18  ;;  %v1686_v18 = vstv %s3503_s26 }
 0x1ea   : > { %v1452_v33 = vpop.permute.xlu1 %1451  ;;  %v1450_v43 = vpop.permute.xlu0 %1449 }
 0x1eb   : > { %v1456_v40 = vadd.f32 %v1452_v33, %v1416_v53  ;;  %v1455_v21 = vadd.f32 %v1450_v43, %v1415_v63 }
 0x1ec   : > { %1941 = vrot.lane.b32.xlu1 %v1936_v26, %s5994_s14  ;;  %1939 = vrot.lane.b32.xlu0 %v1935_v56, %s5994_s14  ;;  %v1560_v26 = vmul.f32 %v4807_v16, %v1558_v1 }
 0x1ee   : > { %v1466_v41 = vpop.permute.xlu1 %1465  ;;  %v1464_v60 = vpop.permute.xlu0 %1463 }
 0x1ef   : > { %v1470_v52 = vadd.f32 %v1466_v41, %v1422_v10  ;;  %v1469_v51 = vadd.f32 %v1464_v60, %v1421_v58 }
 0x1f0   : > { %1955 = vrot.lane.b32.xlu1 %v1950_v35, %s5994_s14  ;;  %1953 = vrot.lane.b32.xlu0 %v1949_v19, %s5994_s14  ;;  %s3491_s14 = sld [smem:[#allocation3 + $0x87]] }
 0x1f2   : > { %v1480_v37 = vpop.permute.xlu1 %1479  ;;  %v1478_v25 = vpop.permute.xlu0 %1477 }
 0x1f3   : > { %v1484_v27 = vadd.f32 %v1480_v37, %v1428_v22  ;;  %v1483_v20 = vadd.f32 %v1478_v25, %v1427_v44 }
 0x1f6   : > { %v1494_v48 = vpop.permute.xlu1 %1493  ;;  %v1492_v47 = vpop.permute.xlu0 %1491  ;;  %v1564_v24 = vstv %s3491_s14  ;;  %s5956_s14 = sand.u32 1, %s3954_s19  }
 0x1f7   : > { %v1498_v7 = vadd.f32 %v1494_v48, %v1442_v11  ;;  %v1497_v31 = vadd.f32 %v1492_v47, %v1441_v2  ;;  %v1565_v35 = vmul.f32 %v4817_v15, %v1564_v24  ;;  %s5342_s26 = sshll.u32 %s5956_s14, 5 }
 0x1f9   : > { %v1550_v5 = vadd.f32 %v1548_v39, %v1498_v7  ;;  %v1549_v38 = vadd.f32 %v1547_v3, %v1497_v31 }
 0x1fa   : > { %v1508_v32 = vpop.permute.xlu1 %1507  ;;  %v1506_v59 = vpop.permute.xlu0 %1505 }
 0x1fb   : > { %v1512_v30 = vadd.f32 %v1508_v32, %v1456_v40  ;;  %v1511_v12 = vadd.f32 %v1506_v59, %v1455_v21  ;;  %v1566_v40 = vmul.f32 %v4807_v16, %v1564_v24 }
 0x1fd   : > { %v1556_v2 = vadd.f32 %v1554_v29, %v1512_v30  ;;  %v1555_v56 = vadd.f32 %v1553_v54, %v1511_v12  ;;  %v1698_v54 = vstv %s3505_s27  ;;  %s5363_s27 = scalar_lea.vmem [#allocation11], %s5342_s26 }
 0x1fe   : > { %v1522_v42 = vpop.permute.xlu1 %1521  ;;  %v1520_v8 = vpop.permute.xlu0 %1519 }
 0x1ff   : > { %v1526_v17 = vadd.f32 %v1522_v42, %v1470_v52  ;;  %v1525_v50 = vadd.f32 %v1520_v8, %v1469_v51 }
 0x201   : > { %v1562_v14 = vadd.f32 %v1560_v26, %v1526_v17  ;;  %v1561_v21 = vadd.f32 %v1559_v13, %v1525_v50  ;;  %v1826_v13 = vstv %s5269_s30 }
 0x202   : > { %v1536_v4 = vpop.permute.xlu1 %1535  ;;  %v1534_v36 = vpop.permute.xlu0 %1533 }
 0x203   : > { %v1540_v0 = vadd.f32 %v1536_v4, %v1484_v27  ;;  %v1539_v28 = vadd.f32 %v1534_v36, %v1483_v20 }
 0x205   : > { %v1568_v41 = vadd.f32 %v1566_v40, %v1540_v0  ;;  %v1567_v55 = vadd.f32 %v1565_v35, %v1539_v28  ;;  %v1688_v28 = vmul.f32 %v5026_v9, %v1686_v18  ;;  %v1699_v40 = vmul.f32 %v5037_v23, %v1698_v54 }
 0x206   : > { %v1578_v34 = vpop.permute.xlu1 %1577  ;;  %v1576_v11 = vpop.permute.xlu0 %1575 }
 0x207   : > { %v1582_v62 = vadd.f32 %v1578_v34, %v1550_v5  ;;  %v1581_v49 = vadd.f32 %v1576_v11, %v1549_v38  ;;  %v1687_v34 = vmul.f32 %v5037_v23, %v1686_v18  ;;  %v1692_v38 = vstv %s3504_s2  ;;  %s3986_s2 = smov 1  }
 0x208   : > { %v1844_v18 = vstv %s5281_s11 }
 0x20a   : > { %v1592_v53 = vpop.permute.xlu1 %1591  ;;  %v1590_v63 = vpop.permute.xlu0 %1589 }
 0x20b   : > { %v1596_v33 = vadd.f32 %v1592_v53, %v1556_v2  ;;  %v1595_v45 = vadd.f32 %v1590_v63, %v1555_v56  ;;  %v1693_v56 = vmul.f32 %v5037_v23, %v1692_v38  ;;  %v1700_v63 = vmul.f32 %v5026_v9, %v1698_v54 }
 0x20e   : > { %v1606_v43 = vpop.permute.xlu1 %1605  ;;  %v1604_v19 = vpop.permute.xlu0 %1603 }
 0x20f   : > { %v5239_v10 = vadd.f32 %v1606_v43, %v1562_v14  ;;  %v5241_v61 = vadd.f32 %v1604_v19, %v1561_v21  ;;  %v1704_v43 = vstv %s5271_s9  ;;  %v1832_v21 = vstv %s5273_s12 }
 0x212   : > { %v1620_v58 = vpop.permute.xlu1 %1619  ;;  %v1618_v60 = vpop.permute.xlu0 %1617 }
 0x213   : > { %v5243_v52 = vadd.f32 %v1620_v58, %v1568_v41  ;;  %v5245_v51 = vadd.f32 %v1618_v60, %v1567_v55  ;;  %v1828_v41 = vmul.f32 %v5151_v6, %v1826_v13 }
 0x216   : > { %v1634_v22 = vpop.permute.xlu1 %1633  ;;  %v1632_v37 = vpop.permute.xlu0 %1631 }
 0x217   : > { %v1638_v36 = vadd.f32 %v1634_v22, %v1582_v62  ;;  %v1637_v29 = vadd.f32 %v1632_v37, %v1581_v49  ;;  %v1694_v62 = vmul.f32 %v5026_v9, %v1692_v38  ;;  %v1827_v37 = vmul.f32 %v5158_v46, %v1826_v13 }
 0x219   : > { %v1690_v2 = vadd.f32 %v1688_v28, %v1638_v36  ;;  %v1689_v49 = vadd.f32 %v1687_v34, %v1637_v29 }
 0x21a   : > { %v1648_v16 = vpop.permute.xlu1 %1647  ;;  %v1646_v44 = vpop.permute.xlu0 %1645 }
 0x21b   : > { %v1652_v11 = vadd.f32 %v1648_v16, %v1596_v33  ;;  %v1651_v53 = vadd.f32 %v1646_v44, %v1595_v45  ;;  %v1706_v44 = vmul.f32 %v5026_v9, %v1704_v43 }
 0x21d   : > { %v1696_v45 = vadd.f32 %v1694_v62, %v1652_v11  ;;  %v1695_v60 = vadd.f32 %v1693_v56, %v1651_v53  ;;  %v1846_v11 = vmul.f32 %v5151_v6, %v1844_v18 }
 0x21e   : > { %v1662_v27 = vpop.permute.xlu1 %1661  ;;  %v1660_v25 = vpop.permute.xlu0 %1659 }
 0x21f   : > { %v1666_v33 = vadd.f32 %v1662_v27, %v5239_v10  ;;  %v1665_v55 = vadd.f32 %v1660_v25, %v5241_v61  ;;  %v1834_v10 = vmul.f32 %v5151_v6, %v1832_v21 }
 0x221   : > { %v1702_v25 = vadd.f32 %v1700_v63, %v1666_v33 }
 0x222   : > { %v5247_v15 = vpop.permute.xlu1 %1675  ;;  %v5249_v20 = vpop.permute.xlu0 %1673 }
 0x223   : > { %v1680_v61 = vadd.f32 %v5247_v15, %v5243_v52 }
 0x226   : > { %v1718_v48 = vpop.permute.xlu1 %1717  ;;  %v1716_v7 = vpop.permute.xlu0 %1715 }
 0x227   : > { %v1722_v24 = vadd.f32 %v1718_v48, %v1690_v2  ;;  %v1721_v14 = vadd.f32 %v1716_v7, %v1689_v49  ;;  %v1705_v48 = vmul.f32 %v5037_v23, %v1704_v43  ;;  %v1833_v7 = vmul.f32 %v5158_v46, %v1832_v21 }
 0x228   : > { %v1679_v23 = vadd.f32 %v5249_v20, %v5245_v51  ;;  %v1962_v2 = vstv %s5294_s17  ;;  %v1708_v51 = vadd.f32 %v1706_v44, %v1680_v61 }
 0x22a   : > { %v1732_v47 = vpop.permute.xlu1 %1731  ;;  %v1730_v31 = vpop.permute.xlu0 %1729  ;;  %v1707_v53 = vadd.f32 %v1705_v48, %v1679_v23 }
 0x22b   : > { %v1736_v16 = vadd.f32 %v1732_v47, %v1696_v45  ;;  %v1735_v27 = vadd.f32 %v1730_v31, %v1695_v60  ;;  %v1701_v31 = vadd.f32 %v1699_v40, %v1665_v55  ;;  %v1980_v40 = vstv %s5310_s0 }
 0x22c   : > { %v1997_v60 = vstv %s5325_s13 }
 0x22e   : > { %v5251_v32 = vpop.permute.xlu1 %1745  ;;  %v5253_v30 = vpop.permute.xlu0 %1743 }
 0x22f   : > { %v1750_v34 = vadd.f32 %v5251_v32, %v1702_v25  ;;  %v1749_v15 = vadd.f32 %v5253_v30, %v1701_v31 }
 0x232   : > { %v5255_v59 = vpop.permute.xlu1 %1759  ;;  %v5257_v12 = vpop.permute.xlu0 %1757 }
 0x233   : > { %v1764_v30 = vadd.f32 %v5255_v59, %v1708_v51  ;;  %v1763_v63 = vadd.f32 %v5257_v12, %v1707_v53 }
 0x236   : > { %v1774_v42 = vpop.permute.xlu1 %1773  ;;  %v1772_v57 = vpop.permute.xlu0 %1771 }
 0x237   : > { %v1778_v19 = vadd.f32 %v1774_v42, %v1722_v24  ;;  %v1777_v22 = vadd.f32 %v1772_v57, %v1721_v14  ;;  %v1838_v42 = vstv %s5277_s10 }
 0x238   : > { %v1840_v54 = vmul.f32 %v5151_v6, %v1838_v42  ;;  %v1839_v52 = vmul.f32 %v5158_v46, %v1838_v42 }
 0x239   : > { %v1830_v9 = vadd.f32 %v1828_v41, %v1778_v19  ;;  %v1829_v29 = vadd.f32 %v1827_v37, %v1777_v22 }
 0x23a   : > { %v1788_v17 = vpop.permute.xlu1 %1787  ;;  %v5259_v8 = vpop.permute.xlu0 %1785 }
 0x23b   : > { %v1792_v47 = vadd.f32 %v1788_v17, %v1736_v16  ;;  %v1791_v28 = vadd.f32 %v5259_v8, %v1735_v27 }
 0x23d   : > { %v1836_v8 = vadd.f32 %v1834_v10, %v1792_v47  ;;  %v1835_v56 = vadd.f32 %v1833_v7, %v1791_v28 }
 0x23e   : > { %v5261_v50 = vpop.permute.xlu1 %1801  ;;  %v5263_v39 = vpop.permute.xlu0 %1799 }
 0x23f   : > { %v1806_v20 = vadd.f32 %v5261_v50, %v1750_v34  ;;  %v1805_v49 = vadd.f32 %v5263_v39, %v1749_v15 }
 0x241   : > { %v1842_v21 = vadd.f32 %v1840_v54, %v1806_v20  ;;  %v1841_v45 = vadd.f32 %v1839_v52, %v1805_v49 }
 0x242   : > { %v5265_v4 = vpop.permute.xlu1 %1815  ;;  %v5267_v3 = vpop.permute.xlu0 %1813 }
 0x243   : > { %v1820_v39 = vadd.f32 %v5265_v4, %v1764_v30 }
 0x245   : > { %v1848_v22 = vadd.f32 %v1846_v11, %v1820_v39 }
 0x246   : > { %v1858_v0 = vpop.permute.xlu1 %1857  ;;  %v1856_v5 = vpop.permute.xlu0 %1855 }
 0x247   : > { %v1862_v38 = vadd.f32 %v1858_v0, %v1830_v9  ;;  %v1861_v17 = vadd.f32 %v1856_v5, %v1829_v29  ;;  %v1845_v5 = vmul.f32 %v5158_v46, %v1844_v18  ;;  %v1819_v46 = vadd.f32 %v5267_v3, %v1763_v63 }
 0x248   : > { %v2014_v18 = vstv %s5335_s15 }
 0x249   : > { %v1847_v48 = vadd.f32 %v1845_v5, %v1819_v46 }
 0x24a   : > { %v5279_v1 = vpop.permute.xlu1 %1871  ;;  %v5284_v26 = vpop.permute.xlu0 %1869 }
 0x24b   : > { %v1876_v6 = vadd.f32 %v5279_v1, %v1836_v8  ;;  %v1875_v50 = vadd.f32 %v5284_v26, %v1835_v56 }
 0x24e   : > { %v5292_v35 = vpop.permute.xlu1 %1885  ;;  %v5298_v58 = vpop.permute.xlu0 %1883 }
 0x24f   : > { %v1890_v26 = vadd.f32 %v5292_v35, %v1842_v21  ;;  %v1889_v4 = vadd.f32 %v5298_v58, %v1841_v45 }
 0x252   : > { %v5308_v36 = vpop.permute.xlu1 %1899  ;;  %v5314_v57 = vpop.permute.xlu0 %1897 }
 0x253   : > { %v1904_v35 = vadd.f32 %v5308_v36, %v1848_v22  ;;  %v1903_v58 = vadd.f32 %v5314_v57, %v1847_v48 }
 0x256   : > { %v1914_v62 = vpop.permute.xlu1 %1913  ;;  %v1912_v0 = vpop.permute.xlu0 %1911 }
 0x257   : > { %v1918_v32 = vadd.f32 %v1914_v62, %v1862_v38  ;;  %v1917_v13 = vadd.f32 %v1912_v0, %v1861_v17 }
 0x259   : > { %v1964_v24 = vadd.f32 %v1962_v2, %v1918_v32  ;;  %v1963_v14 = vadd.f32 %v1962_v2, %v1917_v13 }
 0x25a   : > { %v1928_v43 = vpop.permute.xlu1 %1927  ;;  %v1926_v1 = vpop.permute.xlu0 %1925 }
 0x25b   : > { %v1966_v33 = vmax.f32 %v1964_v24, 0.0  ;;  %v1932_v59 = vadd.f32 %v1928_v43, %v1876_v6  ;;  %v1965_v12 = vmax.f32 %v1963_v14, 0.0  ;;  %v1931_v19 = vadd.f32 %v1926_v1, %v1875_v50 }
 0x25d   : > { %v1982_v41 = vadd.f32 %v1980_v40, %v1932_v59  ;;  %1971 = vrot.lane.b32.xlu1 %v1966_v33, %s3986_s2  ;;  %v1981_v55 = vadd.f32 %v1980_v40, %v1931_v19  ;;  %1969 = vrot.lane.b32.xlu0 %v1965_v12, %s3986_s2 }
 0x25e   : > { %v1942_v3 = vpop.permute.xlu1 %1941  ;;  %v1940_v44 = vpop.permute.xlu0 %1939 }
 0x25f   : > { %v1984_v37 = vmax.f32 %v1982_v41, 0.0  ;;  %v1946_v16 = vadd.f32 %v1942_v3, %v1890_v26  ;;  %v1983_v10 = vmax.f32 %v1981_v55, 0.0  ;;  %v1945_v27 = vadd.f32 %v1940_v44, %v1889_v4 }
 0x261   : > { %v1999_v7 = vadd.f32 %v1997_v60, %v1946_v16  ;;  %1989 = vrot.lane.b32.xlu1 %v1984_v37, %s3986_s2  ;;  %v1998_v42 = vadd.f32 %v1997_v60, %v1945_v27  ;;  %1987 = vrot.lane.b32.xlu0 %v1983_v10, %s3986_s2 }
 0x262   : > { %v1956_v61 = vpop.permute.xlu1 %1955  ;;  %v1954_v9 = vpop.permute.xlu0 %1953 }
 0x263   : > { %v2001_v25 = vmax.f32 %v1999_v7, 0.0  ;;  %v1960_v47 = vadd.f32 %v1956_v61, %v1904_v35  ;;  %v2000_v23 = vmax.f32 %v1998_v42, 0.0  ;;  %v1959_v31 = vadd.f32 %v1954_v9, %v1903_v58 }
 0x265   : > { %v2016_v28 = vadd.f32 %v2014_v18, %v1960_v47  ;;  %2006 = vrot.lane.b32.xlu1 %v2001_v25, %s3986_s2  ;;  %v2015_v29 = vadd.f32 %v2014_v18, %v1959_v31  ;;  %2004 = vrot.lane.b32.xlu0 %v2000_v23, %s3986_s2 }
 0x267   : > { %v2018_v36 = vmax.f32 %v2016_v28, 0.0  ;;  %v2017_v34 = vmax.f32 %v2015_v29, 0.0 }
 0x269   : > { %2023 = vrot.lane.b32.xlu1 %v2018_v36, %s3986_s2  ;;  %2021 = vrot.lane.b32.xlu0 %v2017_v34, %s3986_s2 }
 0x2cf   : > { %v1972_v57 = vpop.permute.xlu1 %1971  ;;  %v1970_v38 = vpop.permute.xlu0 %1969 }
 0x2d0   : > { %1978 = vst.msk [vmem:[#allocation2 + $0x8] sm:$0x3] %vm1977_vm0, %v1972_v57 }
 0x2d1   : > { %1976 = vst.msk [vmem:[#allocation2] sm:$0xff] %vm1975_vm1, %v1970_v38 }
 0x2d3   : > { %v1990_v54 = vpop.permute.xlu1 %1989  ;;  %v1988_v52 = vpop.permute.xlu0 %1987 }
 0x2d4   : > { %1995 = vst.msk [vmem:[#allocation2 + $0x18] sm:$0x3] %vm1977_vm0, %v1990_v54 }
 0x2d5   : > { %1994 = vst.msk [vmem:[#allocation2 + $0x10] sm:$0xff] %vm1975_vm1, %v1988_v52 }
 0x2d7   : > { %v2007_v15 = vpop.permute.xlu1 %2006  ;;  %v2005_v17 = vpop.permute.xlu0 %2004 }
 0x2d8   : > { %2012 = vst.msk [vmem:[#allocation2 + $0x28] sm:$0x3] %vm1977_vm0, %v2007_v15 }
 0x2d9   : > { %2011 = vst.msk [vmem:[#allocation2 + $0x20] sm:$0xff] %vm1975_vm1, %v2005_v17  ;;  %2033 = sbr.rel (%p3533_p2) target bundleno = 742 (0x2e6), region = 60 }
 0x2db   : > { %v2024_v11 = vpop.permute.xlu1 %2023  ;;  %v2022_v2 = vpop.permute.xlu0 %2021 }
 0x2dc   : > { %2029 = vst.msk [vmem:[#allocation2 + $0x38] sm:$0x3] %vm1977_vm0, %v2024_v11 }
 0x2dd   : > { %2028 = vst.msk [vmem:[#allocation2 + $0x30] sm:$0xff] %vm1975_vm1, %v2022_v2 }
 0x2de   : > { %v2034_v62 = vld [vmem:[#allocation2 + $0x2] sm:$0x1]  ;;  %vm2038_vm2 = vcmask 131080   ;;  %v2035_v51 = vld [vmem:[#allocation2 + $0x12] sm:$0x1] }
 0x2df   : > { %2039 = vst.msk [vmem:[#allocation2] sm:$0x1] %vm2038_vm2, %v2034_v62  ;;  %2040 = vst.msk [vmem:[#allocation2 + $0x10] sm:$0x1] %vm2038_vm2, %v2035_v51 }
 0x2e0   : > { %v2036_v20 = vld [vmem:[#allocation2 + $0x22] sm:$0x1] }
 0x2e1   : > { %2041 = vst.msk [vmem:[#allocation2 + $0x20] sm:$0x1] %vm2038_vm2, %v2036_v20 }
 0x2e4   : > { %v2037_v8 = vld [vmem:[#allocation2 + $0x32] sm:$0x1] }
 0x2e5   : > { %2042 = vst.msk [vmem:[#allocation2 + $0x30] sm:$0x1] %vm2038_vm2, %v2037_v8 }
 0x2e6 PF: > { %p3534_p11 = scmp.ne.s32.totalorder %s3962_s21, 1 }
 0x2e8   : > { %2046 = sbr.rel (%p3534_p11) target bundleno = 753 (0x2f1), region = 64 }
 0x2ed   : > { %v2047_v32 = vld [vmem:[#allocation2 + $0x7] sm:$0x1]  ;;  %vm2051_vm3 = vcmask 131080   ;;  %v2048_v0 = vld [vmem:[#allocation2 + $0x17] sm:$0x1] }
 0x2ee   : > { %2052 = vst.msk [vmem:[#allocation2 + $0x9] sm:$0x1] %vm2051_vm3, %v2047_v32  ;;  %2053 = vst.msk [vmem:[#allocation2 + $0x19] sm:$0x1] %vm2051_vm3, %v2048_v0  ;;  %v2049_v53 = vld [vmem:[#allocation2 + $0x27] sm:$0x1] }
 0x2ef   : > { %v2050_v49 = vld [vmem:[#allocation2 + $0x37] sm:$0x1]  ;;  %2054 = vst.msk [vmem:[#allocation2 + $0x29] sm:$0x1] %vm2051_vm3, %v2049_v53 }
 0x2f0   : > { %2055 = vst.msk [vmem:[#allocation2 + $0x39] sm:$0x1] %vm2051_vm3, %v2050_v49 }
 0x2f1 PF: > { %v2056_v56 = vld [vmem:[#allocation2] sm:$0xff]  ;;  %v2058_v13 = vld [vmem:[#allocation2 + $0x10] sm:$0xff]  ;;  %s6016_s30 = smov 126   ;;  %s6017_s9 = smov 127   ;;  %vm2096_vm4 = vcmask 7168   ;;  %vm2098_vm5 = vcmask 1024  }
 0x2f2   : > { %2072 = vrot.lane.b32.xlu0 %v2056_v56, %s6016_s30  ;;  %2076 = vrot.lane.b32.xlu1 %v2058_v13, %s6016_s30  ;;  %v2060_v24 = vld [vmem:[#allocation2 + $0x20] sm:$0xff]  ;;  %v2062_v50 = vld [vmem:[#allocation2 + $0x30] sm:$0xff]  ;;  %s3987_s12 = smov 2   ;;  %s3539_s10 = sld [smem:[#allocation8 + $0x25]]  ;;  %vm2146_vm6 = vcmask 146568   ;;  %vm2148_vm7 = vcmask 140424  }
 0x2f3   : > { %v3678_v14 = vld [vmem:[%s4163_s6 + $0x2] sm:$0xff]  ;;  %v3679_v40 = vld [vmem:[%s4163_s6 + $0x1a] sm:$0xff]  ;;  %s3538_s11 = sld [smem:[#allocation8 + $0x1]]  ;;  %vm3134_vm8 = vcmask 130048   ;;  %p6019_p1 = scmp.ne.s32.totalorder %s5961_s7, 0 }
 0x2f4   : > { %s3541_s17 = sld [smem:[#allocation8 + $0x6d]] }
 0x2f5   : > { %v2057_v30 = vld [vmem:[#allocation2 + $0x8] sm:$0x3]  ;;  %v2059_v6 = vld [vmem:[#allocation2 + $0x18] sm:$0x3]  ;;  %s3540_s0 = sld [smem:[#allocation8 + $0x49]] }
 0x2f6   : > { %2074 = vrot.lane.b32.xlu0 %v2057_v30, %s6016_s30  ;;  %2078 = vrot.lane.b32.xlu1 %v2059_v6, %s6016_s30  ;;  %v2061_v5 = vld [vmem:[#allocation2 + $0x28] sm:$0x3]  ;;  %s5393_s13 = sld [smem:[#allocation8 + $0x26]] }
 0x2f7   : > { %v2063_v63 = vld [vmem:[#allocation2 + $0x38] sm:$0x3]  ;;  %s3542_s15 = sld [smem:[#allocation8 + $0x2]] }
 0x2f8   : > { %v2178_v10 = vstv %s3539_s10  ;;  %s5400_s26 = sld [smem:[#allocation8 + $0x6e]] }
 0x2f9   : > { %v2170_v27 = vstv %s3538_s11  ;;  %s3544_s2 = sld [smem:[#allocation8 + $0x4a]] }
 0x2fa   : > { %2082 = vrot.lane.b32.xlu1 %v2061_v5, %s6016_s30  ;;  %2080 = vrot.lane.b32.xlu0 %v2060_v24, %s6016_s30  ;;  %v2194_v61 = vstv %s3541_s17  ;;  %s3550_s10 = sld [smem:[#allocation8 + $0x4]] }
 0x2fb   : > { %v2186_v25 = vstv %s3540_s0  ;;  %s3553_s11 = sld [smem:[#allocation8 + $0x70]] }
 0x2fc   : > { %v2210_v28 = vstv %s5393_s13  ;;  %s3552_s17 = sld [smem:[#allocation8 + $0x4c]] }
 0x2fd   : > { %v2202_v29 = vstv %s3542_s15  ;;  %s3555_s0 = sld [smem:[#allocation8 + $0x29]] }
 0x2fe   : > { %2086 = vrot.lane.b32.xlu1 %v2063_v63, %s6016_s30  ;;  %2084 = vrot.lane.b32.xlu0 %v2062_v50, %s6016_s30  ;;  %v2226_v38 = vstv %s5400_s26  ;;  %s3554_s13 = sld [smem:[#allocation8 + $0x5]] }
 0x2ff   : > { %v2218_v54 = vstv %s3544_s2  ;;  %s3557_s15 = sld [smem:[#allocation8 + $0x71]] }
 0x300   : > { %v2251_v2 = vstv %s3550_s10  ;;  %s3556_s26 = sld [smem:[#allocation8 + $0x4d]] }
 0x301   : > { %v2275_v20 = vstv %s3553_s11  ;;  %s3563_s2 = sld [smem:[#allocation8 + $0x2b]] }
 0x302   : > { %3129 = vrot.lane.b32.xlu0 %v3678_v14, %s6017_s9  ;;  %3141 = vrot.lane.b32.xlu1 %v3679_v40, %s6017_s9  ;;  %v2267_v8 = vstv %s3552_s17  ;;  %s3565_s10 = sld [smem:[#allocation8 + $0x73]] }
 0x303   : > { %v2291_v53 = vstv %s3555_s0  ;;  %s3564_s11 = sld [smem:[#allocation8 + $0x4f]] }
 0x304   : > { %v2283_v49 = vstv %s3554_s13  ;;  %s3567_s17 = sld [smem:[#allocation8 + $0x2c]] }
 0x305   : > { %v2307_v30 = vstv %s3557_s15  ;;  %s3566_s0 = sld [smem:[#allocation8 + $0x8]] }
 0x306   : > { %v2299_v6 = vstv %s3556_s26  ;;  %s3569_s13 = sld [smem:[#allocation8 + $0x74]] }
 0x307   : > { %v2340_v50 = vstv %s3563_s2  ;;  %s3568_s15 = sld [smem:[#allocation8 + $0x50]] }
 0x308   : > { %s3575_s26 = sld [smem:[#allocation8 + $0x2e]] }
 0x309   : > { %s3574_s2 = sld [smem:[#allocation8 + $0xa]] }
 0x30a   : > { %s5531_s14 = sld [smem:[#allocation8 + $0x5e]] }
 0x30b   : > { %s5549_s1 = sld [smem:[#allocation8 + $0x27]] }
 0x30c   : > { %s5555_s3 = sld [smem:[#allocation8 + $0x83]] }
 0x364   : > { %v2073_v43 = vpop.permute.xlu0 %2072  ;;  %v2077_v39 = vpop.permute.xlu1 %2076 }
 0x365   : > { %2097 = vst.msk [vmem:[#allocation2] sm:$0xff] %vm2096_vm4, %v2073_v43  ;;  %2100 = vst.msk [vmem:[#allocation2 + $0x10] sm:$0xff] %vm2096_vm4, %v2077_v39  ;;  %v2356_v39 = vstv %s3565_s10  ;;  %s3576_s10 = sld [smem:[#allocation8 + $0x52]] }
 0x368   : > { %v2075_v21 = vpop.permute.xlu0 %2074  ;;  %v2079_v33 = vpop.permute.xlu1 %2078 }
 0x369   : > { %2099 = vst.msk [vmem:[#allocation2 + $0x8] sm:$0x3] %vm2098_vm5, %v2075_v21  ;;  %2101 = vst.msk [vmem:[#allocation2 + $0x18] sm:$0x3] %vm2098_vm5, %v2079_v33  ;;  %v2348_v21 = vstv %s3564_s11  ;;  %s3579_s11 = sld [smem:[#allocation8 + $0x2f]] }
 0x36c   : > { %v2106_v59 = vld [vmem:[#allocation2] sm:$0xff]  ;;  %v2083_v1 = vpop.permute.xlu1 %2082  ;;  %v2081_v46 = vpop.permute.xlu0 %2080  ;;  %v2108_v45 = vld [vmem:[#allocation2 + $0x10] sm:$0xff] }
 0x36d   : > { %2122 = vrot.lane.b32.xlu0 %v2106_v59, %s3987_s12  ;;  %2103 = vst.msk [vmem:[#allocation2 + $0x28] sm:$0x3] %vm2098_vm5, %v2083_v1  ;;  %v2372_v1 = vstv %s3567_s17  ;;  %s3578_s17 = sld [smem:[#allocation8 + $0xb]] }
 0x36e   : > { %2102 = vst.msk [vmem:[#allocation2 + $0x20] sm:$0xff] %vm2096_vm4, %v2081_v46  ;;  %v2364_v46 = vstv %s3566_s0  ;;  %s3581_s0 = sld [smem:[#allocation8 + $0x77]] }
 0x370   : > { %v2107_v12 = vld [vmem:[#allocation2 + $0x8] sm:$0x3]  ;;  %v2087_v19 = vpop.permute.xlu1 %2086  ;;  %v2085_v26 = vpop.permute.xlu0 %2084  ;;  %v2109_v41 = vld [vmem:[#allocation2 + $0x18] sm:$0x3] }
 0x371   : > { %2124 = vrot.lane.b32.xlu1 %v2107_v12, %s3987_s12  ;;  %2126 = vrot.lane.b32.xlu0 %v2108_v45, %s3987_s12  ;;  %2105 = vst.msk [vmem:[#allocation2 + $0x38] sm:$0x3] %vm2098_vm5, %v2087_v19  ;;  %v2388_v19 = vstv %s3569_s13  ;;  %s3580_s13 = sld [smem:[#allocation8 + $0x53]] }
 0x372   : > { %2104 = vst.msk [vmem:[#allocation2 + $0x30] sm:$0xff] %vm2096_vm4, %v2085_v26  ;;  %v2380_v26 = vstv %s3568_s15  ;;  %s3587_s15 = sld [smem:[#allocation8 + $0x31]] }
 0x374   : > { %v2111_v55 = vld [vmem:[#allocation2 + $0x28] sm:$0x3]  ;;  %v5387_v22 = vpop.permute.xlu0 %3129  ;;  %v5389_v37 = vpop.permute.xlu1 %3141 }
 0x375   : > { %v2110_v4 = vld [vmem:[#allocation2 + $0x20] sm:$0xff]  ;;  %2128 = vrot.lane.b32.xlu1 %v2109_v41, %s3987_s12 }
 0x376   : > { %2130 = vrot.lane.b32.xlu0 %v2110_v4, %s3987_s12  ;;  %v2421_v4 = vstv %s3575_s26  ;;  %s3586_s26 = sld [smem:[#allocation8 + $0xd]] }
 0x378   : > { %v2113_v3 = vld [vmem:[#allocation2 + $0x38] sm:$0x3] }
 0x379   : > { %v2112_v60 = vld [vmem:[#allocation2 + $0x30] sm:$0xff]  ;;  %2132 = vrot.lane.b32.xlu1 %v2111_v55, %s3987_s12  ;;  %v2413_v55 = vstv %s3574_s2  ;;  %s3589_s2 = sld [smem:[#allocation8 + $0x79]] }
 0x37a   : > { %2134 = vrot.lane.b32.xlu0 %v2112_v60, %s3987_s12 }
 0x37d   : > { %2136 = vrot.lane.b32.xlu1 %v2113_v3, %s3987_s12  ;;  %s3551_s12 = sld [smem:[#allocation8 + $0x28]] }
 0x383   : > { %v2259_v11 = vstv %s3551_s12  ;;  %s3562_s12 = sld [smem:[#allocation8 + $0x7]] }
 0x389   : > { %v2332_v14 = vstv %s3562_s12  ;;  %s3577_s12 = sld [smem:[#allocation8 + $0x76]] }
 0x3df   : > { %v2123_v16 = vpop.permute.xlu0 %2122 }
 0x3e0   : > { %2147 = vst.msk [vmem:[#allocation2] sm:$0xff] %vm2146_vm6, %v2123_v16 }
 0x3e3   : > { %v2125_v44 = vpop.permute.xlu1 %2124  ;;  %v2127_v48 = vpop.permute.xlu0 %2126 }
 0x3e4   : > { %2149 = vst.msk [vmem:[#allocation2 + $0x8] sm:$0x3] %vm2148_vm7, %v2125_v44 }
 0x3e5   : > { %2150 = vst.msk [vmem:[#allocation2 + $0x10] sm:$0xff] %vm2146_vm6, %v2127_v48  ;;  %v2437_v48 = vstv %s3577_s12  ;;  %s3588_s12 = sld [smem:[#allocation8 + $0x55]] }
 0x3e7   : > { %v5396_v35 = vld [vmem:[#allocation2] sm:$0xff]  ;;  %v2129_v7 = vpop.permute.xlu1 %2128 }
 0x3e8   : > { %v2131_v58 = vpop.permute.xlu0 %2130  ;;  %v2179_v42 = vmul.f32 %v2178_v10, %v5396_v35  ;;  %v2171_v18 = vmul.f32 %v2170_v27, %v5396_v35  ;;  %2151 = vst.msk [vmem:[#allocation2 + $0x18] sm:$0x3] %vm2148_vm7, %v2129_v7  ;;  %v2195_v23 = vmul.f32 %v2194_v61, %v5396_v35  ;;  %v2187_v31 = vmul.f32 %v2186_v25, %v5396_v35 }
 0x3e9   : > { %2152 = vst.msk [vmem:[#allocation2 + $0x20] sm:$0xff] %vm2146_vm6, %v2131_v58  ;;  %v2211_v34 = vmul.f32 %v2210_v28, %v5396_v35  ;;  %v2203_v57 = vmul.f32 %v2202_v29, %v5396_v35  ;;  %v2227_v52 = vmul.f32 %v2226_v38, %v5396_v35  ;;  %v2219_v15 = vmul.f32 %v2218_v54, %v5396_v35 }
 0x3ea   : > { %2181 = vrot.lane.b32.xlu1 %v2179_v42, %s6017_s9  ;;  %2173 = vrot.lane.b32.xlu0 %v2171_v18, %s6017_s9  ;;  %v2429_v10 = vstv %s3576_s10  ;;  %v2453_v58 = vstv %s3579_s11  ;;  %s3591_s10 = sld [smem:[#allocation8 + $0x32]] }
 0x3eb   : > { %v2133_v47 = vpop.permute.xlu1 %2132  ;;  %v5421_v17 = vld [vmem:[#allocation2 + $0x1] sm:$0xff]  ;;  %v2445_v42 = vstv %s3578_s17  ;;  %v2469_v25 = vstv %s3581_s0  ;;  %v2502_v28 = vstv %s3587_s15  ;;  %v2494_v29 = vstv %s3586_s26  ;;  %s3590_s11 = sld [smem:[#allocation8 + $0xe]] }
 0x3ec   : > { %v2135_v9 = vpop.permute.xlu0 %2134  ;;  %2153 = vst.msk [vmem:[#allocation2 + $0x28] sm:$0x3] %vm2148_vm7, %v2133_v47  ;;  %v2260_v62 = vmul.f32 %v2259_v11, %v5421_v17  ;;  %v2252_v51 = vmul.f32 %v2251_v2, %v5421_v17  ;;  %v2276_v32 = vmul.f32 %v2275_v20, %v5421_v17  ;;  %v2268_v0 = vmul.f32 %v2267_v8, %v5421_v17  ;;  %v5439_v63 = vld [vmem:[#allocation2 + $0x2] sm:$0xff]  ;;  %v5455_v41 = vld [vmem:[#allocation2 + $0x10] sm:$0xff]  ;;  %s3593_s17 = sld [smem:[#allocation8 + $0x7a]] }
 0x3ed   : > { %2154 = vst.msk [vmem:[#allocation2 + $0x30] sm:$0xff] %vm2146_vm6, %v2135_v9  ;;  %v2292_v56 = vmul.f32 %v2291_v53, %v5421_v17  ;;  %v2284_v13 = vmul.f32 %v2283_v49, %v5421_v17  ;;  %v2308_v5 = vmul.f32 %v2307_v30, %v5421_v17  ;;  %v2300_v24 = vmul.f32 %v2299_v6, %v5421_v17  ;;  %s3592_s0 = sld [smem:[#allocation8 + $0x56]] }
 0x3ee   : > { %2197 = vrot.lane.b32.xlu1 %v2195_v23, %s6017_s9  ;;  %2189 = vrot.lane.b32.xlu0 %v2187_v31, %s6017_s9  ;;  %v2341_v40 = vmul.f32 %v2340_v50, %v5439_v63  ;;  %v2333_v43 = vmul.f32 %v2332_v14, %v5439_v63  ;;  %v2357_v33 = vmul.f32 %v2356_v39, %v5439_v63  ;;  %v2461_v47 = vstv %s3580_s13  ;;  %s3599_s13 = sld [smem:[#allocation8 + $0x34]] }
 0x3ef   : > { %v2137_v36 = vpop.permute.xlu1 %2136  ;;  %v2349_v59 = vmul.f32 %v2348_v21, %v5439_v63  ;;  %v2373_v45 = vmul.f32 %v2372_v1, %v5439_v63  ;;  %v2365_v12 = vmul.f32 %v2364_v46, %v5439_v63  ;;  %v2389_v60 = vmul.f32 %v2388_v19, %v5439_v63  ;;  %v5475_v31 = vld [vmem:[#allocation2 + $0x11] sm:$0xff]  ;;  %s3598_s15 = sld [smem:[#allocation8 + $0x10]] }
 0x3f0   : > { %2155 = vst.msk [vmem:[#allocation2 + $0x38] sm:$0x3] %vm2148_vm7, %v2137_v36  ;;  %v2381_v3 = vmul.f32 %v2380_v26, %v5439_v63  ;;  %v2422_v16 = vmul.f32 %v2421_v4, %v5455_v41  ;;  %v2414_v44 = vmul.f32 %v2413_v55, %v5455_v41  ;;  %v2438_v27 = vmul.f32 %v2437_v48, %v5455_v41  ;;  %s3601_s26 = sld [smem:[#allocation8 + $0x7c]] }
 0x3f1   : > { %v2430_v7 = vmul.f32 %v2429_v10, %v5455_v41  ;;  %v2454_v18 = vmul.f32 %v2453_v58, %v5455_v41  ;;  %v2446_v61 = vmul.f32 %v2445_v42, %v5455_v41  ;;  %v2470_v9 = vmul.f32 %v2469_v25, %v5455_v41 }
 0x3f2   : > { %2213 = vrot.lane.b32.xlu1 %v2211_v34, %s6016_s30  ;;  %2205 = vrot.lane.b32.xlu0 %v2203_v57, %s6016_s30  ;;  %v2462_v23 = vmul.f32 %v2461_v47, %v5455_v41  ;;  %v2503_v36 = vmul.f32 %v2502_v28, %v5475_v31  ;;  %v2495_v34 = vmul.f32 %v2494_v29, %v5475_v31  ;;  %v2518_v57 = vstv %s3589_s2  ;;  %s3600_s2 = sld [smem:[#allocation8 + $0x58]] }
 0x3f3   : > { %v2510_v38 = vstv %s3588_s12  ;;  %v2519_v54 = vmul.f32 %v2518_v57, %v5475_v31  ;;  %v2526_v11 = vstv %s3590_s11  ;;  %v2542_v20 = vstv %s3592_s0  ;;  %s3603_s12 = sld [smem:[#allocation8 + $0x35]]  ;;  %v5543_v42 = vld [vmem:[#allocation2 + $0x21] sm:$0xff] }
 0x3f4   : > { %v2583_v53 = vstv %s3599_s13  ;;  %s3605_s11 = sld [smem:[#allocation8 + $0x7d]]  ;;  %v2753_v29 = vstv %s5531_s14 }
 0x3f5   : > { %v2575_v49 = vstv %s3598_s15  ;;  %s3611_s0 = sld [smem:[#allocation8 + $0x37]] }
 0x3f6   : > { %2229 = vrot.lane.b32.xlu1 %v2227_v52, %s6016_s30  ;;  %2221 = vrot.lane.b32.xlu0 %v2219_v15, %s6016_s30  ;;  %v2511_v52 = vmul.f32 %v2510_v38, %v5475_v31  ;;  %v2534_v15 = vstv %s3591_s10  ;;  %s3602_s10 = sld [smem:[#allocation8 + $0x11]]  ;;  %v2599_v30 = vstv %s3601_s26 }
 0x3f7   : > { %v2535_v2 = vmul.f32 %v2534_v15, %v5475_v31  ;;  %s3610_s13 = sld [smem:[#allocation8 + $0x13]] }
 0x3f8   : > { %v2591_v6 = vstv %s3600_s2  ;;  %s3613_s15 = sld [smem:[#allocation8 + $0x7f]] }
 0x3f9   : > { %v2615_v50 = vstv %s3603_s12  ;;  %s3612_s26 = sld [smem:[#allocation8 + $0x5b]] }
 0x3fa   : > { %2262 = vrot.lane.b32.xlu1 %v2260_v62, %s6017_s9  ;;  %2254 = vrot.lane.b32.xlu0 %v2252_v51, %s6017_s9  ;;  %v2527_v62 = vmul.f32 %v2526_v11, %v5475_v31  ;;  %v2550_v51 = vstv %s3593_s17  ;;  %s3604_s17 = sld [smem:[#allocation8 + $0x59]]  ;;  %v2631_v39 = vstv %s3605_s11 }
 0x3fb   : > { %v2551_v8 = vmul.f32 %v2550_v51, %v5475_v31  ;;  %s3615_s2 = sld [smem:[#allocation8 + $0x38]] }
 0x3fc   : > { %v2607_v14 = vstv %s3602_s10  ;;  %s3614_s12 = sld [smem:[#allocation8 + $0x14]] }
 0x3fd   : > { %v2656_v1 = vstv %s3610_s13  ;;  %s3617_s10 = sld [smem:[#allocation8 + $0x80]] }
 0x3fe   : > { %2278 = vrot.lane.b32.xlu1 %v2276_v32, %s6017_s9  ;;  %2270 = vrot.lane.b32.xlu0 %v2268_v0, %s6017_s9  ;;  %v2543_v32 = vmul.f32 %v2542_v20, %v5475_v31  ;;  %v5493_v0 = vld [vmem:[#allocation2 + $0x12] sm:$0xff]  ;;  %v2680_v26 = vstv %s3613_s15  ;;  %s3616_s11 = sld [smem:[#allocation8 + $0x5c]] }
 0x3ff   : > { %v2632_v46 = vmul.f32 %v2631_v39, %v5493_v0  ;;  %v2672_v4 = vstv %s3612_s26  ;;  %s5523_s13 = sld [smem:[#allocation8 + $0x24]] }
 0x400   : > { %v2623_v21 = vstv %s3604_s17  ;;  %s3623_s17 = sld [smem:[#allocation8 + $0x3a]] }
 0x401   : > { %s5525_s15 = sld [smem:[#allocation8]] }
 0x402   : > { %2294 = vrot.lane.b32.xlu1 %v2292_v56, %s6016_s30  ;;  %2286 = vrot.lane.b32.xlu0 %v2284_v13, %s6016_s30  ;;  %v2584_v56 = vmul.f32 %v2583_v53, %v5493_v0  ;;  %v2576_v13 = vmul.f32 %v2575_v49, %v5493_v0  ;;  %s5529_s26 = sld [smem:[#allocation8 + $0x82]] }
 0x403   : > { %v2712_v10 = vstv %s3617_s10  ;;  %s5541_s10 = sld [smem:[#allocation8 + $0x3b]] }
 0x404   : > { %s5573_s14 = sld [smem:[#allocation8 + $0x19]] }
 0x406   : > { %2310 = vrot.lane.b32.xlu1 %v2308_v5, %s6016_s30  ;;  %2302 = vrot.lane.b32.xlu0 %v2300_v24, %s6016_s30  ;;  %v2600_v5 = vmul.f32 %v2599_v30, %v5493_v0  ;;  %v2592_v24 = vmul.f32 %v2591_v6, %v5493_v0 }
 0x408   : > { %v2761_v28 = vstv %s5529_s26  ;;  %s5581_s26 = sld [smem:[#allocation8 + $0x4b]] }
 0x409   : > { %v2777_v51 = vstv %s5541_s10  ;;  %s5601_s10 = sld [smem:[#allocation8 + $0x3e]] }
 0x40a   : > { %2343 = vrot.lane.b32.xlu1 %v2341_v40, %s6017_s9  ;;  %2335 = vrot.lane.b32.xlu0 %v2333_v43, %s6017_s9  ;;  %v2616_v40 = vmul.f32 %v2615_v50, %v5493_v0  ;;  %v2608_v43 = vmul.f32 %v2607_v14, %v5493_v0 }
 0x40e   : > { %2359 = vrot.lane.b32.xlu1 %v2357_v33, %s6017_s9  ;;  %2351 = vrot.lane.b32.xlu0 %v2349_v59, %s6017_s9  ;;  %v5509_v33 = vld [vmem:[#allocation2 + $0x20] sm:$0xff]  ;;  %v2664_v59 = vstv %s3611_s0  ;;  %s3622_s0 = sld [smem:[#allocation8 + $0x16]] }
 0x40f   : > { %v2657_v19 = vmul.f32 %v2656_v1, %v5509_v33  ;;  %v2681_v55 = vmul.f32 %v2680_v26, %v5509_v33  ;;  %v5603_v1 = vld [vmem:[#allocation2 + $0x22] sm:$0xff] }
 0x412   : > { %2375 = vrot.lane.b32.xlu1 %v2373_v45, %s6016_s30  ;;  %2367 = vrot.lane.b32.xlu0 %v2365_v12, %s6016_s30  ;;  %v2624_v45 = vmul.f32 %v2623_v21, %v5493_v0  ;;  %v2665_v12 = vmul.f32 %v2664_v59, %v5509_v33  ;;  %v2818_v59 = vstv %s5573_s14  ;;  %s5633_s14 = sld [smem:[#allocation8 + $0x1c]] }
 0x416   : > { %2391 = vrot.lane.b32.xlu1 %v2389_v60, %s6016_s30  ;;  %2383 = vrot.lane.b32.xlu0 %v2381_v3, %s6016_s30  ;;  %v2673_v60 = vmul.f32 %v2672_v4, %v5509_v33  ;;  %v2696_v3 = vstv %s3615_s2  ;;  %s5535_s2 = sld [smem:[#allocation8 + $0x6c]]  ;;  %v2243_v4 = vstv %s5581_s26 }
 0x417   : > { %s5641_s26 = sld [smem:[#allocation8 + $0x4e]] }
 0x41a   : > { %2424 = vrot.lane.b32.xlu1 %v2422_v16, %s6017_s9  ;;  %2416 = vrot.lane.b32.xlu0 %v2414_v44, %s6017_s9  ;;  %v2688_v16 = vstv %s3614_s12  ;;  %v2697_v44 = vmul.f32 %v2696_v3, %v5509_v33  ;;  %s5537_s12 = sld [smem:[#allocation8 + $0x48]] }
 0x41b   : > { %v2689_v48 = vmul.f32 %v2688_v16, %v5509_v33 }
 0x41c   : > { %v2167_v15 = vstv %s5535_s2  ;;  %s5585_s2 = sld [smem:[#allocation8 + $0x85]] }
 0x41e   : > { %2440 = vrot.lane.b32.xlu1 %v2438_v27, %s6017_s9  ;;  %2432 = vrot.lane.b32.xlu0 %v2430_v7, %s6017_s9  ;;  %v2704_v27 = vstv %s3616_s11  ;;  %v2713_v7 = vmul.f32 %v2712_v10, %v5509_v33  ;;  %s5545_s11 = sld [smem:[#allocation8 + $0x17]] }
 0x41f   : > { %v2705_v58 = vmul.f32 %v2704_v27, %v5509_v33 }
 0x420   : > { %v2164_v11 = vstv %s5537_s12  ;;  %s5589_s12 = sld [smem:[#allocation8 + $0x61]] }
 0x422   : > { %2456 = vrot.lane.b32.xlu1 %v2454_v18, %s6016_s30  ;;  %2448 = vrot.lane.b32.xlu0 %v2446_v61, %s6016_s30  ;;  %v2745_v18 = vstv %s3623_s17  ;;  %v2737_v61 = vstv %s3622_s0  ;;  %s5559_s17 = sld [smem:[#allocation8 + $0x5f]] }
 0x423   : > { %v2746_v25 = vmul.f32 %v2745_v18, %v5543_v42  ;;  %v2738_v47 = vmul.f32 %v2737_v61, %v5543_v42  ;;  %s5563_s0 = sld [smem:[#allocation8 + $0x3]]  ;;  %v2842_v10 = vstv %s5585_s2  ;;  %v2244_v61 = vmul.f32 %v2243_v4, %v5421_v17 }
 0x424   : > { %v2769_v20 = vstv %s5545_s11  ;;  %s5619_s11 = sld [smem:[#allocation8 + $0x86]] }
 0x425   : > { %s5643_s2 = sld [smem:[#allocation8 + $0x88]] }
 0x426   : > { %2472 = vrot.lane.b32.xlu1 %v2470_v9, %s6016_s30  ;;  %2464 = vrot.lane.b32.xlu0 %v2462_v23, %s6016_s30  ;;  %v2161_v9 = vstv %s5523_s13  ;;  %v2158_v23 = vstv %s5525_s15  ;;  %s5567_s13 = sld [smem:[#allocation8 + $0x3d]] }
 0x427   : > { %s5577_s15 = sld [smem:[#allocation8 + $0x6f]]  ;;  %v2834_v27 = vstv %s5589_s12 }
 0x428   : > { %s5647_s12 = sld [smem:[#allocation8 + $0x64]] }
 0x429   : > { %v2235_v50 = vstv %s5563_s0  ;;  %s5627_s0 = sld [smem:[#allocation8 + $0x6]] }
 0x42a   : > { %2505 = vrot.lane.b32.xlu1 %v2503_v36, %s6017_s9  ;;  %2497 = vrot.lane.b32.xlu0 %v2495_v34, %s6017_s9  ;;  %v2162_v36 = vmul.f32 %v2161_v9, %v5396_v35  ;;  %v2159_v34 = vmul.f32 %v2158_v23, %v5396_v35 }
 0x42c   : > { %v2826_v21 = vstv %s5567_s13  ;;  %s5629_s13 = sld [smem:[#allocation8 + $0x40]] }
 0x42d   : > { %v2247_v26 = vstv %s5577_s15  ;;  %s5637_s15 = sld [smem:[#allocation8 + $0x72]] }
 0x42e   : > { %2521 = vrot.lane.b32.xlu1 %v2519_v54, %s6017_s9  ;;  %2513 = vrot.lane.b32.xlu0 %v2511_v52, %s6017_s9  ;;  %v2762_v54 = vmul.f32 %v2761_v28, %v5543_v42  ;;  %v2754_v52 = vmul.f32 %v2753_v29, %v5543_v42  ;;  %v2248_v18 = vmul.f32 %v2247_v26, %v5421_v17 }
 0x42f   : > { %v2843_v28 = vmul.f32 %v2842_v10, %v5603_v1  ;;  %v2835_v29 = vmul.f32 %v2834_v27, %v5603_v1 }
 0x432   : > { %2537 = vrot.lane.b32.xlu1 %v2535_v2, %s6016_s30  ;;  %2529 = vrot.lane.b32.xlu0 %v2527_v62, %s6016_s30 }
 0x436   : > { %2553 = vrot.lane.b32.xlu1 %v2551_v8, %s6016_s30  ;;  %2545 = vrot.lane.b32.xlu0 %v2543_v32, %s6016_s30  ;;  %v2168_v8 = vmul.f32 %v2167_v15, %v5396_v35  ;;  %v2165_v32 = vmul.f32 %v2164_v11, %v5396_v35  ;;  %v2239_v35 = vstv %s5549_s1  ;;  %s5607_s1 = sld [smem:[#allocation8 + $0x1a]] }
 0x43a   : > { %2586 = vrot.lane.b32.xlu1 %v2584_v56, %s6017_s9  ;;  %2578 = vrot.lane.b32.xlu0 %v2576_v13, %s6017_s9  ;;  %v2778_v56 = vmul.f32 %v2777_v51, %v5543_v42  ;;  %v2770_v13 = vmul.f32 %v2769_v20, %v5543_v42 }
 0x43e   : > { %2602 = vrot.lane.b32.xlu1 %v2600_v5, %s6017_s9  ;;  %2594 = vrot.lane.b32.xlu0 %v2592_v24, %s6017_s9  ;;  %v2793_v5 = vstv %s5555_s3  ;;  %v2785_v24 = vstv %s5559_s17  ;;  %s5613_s3 = sld [smem:[#allocation8 + $0x2a]] }
 0x43f   : > { %v2786_v39 = vmul.f32 %v2785_v24, %v5543_v42  ;;  %s5623_s17 = sld [smem:[#allocation8 + $0x62]] }
 0x442   : > { %2618 = vrot.lane.b32.xlu1 %v2616_v40, %s6016_s30  ;;  %2610 = vrot.lane.b32.xlu0 %v2608_v43, %s6016_s30  ;;  %v2794_v43 = vmul.f32 %v2793_v5, %v5543_v42 }
 0x444   : > { %v2320_v20 = vstv %s5613_s3  ;;  %s5671_s3 = sld [smem:[#allocation8 + $0x2d]] }
 0x445   : > { %v2866_v51 = vstv %s5623_s17  ;;  %s5681_s17 = sld [smem:[#allocation8 + $0x65]] }
 0x446   : > { %2634 = vrot.lane.b32.xlu1 %v2632_v46, %s6016_s30  ;;  %2626 = vrot.lane.b32.xlu0 %v2624_v45, %s6016_s30 }
 0x44a   : > { %2667 = vrot.lane.b32.xlu1 %v2665_v12, %s6017_s9  ;;  %2659 = vrot.lane.b32.xlu0 %v2657_v19, %s6017_s9  ;;  %v2240_v12 = vmul.f32 %v2239_v35, %v5421_v17  ;;  %v2236_v19 = vmul.f32 %v2235_v50, %v5421_v17  ;;  %v2321_v35 = vmul.f32 %v2320_v20, %v5439_v63 }
 0x44e   : > { %2683 = vrot.lane.b32.xlu1 %v2681_v55, %s6017_s9  ;;  %2675 = vrot.lane.b32.xlu0 %v2673_v60, %s6017_s9 }
 0x452   : > { %2699 = vrot.lane.b32.xlu1 %v2697_v44, %s6016_s30  ;;  %2691 = vrot.lane.b32.xlu0 %v2689_v48, %s6016_s30  ;;  %v2827_v44 = vmul.f32 %v2826_v21, %v5603_v1  ;;  %v2819_v48 = vmul.f32 %v2818_v59, %v5603_v1 }
 0x456   : > { %2715 = vrot.lane.b32.xlu1 %v2713_v7, %s6016_s30  ;;  %2707 = vrot.lane.b32.xlu0 %v2705_v58, %s6016_s30 }
 0x45a   : > { %2748 = vrot.lane.b32.xlu1 %v2746_v25, %s6017_s9  ;;  %2740 = vrot.lane.b32.xlu0 %v2738_v47, %s6017_s9 }
 0x45c   : > { %v2182_v57 = vpop.permute.xlu1 %2181  ;;  %v2174_v38 = vpop.permute.xlu0 %2173 }
 0x45d   : > { %v2184_v2 = vadd.f32 %v2182_v57, %v2162_v36  ;;  %v2176_v62 = vadd.f32 %v2174_v38, %v2159_v34  ;;  %v2858_v34 = vstv %s5601_s10  ;;  %v2850_v57 = vstv %s5607_s1  ;;  %s5659_s10 = sld [smem:[#allocation8 + $0x41]] }
 0x45e   : > { %2764 = vrot.lane.b32.xlu1 %v2762_v54, %s6017_s9  ;;  %2756 = vrot.lane.b32.xlu0 %v2754_v52, %s6017_s9  ;;  %v2859_v52 = vmul.f32 %v2858_v34, %v5603_v1  ;;  %v2851_v15 = vmul.f32 %v2850_v57, %v5603_v1  ;;  %s5665_s1 = sld [smem:[#allocation8 + $0x1d]] }
 0x460   : > { %v2198_v53 = vpop.permute.xlu1 %2197  ;;  %v2190_v49 = vpop.permute.xlu0 %2189 }
 0x461   : > { %v2200_v30 = vadd.f32 %v2198_v53, %v2168_v8  ;;  %v2192_v6 = vadd.f32 %v2190_v49, %v2165_v32  ;;  %v2316_v8 = vstv %s5627_s0  ;;  %s5685_s0 = sld [smem:[#allocation8 + $0x9]] }
 0x462   : > { %2780 = vrot.lane.b32.xlu1 %v2778_v56, %s6016_s30  ;;  %2772 = vrot.lane.b32.xlu0 %v2770_v13, %s6016_s30  ;;  %v2867_v56 = vmul.f32 %v2866_v51, %v5603_v1  ;;  %v2907_v13 = vstv %s5629_s13  ;;  %v2317_v50 = vmul.f32 %v2316_v8, %v5439_v63  ;;  %s5687_s13 = sld [smem:[#allocation8 + $0x43]] }
 0x464   : > { %v2214_v14 = vpop.permute.xlu1 %2213  ;;  %v2206_v40 = vpop.permute.xlu0 %2205 }
 0x465   : > { %v2216_v46 = vadd.f32 %v2214_v14, %v2184_v2  ;;  %v2208_v45 = vadd.f32 %v2206_v40, %v2176_v62  ;;  %v2874_v62 = vstv %s5619_s11  ;;  %v2328_v14 = vstv %s5637_s15  ;;  %s5677_s11 = sld [smem:[#allocation8 + $0x89]] }
 0x466   : > { %2796 = vrot.lane.b32.xlu1 %v2794_v43, %s6016_s30  ;;  %2788 = vrot.lane.b32.xlu0 %v2786_v39, %s6016_s30  ;;  %v2875_v49 = vmul.f32 %v2874_v62, %v5603_v1  ;;  %v2324_v40 = vstv %s5641_s26  ;;  %s5695_s15 = sld [smem:[#allocation8 + $0x75]] }
 0x467   : > { %v2241_v55 = vadd.f32 %v2240_v12, %v2216_v46  ;;  %v2237_v60 = vadd.f32 %v2236_v19, %v2208_v45  ;;  %v2923_v12 = vstv %s5643_s2  ;;  %v2915_v19 = vstv %s5647_s12  ;;  %s5699_s26 = sld [smem:[#allocation8 + $0x51]] }
 0x468   : > { %v2230_v3 = vpop.permute.xlu1 %2229  ;;  %v2222_v16 = vpop.permute.xlu0 %2221  ;;  %s5701_s2 = sld [smem:[#allocation8 + $0x8b]]  ;;  %v2397_v34 = vstv %s5685_s0 }
 0x469   : > { %v2232_v7 = vadd.f32 %v2230_v3, %v2200_v30  ;;  %v2224_v58 = vadd.f32 %v2222_v16, %v2192_v6  ;;  %v2899_v30 = vstv %s5633_s14  ;;  %v5661_v6 = vld [vmem:[#allocation2 + $0x30] sm:$0xff]  ;;  %s5691_s14 = sld [smem:[#allocation8 + $0x1f]]  ;;  %v2398_v8 = vmul.f32 %v2397_v34, %v5455_v41 }
 0x46a   : > { %2829 = vrot.lane.b32.xlu1 %v2827_v44, %s6017_s9  ;;  %2821 = vrot.lane.b32.xlu0 %v2819_v48, %s6017_s9  ;;  %v2908_v46 = vmul.f32 %v2907_v13, %v5661_v6  ;;  %v2900_v45 = vmul.f32 %v2899_v30, %v5661_v6  ;;  %v2924_v10 = vmul.f32 %v2923_v12, %v5661_v6  ;;  %s5705_s12 = sld [smem:[#allocation8 + $0x67]] }
 0x46b   : > { %v2249_v25 = vadd.f32 %v2248_v18, %v2232_v7  ;;  %v2245_v47 = vadd.f32 %v2244_v61, %v2224_v58  ;;  %v2916_v27 = vmul.f32 %v2915_v19, %v5661_v6  ;;  %v2939_v58 = vstv %s5659_s10  ;;  %s5717_s10 = sld [smem:[#allocation8 + $0x44]] }
 0x46c   : > { %v2263_v9 = vpop.permute.xlu1 %2262  ;;  %v2255_v23 = vpop.permute.xlu0 %2254  ;;  %v2931_v18 = vstv %s5665_s1  ;;  %s5723_s1 = sld [smem:[#allocation8 + $0x20]] }
 0x46d   : > { %v2265_v17 = vadd.f32 %v2263_v9, %v2241_v55  ;;  %v2257_v36 = vadd.f32 %v2255_v23, %v2237_v60  ;;  %v2329_v55 = vmul.f32 %v2328_v14, %v5439_v63  ;;  %v2325_v60 = vmul.f32 %v2324_v40, %v5439_v63  ;;  %s5743_s0 = sld [smem:[#allocation8 + $0xc]] }
 0x46e   : > { %2845 = vrot.lane.b32.xlu1 %v2843_v28, %s6017_s9  ;;  %2837 = vrot.lane.b32.xlu0 %v2835_v29, %s6017_s9  ;;  %v2932_v9 = vmul.f32 %v2931_v18, %v5661_v6  ;;  %v2955_v29 = vstv %s5677_s11  ;;  %s5735_s11 = sld [smem:[#allocation8 + $0x8c]] }
 0x470   : > { %v2279_v38 = vpop.permute.xlu1 %2278  ;;  %v2271_v54 = vpop.permute.xlu0 %2270 }
 0x471   : > { %v2281_v11 = vadd.f32 %v2279_v38, %v2249_v25  ;;  %v2273_v2 = vadd.f32 %v2271_v54, %v2245_v47  ;;  %v2940_v47 = vmul.f32 %v2939_v58, %v5661_v6  ;;  %v2956_v54 = vmul.f32 %v2955_v29, %v5661_v6 }
 0x472   : > { %2861 = vrot.lane.b32.xlu1 %v2859_v52, %s6016_s30  ;;  %2853 = vrot.lane.b32.xlu0 %v2851_v15, %s6016_s30  ;;  %v2988_v15 = vstv %s5687_s13  ;;  %s5745_s13 = sld [smem:[#allocation8 + $0x46]] }
 0x473   : > { %v2478_v58 = vstv %s5743_s0  ;;  %s5801_s0 = sld [smem:[#allocation8 + $0xf]] }
 0x474   : > { %v2295_v32 = vpop.permute.xlu1 %2294  ;;  %v2287_v53 = vpop.permute.xlu0 %2286  ;;  %v2479_v34 = vmul.f32 %v2478_v58, %v5475_v31  ;;  %v3685_v58 = vld [vmem:[%s4163_s6 + $0x4a] sm:$0xff] }
 0x475   : > { %v2297_v5 = vadd.f32 %v2295_v32, %v2265_v17  ;;  %v2289_v24 = vadd.f32 %v2287_v53, %v2257_v36  ;;  %v2947_v17 = vstv %s5681_s17  ;;  %v2401_v36 = vstv %s5671_s3  ;;  %s5729_s3 = sld [smem:[#allocation8 + $0x30]] }
 0x476   : > { %2877 = vrot.lane.b32.xlu1 %v2875_v49, %s6016_s30  ;;  %2869 = vrot.lane.b32.xlu0 %v2867_v56, %s6016_s30  ;;  %v2948_v52 = vmul.f32 %v2947_v17, %v5661_v6  ;;  %v2402_v20 = vmul.f32 %v2401_v36, %v5455_v41  ;;  %v2409_v32 = vstv %s5695_s15  ;;  %v2405_v53 = vstv %s5699_s26  ;;  %s5739_s17 = sld [smem:[#allocation8 + $0x68]] }
 0x477   : > { %v2322_v43 = vadd.f32 %v2321_v35, %v2297_v5  ;;  %v2318_v39 = vadd.f32 %v2317_v50, %v2289_v24  ;;  %v3004_v35 = vstv %s5701_s2  ;;  %v2996_v50 = vstv %s5705_s12  ;;  %s5753_s15 = sld [smem:[#allocation8 + $0x78]] }
 0x478   : > { %v2311_v21 = vpop.permute.xlu1 %2310  ;;  %v2303_v59 = vpop.permute.xlu0 %2302  ;;  %s5757_s26 = sld [smem:[#allocation8 + $0x54]] }
 0x479   : > { %v2313_v26 = vadd.f32 %v2311_v21, %v2281_v11  ;;  %v2305_v4 = vadd.f32 %v2303_v59, %v2273_v2  ;;  %v2980_v11 = vstv %s5691_s14  ;;  %v5719_v2 = vld [vmem:[#allocation2 + $0x31] sm:$0xff]  ;;  %s5749_s14 = sld [smem:[#allocation8 + $0x22]] }
 0x47a   : > { %2910 = vrot.lane.b32.xlu1 %v2908_v46, %s6017_s9  ;;  %2902 = vrot.lane.b32.xlu0 %v2900_v45, %s6017_s9  ;;  %v2989_v5 = vmul.f32 %v2988_v15, %v5719_v2  ;;  %v2981_v24 = vmul.f32 %v2980_v11, %v5719_v2  ;;  %v3005_v12 = vmul.f32 %v3004_v35, %v5719_v2  ;;  %s5759_s2 = sld [smem:[#allocation8 + $0x8e]] }
 0x47b   : > { %v2330_v3 = vadd.f32 %v2329_v55, %v2313_v26  ;;  %v2326_v16 = vadd.f32 %v2325_v60, %v2305_v4  ;;  %v2997_v19 = vmul.f32 %v2996_v50, %v5719_v2  ;;  %v3020_v4 = vstv %s5717_s10  ;;  %s5763_s12 = sld [smem:[#allocation8 + $0x6a]] }
 0x47c   : > { %v2344_v44 = vpop.permute.xlu1 %2343  ;;  %v2336_v48 = vpop.permute.xlu0 %2335  ;;  %v3012_v55 = vstv %s5723_s1  ;;  %s5775_s10 = sld [smem:[#allocation8 + $0x47]] }
 0x47d   : > { %v2346_v63 = vadd.f32 %v2344_v44, %v2322_v43  ;;  %v2338_v7 = vadd.f32 %v2336_v48, %v2318_v39  ;;  %v2410_v43 = vmul.f32 %v2409_v32, %v5455_v41  ;;  %v2406_v39 = vmul.f32 %v2405_v53, %v5455_v41  ;;  %s5781_s1 = sld [smem:[#allocation8 + $0x23]] }
 0x47e   : > { %2926 = vrot.lane.b32.xlu1 %v2924_v10, %s6017_s9  ;;  %2918 = vrot.lane.b32.xlu0 %v2916_v27, %s6017_s9  ;;  %v3013_v44 = vmul.f32 %v3012_v55, %v5719_v2  ;;  %v3036_v27 = vstv %s5735_s11  ;;  %s5793_s11 = sld [smem:[#allocation8 + $0x8f]] }
 0x480   : > { %v2360_v61 = vpop.permute.xlu1 %2359  ;;  %v2352_v25 = vpop.permute.xlu0 %2351 }
 0x481   : > { %v2362_v23 = vadd.f32 %v2360_v61, %v2330_v3  ;;  %v2354_v28 = vadd.f32 %v2352_v25, %v2326_v16  ;;  %v3021_v16 = vmul.f32 %v3020_v4, %v5719_v2  ;;  %v3037_v25 = vmul.f32 %v3036_v27, %v5719_v2 }
 0x482   : > { %2942 = vrot.lane.b32.xlu1 %v2940_v47, %s6016_s30  ;;  %2934 = vrot.lane.b32.xlu0 %v2932_v9, %s6016_s30  ;;  %v3069_v9 = vstv %s5745_s13  ;;  %s5807_s13 = sld [smem:[#allocation8 + $0x7b]]  ;;  %v2559_v4 = vstv %s5801_s0 }
 0x483   : > { %v2560_v27 = vmul.f32 %v2559_v4, %v5493_v0  ;;  %s3643_s0 = sld [smem:[#allocation8 + $0x3f]] }
 0x484   : > { %v2376_v57 = vpop.permute.xlu1 %2375  ;;  %v2368_v38 = vpop.permute.xlu0 %2367 }
 0x485   : > { %v2378_v62 = vadd.f32 %v2376_v57, %v2346_v63  ;;  %v2370_v51 = vadd.f32 %v2368_v38, %v2338_v7  ;;  %v3028_v63 = vstv %s5739_s17  ;;  %v2482_v7 = vstv %s5729_s3  ;;  %s5787_s3 = sld [smem:[#allocation8 + $0x33]] }
 0x486   : > { %2958 = vrot.lane.b32.xlu1 %v2956_v54, %s6016_s30  ;;  %2950 = vrot.lane.b32.xlu0 %v2948_v52, %s6016_s30  ;;  %v3029_v47 = vmul.f32 %v3028_v63, %v5719_v2  ;;  %v2483_v36 = vmul.f32 %v2482_v7, %v5475_v31  ;;  %v2490_v57 = vstv %s5753_s15  ;;  %v2486_v38 = vstv %s5757_s26  ;;  %s5797_s17 = sld [smem:[#allocation8 + $0x6b]] }
 0x487   : > { %v2403_v49 = vadd.f32 %v2402_v20, %v2378_v62  ;;  %v2399_v56 = vadd.f32 %v2398_v8, %v2370_v51  ;;  %v3085_v20 = vstv %s5759_s2  ;;  %v3077_v8 = vstv %s5763_s12  ;;  %s3607_s15 = sld [smem:[#allocation8 + $0x36]] }
 0x488   : > { %v2392_v13 = vpop.permute.xlu1 %2391  ;;  %v2384_v30 = vpop.permute.xlu0 %2383  ;;  %v2571_v63 = vstv %s5807_s13  ;;  %s3608_s26 = sld [smem:[#allocation8 + $0x5a]] }
 0x489   : > { %v2394_v14 = vadd.f32 %v2392_v13, %v2362_v23  ;;  %v2386_v40 = vadd.f32 %v2384_v30, %v2354_v28  ;;  %v3061_v23 = vstv %s5749_s14  ;;  %v5777_v28 = vld [vmem:[#allocation2 + $0x32] sm:$0xff]  ;;  %s5811_s14 = sld [smem:[#allocation8 + $0x57]] }
 0x48a   : > { %2991 = vrot.lane.b32.xlu1 %v2989_v5, %s6017_s9  ;;  %2983 = vrot.lane.b32.xlu0 %v2981_v24, %s6017_s9  ;;  %v3070_v62 = vmul.f32 %v3069_v9, %v5777_v28  ;;  %v3062_v51 = vmul.f32 %v3061_v23, %v5777_v28  ;;  %v3086_v35 = vmul.f32 %v3085_v20, %v5777_v28  ;;  %s3618_s2 = sld [smem:[#allocation8 + $0x15]] }
 0x48b   : > { %v2411_v21 = vadd.f32 %v2410_v43, %v2394_v14  ;;  %v2407_v59 = vadd.f32 %v2406_v39, %v2386_v40  ;;  %v3078_v50 = vmul.f32 %v3077_v8, %v5777_v28  ;;  %v3101_v40 = vstv %s5775_s10  ;;  %s3621_s12 = sld [smem:[#allocation8 + $0x81]] }
 0x48c   : > { %v2425_v46 = vpop.permute.xlu1 %2424  ;;  %v2417_v45 = vpop.permute.xlu0 %2416  ;;  %v3093_v43 = vstv %s5781_s1  ;;  %s3620_s10 = sld [smem:[#allocation8 + $0x5d]] }
 0x48d   : > { %v2427_v41 = vadd.f32 %v2425_v46, %v2403_v49  ;;  %v2419_v26 = vadd.f32 %v2417_v45, %v2399_v56  ;;  %v2491_v49 = vmul.f32 %v2490_v57, %v5475_v31  ;;  %v2487_v56 = vmul.f32 %v2486_v38, %v5475_v31  ;;  %s3631_s1 = sld [smem:[#allocation8 + $0x3c]] }
 0x48e   : > { %3007 = vrot.lane.b32.xlu1 %v3005_v12, %s6017_s9  ;;  %2999 = vrot.lane.b32.xlu0 %v2997_v19, %s6017_s9  ;;  %v3094_v46 = vmul.f32 %v3093_v43, %v5777_v28  ;;  %v3117_v19 = vstv %s5793_s11  ;;  %v2644_v8 = vstv %s3607_s15  ;;  %s3633_s11 = sld [smem:[#allocation8 + $0x84]] }
 0x48f   : > { %v2567_v7 = vstv %s5811_s14  ;;  %s3642_s13 = sld [smem:[#allocation8 + $0x1b]] }
 0x490   : > { %v2441_v60 = vpop.permute.xlu1 %2440  ;;  %v2433_v3 = vpop.permute.xlu0 %2432  ;;  %v2721_v4 = vstv %s3618_s2  ;;  %s3645_s14 = sld [smem:[#allocation8 + $0x87]] }
 0x491   : > { %v2443_v48 = vadd.f32 %v2441_v60, %v2411_v21  ;;  %v2435_v10 = vadd.f32 %v2433_v3, %v2407_v59  ;;  %v3102_v59 = vmul.f32 %v3101_v40, %v5777_v28  ;;  %v3118_v3 = vmul.f32 %v3117_v19, %v5777_v28  ;;  %s3644_s15 = sld [smem:[#allocation8 + $0x63]] }
 0x492   : > { %3023 = vrot.lane.b32.xlu1 %v3021_v16, %s6016_s30  ;;  %3015 = vrot.lane.b32.xlu0 %v3013_v44, %s6016_s30  ;;  %s3667_s2 = sld [smem:[#allocation8 + $0x45]] }
 0x494   : > { %v2457_v18 = vpop.permute.xlu1 %2456  ;;  %v2449_v61 = vpop.permute.xlu0 %2448 }
 0x495   : > { %v2459_v29 = vadd.f32 %v2457_v18, %v2427_v41  ;;  %v2451_v17 = vadd.f32 %v2449_v61, %v2419_v26  ;;  %v3109_v41 = vstv %s5797_s17  ;;  %v2563_v26 = vstv %s5787_s3  ;;  %v3682_v18 = vld [vmem:[%s4163_s6 + $0x32] sm:$0xff]  ;;  %s3609_s6 = sld [smem:[#allocation8 + $0x7e]] }
 0x496   : > { %3039 = vrot.lane.b32.xlu1 %v3037_v25, %s6016_s30  ;;  %3031 = vrot.lane.b32.xlu0 %v3029_v47, %s6016_s30  ;;  %v3110_v16 = vmul.f32 %v3109_v41, %v5777_v28  ;;  %s3630_s3 = sld [smem:[#allocation8 + $0x18]] }
 0x497   : > { %v2484_v54 = vadd.f32 %v2483_v36, %v2459_v29  ;;  %v2480_v52 = vadd.f32 %v2479_v34, %v2451_v17  ;;  %v2572_v17 = vmul.f32 %v2571_v63, %v5493_v0  ;;  %v2568_v36 = vmul.f32 %v2567_v7, %v5493_v0  ;;  %s3632_s17 = sld [smem:[#allocation8 + $0x60]] }
 0x498   : > { %v2473_v15 = vpop.permute.xlu1 %2472  ;;  %v2465_v11 = vpop.permute.xlu0 %2464  ;;  %v2729_v63 = vstv %s3620_s10  ;;  %s3669_s10 = sld [smem:[#allocation8 + $0x8d]] }
 0x499   : > { %v2475_v32 = vadd.f32 %v2473_v15, %v2443_v48  ;;  %v2467_v53 = vadd.f32 %v2465_v11, %v2435_v10  ;;  %v2564_v10 = vmul.f32 %v2563_v26, %v5493_v0 }
 0x49a   : > { %3072 = vrot.lane.b32.xlu1 %v3070_v62, %s6017_s9  ;;  %3064 = vrot.lane.b32.xlu0 %v3062_v51, %s6017_s9 }
 0x49b   : > { %v2492_v13 = vadd.f32 %v2491_v49, %v2475_v32  ;;  %v2488_v30 = vadd.f32 %v2487_v56, %v2467_v53 }
 0x49c   : > { %v2506_v5 = vpop.permute.xlu1 %2505  ;;  %v2498_v24 = vpop.permute.xlu0 %2497 }
 0x49d   : > { %v2508_v14 = vadd.f32 %v2506_v5, %v2484_v54  ;;  %v2500_v31 = vadd.f32 %v2498_v24, %v2480_v52  ;;  %v2652_v5 = vstv %s3609_s6  ;;  %v2648_v24 = vstv %s3608_s26  ;;  %s3654_s6 = sld [smem:[#allocation8 + $0x1e]] }
 0x49e   : > { %3088 = vrot.lane.b32.xlu1 %v3086_v35, %s6017_s9  ;;  %3080 = vrot.lane.b32.xlu0 %v3078_v50, %s6017_s9  ;;  %s3657_s26 = sld [smem:[#allocation8 + $0x8a]] }
 0x4a0   : > { %v2522_v39 = vpop.permute.xlu1 %2521  ;;  %v2514_v21 = vpop.permute.xlu0 %2513 }
 0x4a1   : > { %v2524_v45 = vadd.f32 %v2522_v39, %v2492_v13  ;;  %v2516_v12 = vadd.f32 %v2514_v21, %v2488_v30  ;;  %v2645_v13 = vmul.f32 %v2644_v8, %v5509_v33  ;;  %v2653_v39 = vmul.f32 %v2652_v5, %v5509_v33 }
 0x4a2   : > { %3104 = vrot.lane.b32.xlu1 %v3102_v59, %s6016_s30  ;;  %3096 = vrot.lane.b32.xlu0 %v3094_v46, %s6016_s30  ;;  %v2649_v21 = vmul.f32 %v2648_v24, %v5509_v33 }
 0x4a4   : > { %v2538_v55 = vpop.permute.xlu1 %2537  ;;  %v2530_v60 = vpop.permute.xlu0 %2529 }
 0x4a5   : > { %v2540_v44 = vadd.f32 %v2538_v55, %v2508_v14  ;;  %v2532_v48 = vadd.f32 %v2530_v60, %v2500_v31 }
 0x4a6   : > { %3120 = vrot.lane.b32.xlu1 %v3118_v3, %s6016_s30  ;;  %3112 = vrot.lane.b32.xlu0 %v3110_v16, %s6016_s30  ;;  %s3606_s30 = sld [smem:[#allocation8 + $0x12]] }
 0x4a7   : > { %v2565_v61 = vadd.f32 %v2564_v10, %v2540_v44  ;;  %v2561_v25 = vadd.f32 %v2560_v27, %v2532_v48  ;;  %v2722_v10 = vmul.f32 %v2721_v4, %v5543_v42  ;;  %v2733_v27 = vstv %s3621_s12  ;;  %s3666_s12 = sld [smem:[#allocation8 + $0x21]] }
 0x4a8   : > { %v2554_v47 = vpop.permute.xlu1 %2553  ;;  %v2546_v9 = vpop.permute.xlu0 %2545 }
 0x4a9   : > { %v2556_v23 = vadd.f32 %v2554_v47, %v2524_v45  ;;  %v2548_v29 = vadd.f32 %v2546_v9, %v2516_v12 }
 0x4aa   : > { %3165 = vrot.lane.b32.xlu1 %v3685_v58, %s6017_s9  ;;  %3153 = vrot.lane.b32.xlu0 %v3682_v18, %s6017_s9  ;;  %s3619_s9 = sld [smem:[#allocation8 + $0x39]] }
 0x4ab   : > { %v2573_v34 = vadd.f32 %v2572_v17, %v2556_v23  ;;  %v2569_v57 = vadd.f32 %v2568_v36, %v2548_v29  ;;  %v2734_v29 = vmul.f32 %v2733_v27, %v5543_v42  ;;  %v2730_v17 = vmul.f32 %v2729_v63, %v5543_v42 }
 0x4ac   : > { %v2587_v38 = vpop.permute.xlu1 %2586  ;;  %v2579_v54 = vpop.permute.xlu0 %2578  ;;  %v2640_v0 = vstv %s3606_s30  ;;  %s3655_s30 = sld [smem:[#allocation8 + $0x42]] }
 0x4ad   : > { %v2589_v52 = vadd.f32 %v2587_v38, %v2565_v61  ;;  %v2581_v15 = vadd.f32 %v2579_v54, %v2561_v25  ;;  %v2641_v30 = vmul.f32 %v2640_v0, %v5509_v33 }
 0x4b0   : > { %v2603_v11 = vpop.permute.xlu1 %2602  ;;  %v2595_v62 = vpop.permute.xlu0 %2594  ;;  %v2725_v26 = vstv %s3619_s9  ;;  %s3656_s9 = sld [smem:[#allocation8 + $0x66]] }
 0x4b1   : > { %v2605_v51 = vadd.f32 %v2603_v11, %v2573_v34  ;;  %v2597_v20 = vadd.f32 %v2595_v62, %v2569_v57  ;;  %v2726_v33 = vmul.f32 %v2725_v26, %v5543_v42  ;;  %v2802_v11 = vstv %s3630_s3  ;;  %s3680_s3 = sld [smem:[#allocation9 + $0x1]] }
 0x4b4   : > { %v2619_v32 = vpop.permute.xlu1 %2618  ;;  %v2611_v53 = vpop.permute.xlu0 %2610 }
 0x4b5   : > { %v2621_v49 = vadd.f32 %v2619_v32, %v2589_v52  ;;  %v2613_v56 = vadd.f32 %v2611_v53, %v2581_v15  ;;  %v2806_v15 = vstv %s3631_s1  ;;  %v2803_v53 = vmul.f32 %v2802_v11, %v5603_v1  ;;  %s3668_s1 = sld [smem:[#allocation8 + $0x69]] }
 0x4b6   : > { %v2807_v42 = vmul.f32 %v2806_v15, %v5603_v1 }
 0x4b7   : > { %v2646_v35 = vadd.f32 %v2645_v13, %v2621_v49  ;;  %v2642_v50 = vadd.f32 %v2641_v30, %v2613_v56  ;;  %v2814_v49 = vstv %s3633_s11  ;;  %v2810_v56 = vstv %s3632_s17  ;;  %s3125_s11 = sld [smem:[#allocation9]] }
 0x4b8   : > { %v2635_v14 = vpop.permute.xlu1 %2634  ;;  %v2627_v31 = vpop.permute.xlu0 %2626  ;;  %s3686_s17 = sld [smem:[#allocation9 + $0x3]] }
 0x4b9   : > { %v2637_v40 = vadd.f32 %v2635_v14, %v2605_v51  ;;  %v2629_v43 = vadd.f32 %v2627_v31, %v2597_v20 }
 0x4bb   : > { %v2654_v59 = vadd.f32 %v2653_v39, %v2637_v40  ;;  %v2650_v46 = vadd.f32 %v2649_v21, %v2629_v43  ;;  %v2815_v40 = vmul.f32 %v2814_v49, %v5603_v1  ;;  %v2811_v43 = vmul.f32 %v2810_v56, %v5603_v1 }
 0x4bc   : > { %v2668_v45 = vpop.permute.xlu1 %2667  ;;  %v2660_v12 = vpop.permute.xlu0 %2659 }
 0x4bd   : > { %v2670_v55 = vadd.f32 %v2668_v45, %v2646_v35  ;;  %v2662_v60 = vadd.f32 %v2660_v12, %v2642_v50 }
 0x4c0   : > { %v2684_v19 = vpop.permute.xlu1 %2683  ;;  %v2676_v41 = vpop.permute.xlu0 %2675 }
 0x4c1   : > { %v2686_v7 = vadd.f32 %v2684_v19, %v2654_v59  ;;  %v2678_v58 = vadd.f32 %v2676_v41, %v2650_v46  ;;  %v2887_v19 = vstv %s3643_s0  ;;  %v2883_v41 = vstv %s3642_s13  ;;  %s3683_s0 = sld [smem:[#allocation9 + $0x2]]  ;;  %s3689_s13 = sshll.u32 %s3966_s22, 3 }
 0x4c2   : > { %v2888_v1 = vmul.f32 %v2887_v19, %v5661_v6 }
 0x4c4   : > { %v2700_v3 = vpop.permute.xlu1 %2699  ;;  %v2692_v16 = vpop.permute.xlu0 %2691 }
 0x4c5   : > { %v2702_v44 = vadd.f32 %v2700_v3, %v2670_v55  ;;  %v2694_v48 = vadd.f32 %v2692_v16, %v2662_v60 }
 0x4c7   : > { %v2727_v18 = vadd.f32 %v2726_v33, %v2702_v44  ;;  %v2723_v61 = vadd.f32 %v2722_v10, %v2694_v48  ;;  %v2884_v44 = vmul.f32 %v2883_v41, %v5661_v6  ;;  %v2895_v48 = vstv %s3645_s14  ;;  %s3184_s14 = sadd.s32 %s3962_s21, %s3689_s13 }
 0x4c8   : > { %v2716_v25 = vpop.permute.xlu1 %2715  ;;  %v2708_v47 = vpop.permute.xlu0 %2707  ;;  %v2891_v33 = vstv %s3644_s15  ;;  %s3187_s15 = sshll.u32 %s5363_s27, 4  ;;  %s3690_s22 = sshll.u32 %s3184_s14, 7  ;;  %s5868_s15 = int_to_ptr.vmem [resolvable:$true] %s3187_s15 }
 0x4c9   : > { %v2718_v9 = vadd.f32 %v2716_v25, %v2686_v7  ;;  %v2710_v23 = vadd.f32 %v2708_v47, %v2678_v58  ;;  %v2896_v47 = vmul.f32 %v2895_v48, %v5661_v6 }
 0x4cb   : > { %v2735_v36 = vadd.f32 %v2734_v29, %v2718_v9  ;;  %v2731_v34 = vadd.f32 %v2730_v17, %v2710_v23  ;;  %v2892_v9 = vmul.f32 %v2891_v33, %v5661_v6 }
 0x4cc   : > { %v2749_v57 = vpop.permute.xlu1 %2748  ;;  %v2741_v38 = vpop.permute.xlu0 %2740 }
 0x4cd   : > { %v2751_v62 = vadd.f32 %v2749_v57, %v2727_v18  ;;  %v2743_v51 = vadd.f32 %v2741_v38, %v2723_v61  ;;  %v2968_v38 = vstv %s3655_s30 }
 0x4ce   : > { %v2969_v6 = vmul.f32 %v2968_v38, %v5719_v2 }
 0x4d0   : > { %v2765_v54 = vpop.permute.xlu1 %2764  ;;  %v2757_v52 = vpop.permute.xlu0 %2756 }
 0x4d1   : > { %v2767_v13 = vadd.f32 %v2765_v54, %v2735_v36  ;;  %v2759_v30 = vadd.f32 %v2757_v52, %v2731_v34  ;;  %v2964_v54 = vstv %s3654_s6  ;;  %s5873_s6 = scalar_lea.hbm %s5937_s5, %s3690_s22 }
 0x4d4   : > { %v2781_v20 = vpop.permute.xlu1 %2780  ;;  %v2773_v8 = vpop.permute.xlu0 %2772 }
 0x4d5   : > { %v2783_v0 = vadd.f32 %v2781_v20, %v2751_v62  ;;  %v2775_v32 = vadd.f32 %v2773_v8, %v2743_v51  ;;  %v2965_v8 = vmul.f32 %v2964_v54, %v5719_v2 }
 0x4d7   : > { %v2808_v5 = vadd.f32 %v2807_v42, %v2783_v0  ;;  %v2804_v24 = vadd.f32 %v2803_v53, %v2775_v32  ;;  %v2976_v0 = vstv %s3657_s26  ;;  %v2972_v32 = vstv %s3656_s9  ;;  %s6018_s26 = sand.u32 1, %s3954_s19  }
 0x4d8   : > { %v2797_v35 = vpop.permute.xlu1 %2796  ;;  %v2789_v50 = vpop.permute.xlu0 %2788  ;;  %s5881_s9 = scalar_lea.sflag [#allocation4], %s6018_s26 }
 0x4d9   : > { %v2799_v14 = vadd.f32 %v2797_v35, %v2767_v13  ;;  %v2791_v31 = vadd.f32 %v2789_v50, %v2759_v30  ;;  %v2977_v35 = vmul.f32 %v2976_v0, %v5719_v2  ;;  %v2973_v50 = vmul.f32 %v2972_v32, %v5719_v2 }
 0x4db   : > { %v2816_v39 = vadd.f32 %v2815_v40, %v2799_v14  ;;  %v2812_v21 = vadd.f32 %v2811_v43, %v2791_v31 }
 0x4dc   : > { %v2830_v59 = vpop.permute.xlu1 %2829  ;;  %v2822_v46 = vpop.permute.xlu0 %2821 }
 0x4dd   : > { %v2832_v26 = vadd.f32 %v2830_v59, %v2808_v5  ;;  %v2824_v4 = vadd.f32 %v2822_v46, %v2804_v24  ;;  %v3049_v59 = vstv %s3667_s2  ;;  %v3045_v46 = vstv %s3666_s12  ;;  %s3874_s2 = scalar_lea.vmem %s5868_s15, 512  ;;  %s3988_s12 = smov [#allocation11]  }
 0x4de   : > { %v3050_v2 = vmul.f32 %v3049_v59, %v5777_v28  ;;  %p3875_p13 = scmp.ne.s32.totalorder %s5868_s15, %s3874_s2 }
 0x4e0   : > { %v2846_v45 = vpop.permute.xlu1 %2845  ;;  %v2838_v12 = vpop.permute.xlu0 %2837  ;;  %p3876_p4 = pnand %p3875_p13, %p6019_p1 }
 0x4e1   : > { %v2848_v10 = vadd.f32 %v2846_v45, %v2816_v39  ;;  %v2840_v27 = vadd.f32 %v2838_v12, %v2812_v21 }
 0x4e2   : > { %p3877_p8 = pneg %p3876_p4 }
 0x4e4   : > { %v2862_v55 = vpop.permute.xlu1 %2861  ;;  %v2854_v60 = vpop.permute.xlu0 %2853 }
 0x4e5   : > { %v2864_v3 = vadd.f32 %v2862_v55, %v2832_v26  ;;  %v2856_v16 = vadd.f32 %v2854_v60, %v2824_v4  ;;  %v3046_v55 = vmul.f32 %v3045_v46, %v5777_v28  ;;  %v3057_v60 = vstv %s3669_s10  ;;  %s3878_s10 = sshll.u32 %s3988_s12, 4  ;;  %s3879_s10 = int_to_ptr.vmem [resolvable:$false] %s3878_s10 }
 0x4e6   : > { %p3881_p5 = scmp.lt.s32.totalorder %s5868_s15, %s3879_s10 }
 0x4e7   : > { %v2889_v63 = vadd.f32 %v2888_v1, %v2864_v3  ;;  %v2885_v7 = vadd.f32 %v2884_v44, %v2856_v16  ;;  %v3053_v3 = vstv %s3668_s1  ;;  %s3880_s1 = scalar_lea.vmem %s3879_s10, 1024 }
 0x4e8   : > { %v2878_v58 = vpop.permute.xlu1 %2877  ;;  %v2870_v18 = vpop.permute.xlu0 %2869  ;;  %p3882_p6 = scmp.lt.s32.totalorder %s3880_s1, %s3874_s2 }
 0x4e9   : > { %v2880_v61 = vadd.f32 %v2878_v58, %v2848_v10  ;;  %v2872_v25 = vadd.f32 %v2870_v18, %v2840_v27  ;;  %v3054_v58 = vmul.f32 %v3053_v3, %v5777_v28 }
 0x4ea   : > { %p3883_p12 = por %p3882_p6, %p3881_p5 }
 0x4eb   : > { %v2897_v23 = vadd.f32 %v2896_v47, %v2880_v61  ;;  %v2893_v29 = vadd.f32 %v2892_v9, %v2872_v25 }
 0x4ec   : > { %v2911_v17 = vpop.permute.xlu1 %2910  ;;  %v2903_v36 = vpop.permute.xlu0 %2902  ;;  %p3884_p3 = pnand %p3883_p12, %p3877_p8 }
 0x4ed   : > { %v2913_v52 = vadd.f32 %v2911_v17, %v2889_v63  ;;  %v2905_v15 = vadd.f32 %v2903_v36, %v2885_v7  ;;  %v3058_v7 = vmul.f32 %v3057_v60, %v5777_v28  ;;  %v3138_v36 = vstv %s3680_s3 }
 0x4f0   : > { %v2927_v34 = vpop.permute.xlu1 %2926  ;;  %v2919_v57 = vpop.permute.xlu0 %2918 }
 0x4f1   : > { %v2929_v42 = vadd.f32 %v2927_v34, %v2897_v23  ;;  %v2921_v53 = vadd.f32 %v2919_v57, %v2893_v29  ;;  %v3126_v57 = vstv %s3125_s11 }
 0x4f4   : > { %v2943_v11 = vpop.permute.xlu1 %2942  ;;  %v2935_v62 = vpop.permute.xlu0 %2934 }
 0x4f5   : > { %v2945_v51 = vadd.f32 %v2943_v11, %v2913_v52  ;;  %v2937_v20 = vadd.f32 %v2935_v62, %v2905_v15 }
 0x4f7   : > { %v2970_v49 = vadd.f32 %v2969_v6, %v2945_v51  ;;  %v2966_v56 = vadd.f32 %v2965_v8, %v2937_v20  ;;  %v3162_v6 = vstv %s3686_s17  ;;  %v3150_v8 = vstv %s3683_s0 }
 0x4f8   : > { %v2959_v13 = vpop.permute.xlu1 %2958  ;;  %v2951_v30 = vpop.permute.xlu0 %2950 }
 0x4f9   : > { %v2961_v5 = vadd.f32 %v2959_v13, %v2929_v42  ;;  %v2953_v24 = vadd.f32 %v2951_v30, %v2921_v53 }
 0x4fb   : > { %v2978_v14 = vadd.f32 %v2977_v35, %v2961_v5  ;;  %v2974_v31 = vadd.f32 %v2973_v50, %v2953_v24 }
 0x4fc   : > { %v2992_v40 = vpop.permute.xlu1 %2991  ;;  %v2984_v43 = vpop.permute.xlu0 %2983 }
 0x4fd   : > { %v2994_v45 = vadd.f32 %v2992_v40, %v2970_v49  ;;  %v2986_v12 = vadd.f32 %v2984_v43, %v2966_v56 }
 0x500   : > { %v3008_v39 = vpop.permute.xlu1 %3007  ;;  %v3000_v21 = vpop.permute.xlu0 %2999 }
 0x501   : > { %v3010_v16 = vadd.f32 %v3008_v39, %v2978_v14  ;;  %v3002_v1 = vadd.f32 %v3000_v21, %v2974_v31 }
 0x504   : > { %v3024_v19 = vpop.permute.xlu1 %3023  ;;  %v3016_v41 = vpop.permute.xlu0 %3015 }
 0x505   : > { %v3026_v26 = vadd.f32 %v3024_v19, %v2994_v45  ;;  %v3018_v4 = vadd.f32 %v3016_v41, %v2986_v12 }
 0x507   : > { %v3051_v44 = vadd.f32 %v3050_v2, %v3026_v26  ;;  %v3047_v48 = vadd.f32 %v3046_v55, %v3018_v4 }
 0x508   : > { %v3040_v33 = vpop.permute.xlu1 %3039  ;;  %v3032_v10 = vpop.permute.xlu0 %3031 }
 0x509   : > { %v3042_v27 = vadd.f32 %v3040_v33, %v3010_v16  ;;  %v3034_v63 = vadd.f32 %v3032_v10, %v3002_v1 }
 0x50b   : > { %v3059_v18 = vadd.f32 %v3058_v7, %v3042_v27  ;;  %v3055_v61 = vadd.f32 %v3054_v58, %v3034_v63 }
 0x50c   : > { %v3073_v25 = vpop.permute.xlu1 %3072  ;;  %v3065_v47 = vpop.permute.xlu0 %3064 }
 0x50d   : > { %v3075_v29 = vadd.f32 %v3073_v25, %v3051_v44  ;;  %v3067_v17 = vadd.f32 %v3065_v47, %v3047_v48 }
 0x510   : > { %v3089_v9 = vpop.permute.xlu1 %3088  ;;  %v3081_v23 = vpop.permute.xlu0 %3080 }
 0x511   : > { %v3091_v52 = vadd.f32 %v3089_v9, %v3059_v18  ;;  %v3083_v15 = vadd.f32 %v3081_v23, %v3055_v61 }
 0x514   : > { %v3105_v34 = vpop.permute.xlu1 %3104  ;;  %v3097_v38 = vpop.permute.xlu0 %3096 }
 0x515   : > { %v3107_v54 = vadd.f32 %v3105_v34, %v3075_v29  ;;  %v3099_v28 = vadd.f32 %v3097_v38, %v3067_v17 }
 0x517   : > { %v3139_v11 = vadd.f32 %v3138_v36, %v3107_v54  ;;  %v3127_v62 = vadd.f32 %v3126_v57, %v3099_v28 }
 0x518   : > { %v3121_v51 = vpop.permute.xlu1 %3120  ;;  %v3113_v20 = vpop.permute.xlu0 %3112 }
 0x519   : > { %v3144_v0 = vadd.f32 %v5389_v37, %v3139_v11  ;;  %v3132_v32 = vadd.f32 %v5387_v22, %v3127_v62  ;;  %v3123_v42 = vadd.f32 %v3121_v51, %v3091_v52  ;;  %v3115_v53 = vadd.f32 %v3113_v20, %v3083_v15 }
 0x51b   : > { %v3145_v49 = vmax.f32 %v3144_v0, 0.0  ;;  %v3133_v56 = vmax.f32 %v3132_v32, 0.0  ;;  %v3163_v13 = vadd.f32 %v3162_v6, %v3123_v42  ;;  %v3151_v30 = vadd.f32 %v3150_v8, %v3115_v53 }
 0x51c   : > { %v3166_v5 = vpop.permute.xlu1 %3165  ;;  %v3154_v24 = vpop.permute.xlu0 %3153 }
 0x51d   : > { %3681 = vst.msk [vmem:[%s5363_s27 + $0x8] sm:$0xff] %vm3134_vm8, %v3145_v49  ;;  %3135 = vst.msk [vmem:[%s5363_s27] sm:$0xff] %vm3134_vm8, %v3133_v56  ;;  %v3168_v22 = vadd.f32 %v3166_v5, %v3163_v13  ;;  %v3156_v37 = vadd.f32 %v3154_v24, %v3151_v30 }
 0x51f   : > { %v3169_v35 = vmax.f32 %v3168_v22, 0.0  ;;  %v3157_v50 = vmax.f32 %v3156_v37, 0.0 }
 0x521   : > { %3687 = vst.msk [vmem:[%s5363_s27 + $0x18] sm:$0xff] %vm3134_vm8, %v3169_v35  ;;  %3684 = vst.msk [vmem:[%s5363_s27 + $0x10] sm:$0xff] %vm3134_vm8, %v3157_v50 }
 0x522   : > { %3887 = shalt.err (!%p3884_p3)
}
 0x523   : > { %s3888_s27 = scalar_lea.hbm %s5873_s6, 512  ;;  %s3892_s17 = scalar_lea.hbm %s5937_s5, 2048 }
 0x524   : > { %p3889_p10 = scmp.ne.s32.totalorder %s5873_s6, %s3888_s27  ;;  %p3893_p0 = scmp.lt.s32.totalorder %s5873_s6, %s5937_s5 }
 0x525   : > { %p3894_p2 = scmp.lt.s32.totalorder %s3892_s17, %s3888_s27 }
 0x526   : > { %p3890_p7 = pnand %p3889_p10, %p6019_p1 }
 0x527   : > { %p3895_p11 = por %p3894_p2, %p3893_p0 }
 0x528   : > { %p3891_p9 = pneg %p3890_p7 }
 0x52a   : > { %p3896_p13 = pnand %p3895_p11, %p3891_p9 }
 0x52c   : > { %3899 = shalt.err (!%p3896_p13)
}
 0x52d   : > { %s3989_s14 = smov 128   ;;  %s3990_s22 = smov 256  }
 0x52e   : > { %s3991_s21 = smov 8  }
 0x52f   : > { %3710 = dma.vmem_to_hbm [thread:$0]  (%p6019_p1), %s5868_s15, 512, %s5873_s6, %s5881_s9, %s3989_s14, %s3990_s22, %s3991_s21  }
 0x530 PF: > { %p3737_p4 = scmp.ge.s32.totalorder %s3978_s25, 2  ;;  %s3202_s30 = sand.u32 1, %s3950_s18  }
 0x531   : > { %p6020_p8 = scmp.ne.s32.totalorder %s5962_s8, 0  ;;  %s3203_s26 = scalar_lea.sflag [#allocation4], %s3202_s30 }
 0x533   : > { %p3726_p5 = pnand %p3737_p4, %p6020_p8 }
 0x535   : > { %p3727_p6 = pneg %p3726_p5 }
 0x537   : > { %3945 = dma.done.wait (%p3727_p6), %s3203_s26, 512  }
 0x538   : > { %3947 = vsyncadd (%p3727_p6), %s3203_s26, 4294966784  ;;  %s21_s25 = sadd.s32 1, %s3978_s25   ;;  %s6021_s18 = smov %s3954_s19 }
 0x539   : > { %p18_p12 = scmp.ge.s32.totalorder %s21_s25, 6   ;;  %s6022_s19 = smov %s3958_s20 }
 0x53a   : > { %s6023_s20 = smov %s4104_s16  ;;  %s6024_s21 = smov %s3970_s23 }
 0x53b   : > { %s6025_s22 = smov %s3974_s24  ;;  %s6026_s23 = smov %s6029_s28 }
 0x53c   : > { %s6027_s24 = smov %s6033_s29  ;;  %20 = sbr.rel (!%p18_p12) target bundleno = 13 (0xd), region = 118 }
 0x541   :  { %3208 = vsyncpa [#allocation4], 1 }
 0x542   :  { %3210 = vsyncpa [#allocation4 + $0x1], 1 }
 0x543   :  { %3211 = vsyncpa [#allocation5], 1 }
 0x544   :  { %3213 = vsyncpa [#allocation5 + $0x1], 1 }
 0x545   :  { %3214 = vsyncpa [#allocation7], 1 }
 0x546   :  { %3215 = vsyncpa [#allocation10], 1 }

</bundles_post_ra>
